<compile_context>
chip_gen: v7x
topology: tpu7x:2x2x1
jax: 0.10.0
libtpu: 0.0.40
codegen_flags: <defaults>
</compile_context>

<pallas_src>
import jax
import jax.numpy as jnp
import numpy as np
from jax.experimental import pallas as pl
from jax.experimental.pallas import tpu as pltpu


# -----------------------------------------------------------------------------
# Fused encoder kernel (bi-GRU + pointer attention + output projections)
# -----------------------------------------------------------------------------
def encoder_kernel(x_ref, th_ref, kw_ref,
                   wihf_ref, bihf_ref, wihb_ref, bihb_ref,
                   whhf_ref, bhhf_ref, whhb_ref, bhhb_ref,
                   whidf_ref, whidb_ref,
                   wwf_ref, wwb_ref, bw_ref,
                   wth_ref, bth_ref, wkw_ref, bkw_ref,
                   we_ref, be_ref,
                   woa_ref, wof_ref, wob_ref, bo_ref,
                   out_ref, hid_ref,
                   gif_ref, gib_ref, outf_ref, outb_ref):
    f32 = jnp.float32
    Bp, H = th_ref.shape                 # padded batch, hidden
    s_l = x_ref.shape[0] // Bp
    p_t_l = kw_ref.shape[0] // Bp
    H3 = 3 * H

    # ---- (1) hoisted input-gate projections: one lane-aligned MXU matmul per
    #      direction, written straight to scratch (no 6H temporary, no slice).
    x = x_ref[...]
    gif_ref[...] = (jnp.dot(x, wihf_ref[...], preferred_element_type=f32)
                    + bihf_ref[...])
    gib_ref[...] = (jnp.dot(x, wihb_ref[...], preferred_element_type=f32)
                    + bihb_ref[...])

    whh_f = whhf_ref[...]                                  # (H, 3H)
    whh_b = whhb_ref[...]                                  # (H, 3H)
    bhh_f = jnp.broadcast_to(bhhf_ref[...], (Bp, H3))      # hoisted bias bcast
    bhh_b = jnp.broadcast_to(bhhb_ref[...], (Bp, H3))

    def gru_gates(gi_t, gh_t, h_prev):
        # PyTorch GRU cell, gate order [r, z, n]
        r = jax.nn.sigmoid(gi_t[:, :H] + gh_t[:, :H])
        z = jax.nn.sigmoid(gi_t[:, H:2 * H] + gh_t[:, H:2 * H])
        n = jnp.tanh(gi_t[:, 2 * H:] + r * gh_t[:, 2 * H:])
        return (1.0 - z) * n + z * h_prev

    def step(t, carry):                  # carry = (h_fwd, h_bwd), each (Bp, H)
        h_f, h_b = carry
        tb = s_l - 1 - t
        i_f = pl.multiple_of(t * Bp, Bp)
        i_b = pl.multiple_of(tb * Bp, Bp)
        # ---- (2) two small independent recurrent matmuls, no concatenate.
        gh_f = jnp.dot(h_f, whh_f, preferred_element_type=f32) + bhh_f
        gh_b = jnp.dot(h_b, whh_b, preferred_element_type=f32) + bhh_b
        h_f = gru_gates(gif_ref[pl.ds(i_f, Bp), :], gh_f, h_f)
        h_b = gru_gates(gib_ref[pl.ds(i_b, Bp), :], gh_b, h_b)
        outf_ref[pl.ds(i_f, Bp), :] = h_f
        outb_ref[pl.ds(i_b, Bp), :] = h_b
        return (h_f, h_b)

    h0 = jnp.zeros((Bp, H), f32)
    # (3) unrolled recurrence for LLO scheduling visibility
    h_f_last, h_b_last = jax.lax.fori_loop(0, s_l, step, (h0, h0),
                                           unroll=s_l if s_l <= 16 else 2)

    # enc_hidden = [h_fwd_final | h_bwd_final] @ enc_hidden_out (concat-free,
    # chained accumulation -> MRB accumulate on v7x).
    hid = jnp.dot(h_f_last, whidf_ref[...], preferred_element_type=f32)
    hid += jnp.dot(h_b_last, whidb_ref[...], preferred_element_type=f32)
    hid_ref[...] = hid

    # ---- pointer attention + output projection on (s_l*Bp, .) time-major slabs
    out_f = outf_ref[...]
    out_b = outb_ref[...]

    def repeat_over_time(blk):
        # (Bp, H) -> (s_l*Bp, H): sublane broadcast + no-op reshape (Bp % 8 == 0)
        return jnp.broadcast_to(blk[None, :, :], (s_l, Bp, H)).reshape(s_l * Bp, H)

    # b1 = enc_w_1 @ W_w + b_w, enc_w_1 = [out_f | out_b]  (concat-free split)
    b1 = jnp.dot(out_f, wwf_ref[...], preferred_element_type=f32)
    b1 += jnp.dot(out_b, wwb_ref[...], preferred_element_type=f32)
    b1 += bw_ref[...]                                                   # (s_l*Bp, H)

    # NOTE: theme sequence length is 1 (as baked into the PyTorch .view calls).
    b22 = (jnp.dot(th_ref[...], wth_ref[...], preferred_element_type=f32)
           + bth_ref[...])                                              # (Bp, H)
    b3 = (jnp.dot(kw_ref[...], wkw_ref[...], preferred_element_type=f32)
          + bkw_ref[...])                                               # (p_t_l*Bp, H)

    b22_rep = repeat_over_time(b22)                                     # (s_l*Bp, H)

    # sum over keyword positions of tanh(b1 + b22 + b3_t); p_t_l is small/static
    bsum = jnp.zeros_like(b1)
    for t in range(p_t_l):
        b3_t_rep = repeat_over_time(b3[t * Bp:(t + 1) * Bp, :])
        bsum = bsum + jnp.tanh(b1 + b22_rep + b3_t_rep)

    # enc_weight (Linear(H, 1)) as VPU multiply + lane reduction (XLU slot);
    # b_e folded as p_t_l * b_e.
    score = (jnp.sum(bsum * we_ref[...], axis=-1, keepdims=True)
             + p_t_l * be_ref[...])                                     # (s_l*Bp, 1)
    enc_w_2 = score * b22_rep                                           # (s_l*Bp, H)

    # enc_out = [enc_w_2 | out_f | out_b] @ W_out + b_out (concat-free split,
    # chained accumulation).
    out = jnp.dot(enc_w_2, woa_ref[...], preferred_element_type=f32)
    out += jnp.dot(out_f, wof_ref[...], preferred_element_type=f32)
    out += jnp.dot(out_b, wob_ref[...], preferred_element_type=f32)
    out += bo_ref[...]
    out_ref[...] = out


# -----------------------------------------------------------------------------
# Parameters & full forward
# -----------------------------------------------------------------------------
def init_params(key, data_size, H):
    ks = jax.random.split(key, 26)
    n = lambda k, s, sc=0.1: (sc * jax.random.normal(k, s)).astype(jnp.float32)
    return {
        'emb_theme': n(ks[0], (data_size, H)),
        'emb_keyword': n(ks[1], (data_size, H)),
        'emb_src': n(ks[2], (data_size, H)),
        # GRU (PyTorch layout: weight_ih_l0 (3H, H), etc.)
        'wih_f': n(ks[3], (3 * H, H)), 'whh_f': n(ks[4], (3 * H, H)),
        'bih_f': n(ks[5], (3 * H,)), 'bhh_f': n(ks[6], (3 * H,)),
        'wih_b': n(ks[7], (3 * H, H)), 'whh_b': n(ks[8], (3 * H, H)),
        'bih_b': n(ks[9], (3 * H,)), 'bhh_b': n(ks[10], (3 * H,)),
        # Linear layers (PyTorch layout: (out, in))
        'W_w': n(ks[11], (H, 2 * H)), 'b_w': n(ks[12], (H,)),
        'W_th': n(ks[13], (H, H)), 'b_th': n(ks[14], (H,)),
        'W_kw': n(ks[15], (H, H)), 'b_kw': n(ks[16], (H,)),
        'W_e': n(ks[17], (1, H)), 'b_e': n(ks[18], (1,)),
        'W_out': n(ks[19], (H, 3 * H)), 'b_out': n(ks[20], (H,)),
        'W_hid': n(ks[21], (H, 2 * H)),  # enc_hidden_out, bias=False
    }


@jax.jit
def encoder_forward(params, theme, keyword, src):
    """theme: (1, B) int32; keyword: (p_t_l, B) int32; src: (s_l, B) int32."""
    assert theme.shape[0] == 1, "pointer attention assumes theme length == 1"
    H = params['emb_src'].shape[1]
    s_l, B = src.shape
    p_t_l = keyword.shape[0]
    f32 = jnp.float32
    H3 = 3 * H

    # Pad batch to a multiple of 8 (sublane) so per-timestep row blocks inside
    # the kernel are aligned; padding happens on the tiny int index arrays so
    # the gathers emit the padded layout for free.
    # TODO(synk): at production batch sizes grow Bp toward the MXU row limit
    #             (128 on v5e, 256 on v6e/v7x) before adding grid parallelism.
    Bp = ((B + 7) // 8) * 8
    pad = Bp - B
    src_p = jnp.pad(src, ((0, 0), (0, pad)))
    theme_p = jnp.pad(theme, ((0, 0), (0, pad)))
    keyword_p = jnp.pad(keyword, ((0, 0), (0, pad)))

    src_emb = jnp.take(params['emb_src'], src_p, axis=0)            # (s_l, Bp, H)
    theme_emb = jnp.take(params['emb_theme'], theme_p[0], axis=0)   # (Bp, H)
    kw_emb = jnp.take(params['emb_keyword'], keyword_p, axis=0)     # (p_t_l, Bp, H)

    # Time-major row-major flattens (free reshapes, no HBM transpose passes).
    x2d = src_emb.reshape(s_l * Bp, H)
    kw2d = kw_emb.reshape(p_t_l * Bp, H)

    # ---- pre-transposed / split weight layouts (built once under jit) ----
    wihf = params['wih_f'].T                                         # (H, 3H)
    wihb = params['wih_b'].T
    bihf = params['bih_f'].reshape(1, H3)
    bihb = params['bih_b'].reshape(1, H3)
    whhf = params['whh_f'].T                                         # (H, 3H)
    whhb = params['whh_b'].T
    bhhf = params['bhh_f'].reshape(1, H3)
    bhhb = params['bhh_b'].reshape(1, H3)
    whid = params['W_hid'].T                                         # (2H, H)
    whidf, whidb = whid[:H], whid[H:]
    ww = params['W_w'].T                                             # (2H, H)
    wwf, wwb = ww[:H], ww[H:]
    wth = params['W_th'].T
    wkw = params['W_kw'].T
    we_row = params['W_e'].reshape(1, H)                             # VPU row, no MXU pad
    be = params['b_e'].reshape(1, 1)
    wout = params['W_out'].T                                         # (3H, H)
    woa, wof, wob = wout[:H], wout[H:2 * H], wout[2 * H:]
    bw = params['b_w'].reshape(1, H)
    bth = params['b_th'].reshape(1, H)
    bkw = params['b_kw'].reshape(1, H)
    bo = params['b_out'].reshape(1, H)

    args = (x2d, theme_emb, kw2d,
            wihf, bihf, wihb, bihb,
            whhf, bhhf, whhb, bhhb,
            whidf, whidb,
            wwf, wwb, bw, wth, bth, wkw, bkw,
            we_row, be, woa, wof, wob, bo)

    # Scoped-VMEM limit: resident buffers (inputs + outputs + scratch) plus
    # headroom, never below the scoped default, never above the smallest
    # physical VMEM (v7x: 64 MiB).
    def _nbytes(shape):
        return int(np.prod(shape)) * 4
    resident = (sum(_nbytes(a.shape) for a in args)
                + _nbytes((s_l * Bp, H)) + _nbytes((Bp, H))            # outputs
                + 2 * _nbytes((s_l * Bp, H3))                          # gi scratch
                + 2 * _nbytes((s_l * Bp, H)))                          # out_f/out_b
    vmem_limit = int(min(64 << 20, max(32 << 20, 2 * resident + (4 << 20))))

    vmem = pl.BlockSpec(memory_space=pltpu.MemorySpace.VMEM)
    out2d, hid = pl.pallas_call(
        encoder_kernel,
        out_shape=(jax.ShapeDtypeStruct((s_l * Bp, H), f32),   # enc_out (time-major)
                   jax.ShapeDtypeStruct((Bp, H), f32)),        # projected enc_hidden
        in_specs=[vmem] * len(args),
        out_specs=(vmem, vmem),
        scratch_shapes=[
            pltpu.VMEM((s_l * Bp, H3), f32),   # hoisted forward input gates
            pltpu.VMEM((s_l * Bp, H3), f32),   # hoisted backward input gates
            pltpu.VMEM((s_l * Bp, H), f32),    # forward-direction outputs
            pltpu.VMEM((s_l * Bp, H), f32),    # backward-direction outputs
        ],
        compiler_params=pltpu.CompilerParams(vmem_limit_bytes=vmem_limit),
    )(*args)

    enc_out = out2d.reshape(s_l, Bp, H)[:, :B, :]    # (s_l, B, H)
    enc_hidden = hid[:B][None]                        # (1, B, H)
    return enc_out, enc_hidden


# -----------------------------------------------------------------------------
# Pure-JAX reference (for verification)
# -----------------------------------------------------------------------------
def _gru_cell_ref(x_t, h, wih, whh, bih, bhh, H):
    gi = x_t @ wih.T + bih
    gh = h @ whh.T + bhh
    r = jax.nn.sigmoid(gi[:, :H] + gh[:, :H])
    z = jax.nn.sigmoid(gi[:, H:2 * H] + gh[:, H:2 * H])
    n = jnp.tanh(gi[:, 2 * H:] + r * gh[:, 2 * H:])
    return (1 - z) * n + z * h


def encoder_ref(params, theme, keyword, src):
    H = params['emb_src'].shape[1]
    B = src.shape[1]
    src_emb = params['emb_src'][src]
    theme_emb = params['emb_theme'][theme]
    keyword_emb = params['emb_keyword'][keyword]
    h0 = jnp.zeros((B, H), jnp.float32)

    def scan_f(h, x_t):
        h = _gru_cell_ref(x_t, h, params['wih_f'], params['whh_f'],
                          params['bih_f'], params['bhh_f'], H)
        return h, h

    def scan_b(h, x_t):
        h = _gru_cell_ref(x_t, h, params['wih_b'], params['whh_b'],
                          params['bih_b'], params['bhh_b'], H)
        return h, h

    h_f_last, out_f = jax.lax.scan(scan_f, h0, src_emb)
    h_b_last, out_b_rev = jax.lax.scan(scan_b, h0, src_emb[::-1])
    out_b = out_b_rev[::-1]
    enc_output = jnp.concatenate([out_f, out_b], axis=2)
    enc_hidden = jnp.concatenate([h_f_last, h_b_last], axis=-1)[None]  # (1,B,2H)

    enc_w_1 = jnp.transpose(enc_output, (1, 0, 2))
    enc_theme = jnp.transpose(theme_emb, (1, 0, 2))
    enc_keyword = jnp.transpose(keyword_emb, (1, 0, 2))

    b1 = enc_w_1 @ params['W_w'].T + params['b_w']                # (B, s_l, H)
    b22 = enc_theme[:, 0] @ params['W_th'].T + params['b_th']     # (B, H)
    b3 = enc_keyword @ params['W_kw'].T + params['b_kw']          # (B, p_t_l, H)
    b = jnp.tanh(b1[:, :, None, :] + b22[:, None, None, :] + b3[:, None, :, :])
    enc_w = jnp.einsum('bsth,h->bst', b, params['W_e'][0]) + params['b_e'][0]
    enc_w_2 = jnp.einsum('bst,bh->bsh', enc_w, b22)
    concat = jnp.concatenate([enc_w_2, enc_w_1], axis=2)
    enc_out = concat @ params['W_out'].T + params['b_out']
    enc_out = jnp.transpose(enc_out, (1, 0, 2))
    enc_hidden = enc_hidden @ params['W_hid'].T
    return enc_out, enc_hidden


# -----------------------------------------------------------------------------
if __name__ == "__main__":
    data_size, H, B, s_l, p_t_l = 50, 32, 2, 8, 4
    key = jax.random.PRNGKey(0)
    pkey, k1, k2, k3 = jax.random.split(key, 4)
    params = init_params(pkey, data_size, H)

    theme = jax.random.randint(k1, (1, B), 0, data_size, dtype=jnp.int32)
    keyword = jax.random.randint(k2, (p_t_l, B), 0, data_size, dtype=jnp.int32)
    src = jax.random.randint(k3, (s_l, B), 0, data_size, dtype=jnp.int32)

    enc_out, enc_hidden = encoder_forward(params, theme, keyword, src)
    jax.block_until_ready((enc_out, enc_hidden))

    ref_out, ref_hid = encoder_ref(params, theme, keyword, src)
    np.testing.assert_allclose(np.asarray(enc_out), np.asarray(ref_out),
                               rtol=1e-4, atol=1e-4)
    np.testing.assert_allclose(np.asarray(enc_hidden), np.asarray(ref_hid),
                               rtol=1e-4, atol=1e-4)

    assert enc_out.shape == (s_l, B, H) and enc_hidden.shape == (1, B, H)
    print("KERNEL_OK")
</pallas_src>

<mosaic_0001>
module attributes {stable_mosaic.version = 11 : i64} {
  func.func @encoder_kernel(%arg0: memref<64x32xf32, #tpu.memory_space<vmem>>, %arg1: memref<8x32xf32, #tpu.memory_space<vmem>>, %arg2: memref<32x32xf32, #tpu.memory_space<vmem>>, %arg3: memref<32x96xf32, #tpu.memory_space<vmem>>, %arg4: memref<1x96xf32, #tpu.memory_space<vmem>>, %arg5: memref<32x96xf32, #tpu.memory_space<vmem>>, %arg6: memref<1x96xf32, #tpu.memory_space<vmem>>, %arg7: memref<32x96xf32, #tpu.memory_space<vmem>>, %arg8: memref<1x96xf32, #tpu.memory_space<vmem>>, %arg9: memref<32x96xf32, #tpu.memory_space<vmem>>, %arg10: memref<1x96xf32, #tpu.memory_space<vmem>>, %arg11: memref<32x32xf32, #tpu.memory_space<vmem>>, %arg12: memref<32x32xf32, #tpu.memory_space<vmem>>, %arg13: memref<32x32xf32, #tpu.memory_space<vmem>>, %arg14: memref<32x32xf32, #tpu.memory_space<vmem>>, %arg15: memref<1x32xf32, #tpu.memory_space<vmem>>, %arg16: memref<32x32xf32, #tpu.memory_space<vmem>>, %arg17: memref<1x32xf32, #tpu.memory_space<vmem>>, %arg18: memref<32x32xf32, #tpu.memory_space<vmem>>, %arg19: memref<1x32xf32, #tpu.memory_space<vmem>>, %arg20: memref<1x32xf32, #tpu.memory_space<vmem>>, %arg21: memref<1x1xf32, #tpu.memory_space<vmem>>, %arg22: memref<32x32xf32, #tpu.memory_space<vmem>>, %arg23: memref<32x32xf32, #tpu.memory_space<vmem>>, %arg24: memref<32x32xf32, #tpu.memory_space<vmem>>, %arg25: memref<1x32xf32, #tpu.memory_space<vmem>>, %arg26: memref<64x32xf32, #tpu.memory_space<vmem>>, %arg27: memref<8x32xf32, #tpu.memory_space<vmem>>, %arg28: memref<64x96xf32, #tpu.memory_space<vmem>>, %arg29: memref<64x96xf32, #tpu.memory_space<vmem>>, %arg30: memref<64x32xf32, #tpu.memory_space<vmem>>, %arg31: memref<64x32xf32, #tpu.memory_space<vmem>>) attributes {dimension_semantics = [], scalar_prefetch = 0 : i64, scratch_operands = 4 : i64, tpu.core_type = #tpu.core_type<tc>} {
    %c0 = arith.constant 0 : index
    %c0_0 = arith.constant 0 : index
    %0 = vector.load %arg0[%c0, %c0_0] : memref<64x32xf32, #tpu.memory_space<vmem>>, vector<64x32xf32>
    %c0_1 = arith.constant 0 : index
    %c0_2 = arith.constant 0 : index
    %1 = vector.load %arg3[%c0_1, %c0_2] : memref<32x96xf32, #tpu.memory_space<vmem>>, vector<32x96xf32>
    %cst = arith.constant dense<0.000000e+00> : vector<64x96xf32>
    %2 = tpu.matmul %0, %1, %cst {dimension_numbers = #tpu.dot_dimension_numbers<[1], [0], [0], [1], [0, 0, 1, 1], [], []>} : vector<64x32xf32>, vector<32x96xf32>, vector<64x96xf32> -> vector<64x96xf32>
    %c0_3 = arith.constant 0 : index
    %c0_4 = arith.constant 0 : index
    %3 = vector.load %arg4[%c0_3, %c0_4] : memref<1x96xf32, #tpu.memory_space<vmem>>, vector<1x96xf32>
    %4 = vector.broadcast %3 : vector<1x96xf32> to vector<64x96xf32>
    %5 = arith.addf %2, %4 : vector<64x96xf32>
    %c0_5 = arith.constant 0 : index
    %c0_6 = arith.constant 0 : index
    %6 = vector.load %arg28[%c0_5, %c0_6] : memref<64x96xf32, #tpu.memory_space<vmem>>, vector<64x96xf32>
    tpu.vector_store %arg28[%c0_5, %c0_6], %5 {strides = array<i32>} : memref<64x96xf32, #tpu.memory_space<vmem>>, vector<64x96xf32>,
    %c0_7 = arith.constant 0 : index
    %c0_8 = arith.constant 0 : index
    %7 = vector.load %arg5[%c0_7, %c0_8] : memref<32x96xf32, #tpu.memory_space<vmem>>, vector<32x96xf32>
    %cst_9 = arith.constant dense<0.000000e+00> : vector<64x96xf32>
    %8 = tpu.matmul %0, %7, %cst_9 {dimension_numbers = #tpu.dot_dimension_numbers<[1], [0], [0], [1], [0, 0, 1, 1], [], []>} : vector<64x32xf32>, vector<32x96xf32>, vector<64x96xf32> -> vector<64x96xf32>
    %c0_10 = arith.constant 0 : index
    %c0_11 = arith.constant 0 : index
    %9 = vector.load %arg6[%c0_10, %c0_11] : memref<1x96xf32, #tpu.memory_space<vmem>>, vector<1x96xf32>
    %10 = vector.broadcast %9 : vector<1x96xf32> to vector<64x96xf32>
    %11 = arith.addf %8, %10 : vector<64x96xf32>
    %c0_12 = arith.constant 0 : index
    %c0_13 = arith.constant 0 : index
    %12 = vector.load %arg29[%c0_12, %c0_13] : memref<64x96xf32, #tpu.memory_space<vmem>>, vector<64x96xf32>
    tpu.vector_store %arg29[%c0_12, %c0_13], %11 {strides = array<i32>} : memref<64x96xf32, #tpu.memory_space<vmem>>, vector<64x96xf32>,
    %c0_14 = arith.constant 0 : index
    %c0_15 = arith.constant 0 : index
    %13 = vector.load %arg7[%c0_14, %c0_15] : memref<32x96xf32, #tpu.memory_space<vmem>>, vector<32x96xf32>
    %c0_16 = arith.constant 0 : index
    %c0_17 = arith.constant 0 : index
    %14 = vector.load %arg9[%c0_16, %c0_17] : memref<32x96xf32, #tpu.memory_space<vmem>>, vector<32x96xf32>
    %c0_18 = arith.constant 0 : index
    %c0_19 = arith.constant 0 : index
    %15 = vector.load %arg8[%c0_18, %c0_19] : memref<1x96xf32, #tpu.memory_space<vmem>>, vector<1x96xf32>
    %16 = vector.shape_cast %15 : vector<1x96xf32> to vector<1x96xf32>
    %17 = vector.broadcast %16 : vector<1x96xf32> to vector<8x96xf32>
    %c0_20 = arith.constant 0 : index
    %c0_21 = arith.constant 0 : index
    %18 = vector.load %arg10[%c0_20, %c0_21] : memref<1x96xf32, #tpu.memory_space<vmem>>, vector<1x96xf32>
    %19 = vector.shape_cast %18 : vector<1x96xf32> to vector<1x96xf32>
    %20 = vector.broadcast %19 : vector<1x96xf32> to vector<8x96xf32>
    %cst_22 = arith.constant 0.000000e+00 : f32
    %21 = vector.broadcast %cst_22 : f32 to vector<8x32xf32>
    %c0_i32 = arith.constant 0 : i32
    %c7_i32 = arith.constant 7 : i32
    %22 = arith.subi %c7_i32, %c0_i32 : i32
    %c8_i32 = arith.constant 8 : i32
    %23 = arith.muli %c0_i32, %c8_i32 : i32
    %24 = tpu.assume_multiple %23, 8 : i32
    %c8_i32_23 = arith.constant 8 : i32
    %25 = arith.muli %22, %c8_i32_23 : i32
    %26 = tpu.assume_multiple %25, 8 : i32
    %cst_24 = arith.constant dense<0.000000e+00> : vector<8x96xf32>
    %27 = tpu.matmul %21, %13, %cst_24 {dimension_numbers = #tpu.dot_dimension_numbers<[1], [0], [0], [1], [0, 0, 1, 1], [], []>} : vector<8x32xf32>, vector<32x96xf32>, vector<8x96xf32> -> vector<8x96xf32>
    %28 = arith.addf %27, %17 : vector<8x96xf32>
    %cst_25 = arith.constant dense<0.000000e+00> : vector<8x96xf32>
    %29 = tpu.matmul %21, %14, %cst_25 {dimension_numbers = #tpu.dot_dimension_numbers<[1], [0], [0], [1], [0, 0, 1, 1], [], []>} : vector<8x32xf32>, vector<32x96xf32>, vector<8x96xf32> -> vector<8x96xf32>
    %30 = arith.addf %29, %20 : vector<8x96xf32>
    %31 = arith.index_cast %24 : i32 to index
    %c0_26 = arith.constant 0 : index
    %32 = vector.load %arg28[%31, %c0_26] : memref<64x96xf32, #tpu.memory_space<vmem>>, vector<8x96xf32>
    %33 = vector.extract_strided_slice %32 {offsets = [0, 0], sizes = [8, 32], strides = [1, 1]} : vector<8x96xf32> to vector<8x32xf32>
    %34 = vector.extract_strided_slice %28 {offsets = [0, 0], sizes = [8, 32], strides = [1, 1]} : vector<8x96xf32> to vector<8x32xf32>
    %35 = arith.addf %33, %34 : vector<8x32xf32>
    %36 = arith.negf %35 : vector<8x32xf32>
    %37 = math.exp %36 : vector<8x32xf32>
    %cst_27 = arith.constant 1.000000e+00 : f32
    %38 = vector.broadcast %cst_27 : f32 to vector<8x32xf32>
    %39 = arith.addf %38, %37 : vector<8x32xf32>
    %40 = arith.divf %38, %39 : vector<8x32xf32>
    %41 = vector.extract_strided_slice %32 {offsets = [0, 32], sizes = [8, 32], strides = [1, 1]} : vector<8x96xf32> to vector<8x32xf32>
    %42 = vector.extract_strided_slice %28 {offsets = [0, 32], sizes = [8, 32], strides = [1, 1]} : vector<8x96xf32> to vector<8x32xf32>
    %43 = arith.addf %41, %42 : vector<8x32xf32>
    %44 = arith.negf %43 : vector<8x32xf32>
    %45 = math.exp %44 : vector<8x32xf32>
    %cst_28 = arith.constant 1.000000e+00 : f32
    %46 = vector.broadcast %cst_28 : f32 to vector<8x32xf32>
    %47 = arith.addf %46, %45 : vector<8x32xf32>
    %48 = arith.divf %46, %47 : vector<8x32xf32>
    %49 = vector.extract_strided_slice %32 {offsets = [0, 64], sizes = [8, 32], strides = [1, 1]} : vector<8x96xf32> to vector<8x32xf32>
    %50 = vector.extract_strided_slice %28 {offsets = [0, 64], sizes = [8, 32], strides = [1, 1]} : vector<8x96xf32> to vector<8x32xf32>
    %51 = arith.mulf %40, %50 : vector<8x32xf32>
    %52 = arith.addf %49, %51 : vector<8x32xf32>
    %53 = math.tanh %52 : vector<8x32xf32>
    %cst_29 = arith.constant 1.000000e+00 : f32
    %54 = vector.broadcast %cst_29 : f32 to vector<8x32xf32>
    %55 = arith.subf %54, %48 : vector<8x32xf32>
    %56 = arith.mulf %55, %53 : vector<8x32xf32>
    %57 = arith.mulf %48, %21 : vector<8x32xf32>
    %58 = arith.addf %56, %57 : vector<8x32xf32>
    %59 = arith.index_cast %26 : i32 to index
    %c0_30 = arith.constant 0 : index
    %60 = vector.load %arg29[%59, %c0_30] : memref<64x96xf32, #tpu.memory_space<vmem>>, vector<8x96xf32>
    %61 = vector.extract_strided_slice %60 {offsets = [0, 0], sizes = [8, 32], strides = [1, 1]} : vector<8x96xf32> to vector<8x32xf32>
    %62 = vector.extract_strided_slice %30 {offsets = [0, 0], sizes = [8, 32], strides = [1, 1]} : vector<8x96xf32> to vector<8x32xf32>
    %63 = arith.addf %61, %62 : vector<8x32xf32>
    %64 = arith.negf %63 : vector<8x32xf32>
    %65 = math.exp %64 : vector<8x32xf32>
    %cst_31 = arith.constant 1.000000e+00 : f32
    %66 = vector.broadcast %cst_31 : f32 to vector<8x32xf32>
    %67 = arith.addf %66, %65 : vector<8x32xf32>
    %68 = arith.divf %66, %67 : vector<8x32xf32>
    %69 = vector.extract_strided_slice %60 {offsets = [0, 32], sizes = [8, 32], strides = [1, 1]} : vector<8x96xf32> to vector<8x32xf32>
    %70 = vector.extract_strided_slice %30 {offsets = [0, 32], sizes = [8, 32], strides = [1, 1]} : vector<8x96xf32> to vector<8x32xf32>
    %71 = arith.addf %69, %70 : vector<8x32xf32>
    %72 = arith.negf %71 : vector<8x32xf32>
    %73 = math.exp %72 : vector<8x32xf32>
    %cst_32 = arith.constant 1.000000e+00 : f32
    %74 = vector.broadcast %cst_32 : f32 to vector<8x32xf32>
    %75 = arith.addf %74, %73 : vector<8x32xf32>
    %76 = arith.divf %74, %75 : vector<8x32xf32>
    %77 = vector.extract_strided_slice %60 {offsets = [0, 64], sizes = [8, 32], strides = [1, 1]} : vector<8x96xf32> to vector<8x32xf32>
    %78 = vector.extract_strided_slice %30 {offsets = [0, 64], sizes = [8, 32], strides = [1, 1]} : vector<8x96xf32> to vector<8x32xf32>
    %79 = arith.mulf %68, %78 : vector<8x32xf32>
    %80 = arith.addf %77, %79 : vector<8x32xf32>
    %81 = math.tanh %80 : vector<8x32xf32>
    %cst_33 = arith.constant 1.000000e+00 : f32
    %82 = vector.broadcast %cst_33 : f32 to vector<8x32xf32>
    %83 = arith.subf %82, %76 : vector<8x32xf32>
    %84 = arith.mulf %83, %81 : vector<8x32xf32>
    %85 = arith.mulf %76, %21 : vector<8x32xf32>
    %86 = arith.addf %84, %85 : vector<8x32xf32>
    %87 = arith.index_cast %24 : i32 to index
    %c0_34 = arith.constant 0 : index
    %88 = vector.load %arg30[%87, %c0_34] : memref<64x32xf32, #tpu.memory_space<vmem>>, vector<8x32xf32>
    tpu.vector_store %arg30[%87, %c0_34], %58 {strides = array<i32>} : memref<64x32xf32, #tpu.memory_space<vmem>>, vector<8x32xf32>,
    %89 = arith.index_cast %26 : i32 to index
    %c0_35 = arith.constant 0 : index
    %90 = vector.load %arg31[%89, %c0_35] : memref<64x32xf32, #tpu.memory_space<vmem>>, vector<8x32xf32>
    tpu.vector_store %arg31[%89, %c0_35], %86 {strides = array<i32>} : memref<64x32xf32, #tpu.memory_space<vmem>>, vector<8x32xf32>,
    %c1_i32 = arith.constant 1 : i32
    %c7_i32_36 = arith.constant 7 : i32
    %91 = arith.subi %c7_i32_36, %c1_i32 : i32
    %c8_i32_37 = arith.constant 8 : i32
    %92 = arith.muli %c1_i32, %c8_i32_37 : i32
    %93 = tpu.assume_multiple %92, 8 : i32
    %c8_i32_38 = arith.constant 8 : i32
    %94 = arith.muli %91, %c8_i32_38 : i32
    %95 = tpu.assume_multiple %94, 8 : i32
    %cst_39 = arith.constant dense<0.000000e+00> : vector<8x96xf32>
    %96 = tpu.matmul %58, %13, %cst_39 {dimension_numbers = #tpu.dot_dimension_numbers<[1], [0], [0], [1], [0, 0, 1, 1], [], []>} : vector<8x32xf32>, vector<32x96xf32>, vector<8x96xf32> -> vector<8x96xf32>
    %97 = arith.addf %96, %17 : vector<8x96xf32>
    %cst_40 = arith.constant dense<0.000000e+00> : vector<8x96xf32>
    %98 = tpu.matmul %86, %14, %cst_40 {dimension_numbers = #tpu.dot_dimension_numbers<[1], [0], [0], [1], [0, 0, 1, 1], [], []>} : vector<8x32xf32>, vector<32x96xf32>, vector<8x96xf32> -> vector<8x96xf32>
    %99 = arith.addf %98, %20 : vector<8x96xf32>
    %100 = arith.index_cast %93 : i32 to index
    %c0_41 = arith.constant 0 : index
    %101 = vector.load %arg28[%100, %c0_41] : memref<64x96xf32, #tpu.memory_space<vmem>>, vector<8x96xf32>
    %102 = vector.extract_strided_slice %101 {offsets = [0, 0], sizes = [8, 32], strides = [1, 1]} : vector<8x96xf32> to vector<8x32xf32>
    %103 = vector.extract_strided_slice %97 {offsets = [0, 0], sizes = [8, 32], strides = [1, 1]} : vector<8x96xf32> to vector<8x32xf32>
    %104 = arith.addf %102, %103 : vector<8x32xf32>
    %105 = arith.negf %104 : vector<8x32xf32>
    %106 = math.exp %105 : vector<8x32xf32>
    %cst_42 = arith.constant 1.000000e+00 : f32
    %107 = vector.broadcast %cst_42 : f32 to vector<8x32xf32>
    %108 = arith.addf %107, %106 : vector<8x32xf32>
    %109 = arith.divf %107, %108 : vector<8x32xf32>
    %110 = vector.extract_strided_slice %101 {offsets = [0, 32], sizes = [8, 32], strides = [1, 1]} : vector<8x96xf32> to vector<8x32xf32>
    %111 = vector.extract_strided_slice %97 {offsets = [0, 32], sizes = [8, 32], strides = [1, 1]} : vector<8x96xf32> to vector<8x32xf32>
    %112 = arith.addf %110, %111 : vector<8x32xf32>
    %113 = arith.negf %112 : vector<8x32xf32>
    %114 = math.exp %113 : vector<8x32xf32>
    %cst_43 = arith.constant 1.000000e+00 : f32
    %115 = vector.broadcast %cst_43 : f32 to vector<8x32xf32>
    %116 = arith.addf %115, %114 : vector<8x32xf32>
    %117 = arith.divf %115, %116 : vector<8x32xf32>
    %118 = vector.extract_strided_slice %101 {offsets = [0, 64], sizes = [8, 32], strides = [1, 1]} : vector<8x96xf32> to vector<8x32xf32>
    %119 = vector.extract_strided_slice %97 {offsets = [0, 64], sizes = [8, 32], strides = [1, 1]} : vector<8x96xf32> to vector<8x32xf32>
    %120 = arith.mulf %109, %119 : vector<8x32xf32>
    %121 = arith.addf %118, %120 : vector<8x32xf32>
    %122 = math.tanh %121 : vector<8x32xf32>
    %cst_44 = arith.constant 1.000000e+00 : f32
    %123 = vector.broadcast %cst_44 : f32 to vector<8x32xf32>
    %124 = arith.subf %123, %117 : vector<8x32xf32>
    %125 = arith.mulf %124, %122 : vector<8x32xf32>
    %126 = arith.mulf %117, %58 : vector<8x32xf32>
    %127 = arith.addf %125, %126 : vector<8x32xf32>
    %128 = arith.index_cast %95 : i32 to index
    %c0_45 = arith.constant 0 : index
    %129 = vector.load %arg29[%128, %c0_45] : memref<64x96xf32, #tpu.memory_space<vmem>>, vector<8x96xf32>
    %130 = vector.extract_strided_slice %129 {offsets = [0, 0], sizes = [8, 32], strides = [1, 1]} : vector<8x96xf32> to vector<8x32xf32>
    %131 = vector.extract_strided_slice %99 {offsets = [0, 0], sizes = [8, 32], strides = [1, 1]} : vector<8x96xf32> to vector<8x32xf32>
    %132 = arith.addf %130, %131 : vector<8x32xf32>
    %133 = arith.negf %132 : vector<8x32xf32>
    %134 = math.exp %133 : vector<8x32xf32>
    %cst_46 = arith.constant 1.000000e+00 : f32
    %135 = vector.broadcast %cst_46 : f32 to vector<8x32xf32>
    %136 = arith.addf %135, %134 : vector<8x32xf32>
    %137 = arith.divf %135, %136 : vector<8x32xf32>
    %138 = vector.extract_strided_slice %129 {offsets = [0, 32], sizes = [8, 32], strides = [1, 1]} : vector<8x96xf32> to vector<8x32xf32>
    %139 = vector.extract_strided_slice %99 {offsets = [0, 32], sizes = [8, 32], strides = [1, 1]} : vector<8x96xf32> to vector<8x32xf32>
    %140 = arith.addf %138, %139 : vector<8x32xf32>
    %141 = arith.negf %140 : vector<8x32xf32>
    %142 = math.exp %141 : vector<8x32xf32>
    %cst_47 = arith.constant 1.000000e+00 : f32
    %143 = vector.broadcast %cst_47 : f32 to vector<8x32xf32>
    %144 = arith.addf %143, %142 : vector<8x32xf32>
    %145 = arith.divf %143, %144 : vector<8x32xf32>
    %146 = vector.extract_strided_slice %129 {offsets = [0, 64], sizes = [8, 32], strides = [1, 1]} : vector<8x96xf32> to vector<8x32xf32>
    %147 = vector.extract_strided_slice %99 {offsets = [0, 64], sizes = [8, 32], strides = [1, 1]} : vector<8x96xf32> to vector<8x32xf32>
    %148 = arith.mulf %137, %147 : vector<8x32xf32>
    %149 = arith.addf %146, %148 : vector<8x32xf32>
    %150 = math.tanh %149 : vector<8x32xf32>
    %cst_48 = arith.constant 1.000000e+00 : f32
    %151 = vector.broadcast %cst_48 : f32 to vector<8x32xf32>
    %152 = arith.subf %151, %145 : vector<8x32xf32>
    %153 = arith.mulf %152, %150 : vector<8x32xf32>
    %154 = arith.mulf %145, %86 : vector<8x32xf32>
    %155 = arith.addf %153, %154 : vector<8x32xf32>
    %156 = arith.index_cast %93 : i32 to index
    %c0_49 = arith.constant 0 : index
    %157 = vector.load %arg30[%156, %c0_49] : memref<64x32xf32, #tpu.memory_space<vmem>>, vector<8x32xf32>
    tpu.vector_store %arg30[%156, %c0_49], %127 {strides = array<i32>} : memref<64x32xf32, #tpu.memory_space<vmem>>, vector<8x32xf32>,
    %158 = arith.index_cast %95 : i32 to index
    %c0_50 = arith.constant 0 : index
    %159 = vector.load %arg31[%158, %c0_50] : memref<64x32xf32, #tpu.memory_space<vmem>>, vector<8x32xf32>
    tpu.vector_store %arg31[%158, %c0_50], %155 {strides = array<i32>} : memref<64x32xf32, #tpu.memory_space<vmem>>, vector<8x32xf32>,
    %c2_i32 = arith.constant 2 : i32
    %c7_i32_51 = arith.constant 7 : i32
    %160 = arith.subi %c7_i32_51, %c2_i32 : i32
    %c8_i32_52 = arith.constant 8 : i32
    %161 = arith.muli %c2_i32, %c8_i32_52 : i32
    %162 = tpu.assume_multiple %161, 8 : i32
    %c8_i32_53 = arith.constant 8 : i32
    %163 = arith.muli %160, %c8_i32_53 : i32
    %164 = tpu.assume_multiple %163, 8 : i32
    %cst_54 = arith.constant dense<0.000000e+00> : vector<8x96xf32>
    %165 = tpu.matmul %127, %13, %cst_54 {dimension_numbers = #tpu.dot_dimension_numbers<[1], [0], [0], [1], [0, 0, 1, 1], [], []>} : vector<8x32xf32>, vector<32x96xf32>, vector<8x96xf32> -> vector<8x96xf32>
    %166 = arith.addf %165, %17 : vector<8x96xf32>
    %cst_55 = arith.constant dense<0.000000e+00> : vector<8x96xf32>
    %167 = tpu.matmul %155, %14, %cst_55 {dimension_numbers = #tpu.dot_dimension_numbers<[1], [0], [0], [1], [0, 0, 1, 1], [], []>} : vector<8x32xf32>, vector<32x96xf32>, vector<8x96xf32> -> vector<8x96xf32>
    %168 = arith.addf %167, %20 : vector<8x96xf32>
    %169 = arith.index_cast %162 : i32 to index
    %c0_56 = arith.constant 0 : index
    %170 = vector.load %arg28[%169, %c0_56] : memref<64x96xf32, #tpu.memory_space<vmem>>, vector<8x96xf32>
    %171 = vector.extract_strided_slice %170 {offsets = [0, 0], sizes = [8, 32], strides = [1, 1]} : vector<8x96xf32> to vector<8x32xf32>
    %172 = vector.extract_strided_slice %166 {offsets = [0, 0], sizes = [8, 32], strides = [1, 1]} : vector<8x96xf32> to vector<8x32xf32>
    %173 = arith.addf %171, %172 : vector<8x32xf32>
    %174 = arith.negf %173 : vector<8x32xf32>
    %175 = math.exp %174 : vector<8x32xf32>
    %cst_57 = arith.constant 1.000000e+00 : f32
    %176 = vector.broadcast %cst_57 : f32 to vector<8x32xf32>
    %177 = arith.addf %176, %175 : vector<8x32xf32>
    %178 = arith.divf %176, %177 : vector<8x32xf32>
    %179 = vector.extract_strided_slice %170 {offsets = [0, 32], sizes = [8, 32], strides = [1, 1]} : vector<8x96xf32> to vector<8x32xf32>
    %180 = vector.extract_strided_slice %166 {offsets = [0, 32], sizes = [8, 32], strides = [1, 1]} : vector<8x96xf32> to vector<8x32xf32>
    %181 = arith.addf %179, %180 : vector<8x32xf32>
    %182 = arith.negf %181 : vector<8x32xf32>
    %183 = math.exp %182 : vector<8x32xf32>
    %cst_58 = arith.constant 1.000000e+00 : f32
    %184 = vector.broadcast %cst_58 : f32 to vector<8x32xf32>
    %185 = arith.addf %184, %183 : vector<8x32xf32>
    %186 = arith.divf %184, %185 : vector<8x32xf32>
    %187 = vector.extract_strided_slice %170 {offsets = [0, 64], sizes = [8, 32], strides = [1, 1]} : vector<8x96xf32> to vector<8x32xf32>
    %188 = vector.extract_strided_slice %166 {offsets = [0, 64], sizes = [8, 32], strides = [1, 1]} : vector<8x96xf32> to vector<8x32xf32>
    %189 = arith.mulf %178, %188 : vector<8x32xf32>
    %190 = arith.addf %187, %189 : vector<8x32xf32>
    %191 = math.tanh %190 : vector<8x32xf32>
    %cst_59 = arith.constant 1.000000e+00 : f32
    %192 = vector.broadcast %cst_59 : f32 to vector<8x32xf32>
    %193 = arith.subf %192, %186 : vector<8x32xf32>
    %194 = arith.mulf %193, %191 : vector<8x32xf32>
    %195 = arith.mulf %186, %127 : vector<8x32xf32>
    %196 = arith.addf %194, %195 : vector<8x32xf32>
    %197 = arith.index_cast %164 : i32 to index
    %c0_60 = arith.constant 0 : index
    %198 = vector.load %arg29[%197, %c0_60] : memref<64x96xf32, #tpu.memory_space<vmem>>, vector<8x96xf32>
    %199 = vector.extract_strided_slice %198 {offsets = [0, 0], sizes = [8, 32], strides = [1, 1]} : vector<8x96xf32> to vector<8x32xf32>
    %200 = vector.extract_strided_slice %168 {offsets = [0, 0], sizes = [8, 32], strides = [1, 1]} : vector<8x96xf32> to vector<8x32xf32>
    %201 = arith.addf %199, %200 : vector<8x32xf32>
    %202 = arith.negf %201 : vector<8x32xf32>
    %203 = math.exp %202 : vector<8x32xf32>
    %cst_61 = arith.constant 1.000000e+00 : f32
    %204 = vector.broadcast %cst_61 : f32 to vector<8x32xf32>
    %205 = arith.addf %204, %203 : vector<8x32xf32>
    %206 = arith.divf %204, %205 : vector<8x32xf32>
    %207 = vector.extract_strided_slice %198 {offsets = [0, 32], sizes = [8, 32], strides = [1, 1]} : vector<8x96xf32> to vector<8x32xf32>
    %208 = vector.extract_strided_slice %168 {offsets = [0, 32], sizes = [8, 32], strides = [1, 1]} : vector<8x96xf32> to vector<8x32xf32>
    %209 = arith.addf %207, %208 : vector<8x32xf32>
    %210 = arith.negf %209 : vector<8x32xf32>
    %211 = math.exp %210 : vector<8x32xf32>
    %cst_62 = arith.constant 1.000000e+00 : f32
    %212 = vector.broadcast %cst_62 : f32 to vector<8x32xf32>
    %213 = arith.addf %212, %211 : vector<8x32xf32>
    %214 = arith.divf %212, %213 : vector<8x32xf32>
    %215 = vector.extract_strided_slice %198 {offsets = [0, 64], sizes = [8, 32], strides = [1, 1]} : vector<8x96xf32> to vector<8x32xf32>
    %216 = vector.extract_strided_slice %168 {offsets = [0, 64], sizes = [8, 32], strides = [1, 1]} : vector<8x96xf32> to vector<8x32xf32>
    %217 = arith.mulf %206, %216 : vector<8x32xf32>
    %218 = arith.addf %215, %217 : vector<8x32xf32>
    %219 = math.tanh %218 : vector<8x32xf32>
    %cst_63 = arith.constant 1.000000e+00 : f32
    %220 = vector.broadcast %cst_63 : f32 to vector<8x32xf32>
    %221 = arith.subf %220, %214 : vector<8x32xf32>
    %222 = arith.mulf %221, %219 : vector<8x32xf32>
    %223 = arith.mulf %214, %155 : vector<8x32xf32>
    %224 = arith.addf %222, %223 : vector<8x32xf32>
    %225 = arith.index_cast %162 : i32 to index
    %c0_64 = arith.constant 0 : index
    %226 = vector.load %arg30[%225, %c0_64] : memref<64x32xf32, #tpu.memory_space<vmem>>, vector<8x32xf32>
    tpu.vector_store %arg30[%225, %c0_64], %196 {strides = array<i32>} : memref<64x32xf32, #tpu.memory_space<vmem>>, vector<8x32xf32>,
    %227 = arith.index_cast %164 : i32 to index
    %c0_65 = arith.constant 0 : index
    %228 = vector.load %arg31[%227, %c0_65] : memref<64x32xf32, #tpu.memory_space<vmem>>, vector<8x32xf32>
    tpu.vector_store %arg31[%227, %c0_65], %224 {strides = array<i32>} : memref<64x32xf32, #tpu.memory_space<vmem>>, vector<8x32xf32>,
    %c3_i32 = arith.constant 3 : i32
    %c7_i32_66 = arith.constant 7 : i32
    %229 = arith.subi %c7_i32_66, %c3_i32 : i32
    %c8_i32_67 = arith.constant 8 : i32
    %230 = arith.muli %c3_i32, %c8_i32_67 : i32
    %231 = tpu.assume_multiple %230, 8 : i32
    %c8_i32_68 = arith.constant 8 : i32
    %232 = arith.muli %229, %c8_i32_68 : i32
    %233 = tpu.assume_multiple %232, 8 : i32
    %cst_69 = arith.constant dense<0.000000e+00> : vector<8x96xf32>
    %234 = tpu.matmul %196, %13, %cst_69 {dimension_numbers = #tpu.dot_dimension_numbers<[1], [0], [0], [1], [0, 0, 1, 1], [], []>} : vector<8x32xf32>, vector<32x96xf32>, vector<8x96xf32> -> vector<8x96xf32>
    %235 = arith.addf %234, %17 : vector<8x96xf32>
    %cst_70 = arith.constant dense<0.000000e+00> : vector<8x96xf32>
    %236 = tpu.matmul %224, %14, %cst_70 {dimension_numbers = #tpu.dot_dimension_numbers<[1], [0], [0], [1], [0, 0, 1, 1], [], []>} : vector<8x32xf32>, vector<32x96xf32>, vector<8x96xf32> -> vector<8x96xf32>
    %237 = arith.addf %236, %20 : vector<8x96xf32>
    %238 = arith.index_cast %231 : i32 to index
    %c0_71 = arith.constant 0 : index
    %239 = vector.load %arg28[%238, %c0_71] : memref<64x96xf32, #tpu.memory_space<vmem>>, vector<8x96xf32>
    %240 = vector.extract_strided_slice %239 {offsets = [0, 0], sizes = [8, 32], strides = [1, 1]} : vector<8x96xf32> to vector<8x32xf32>
    %241 = vector.extract_strided_slice %235 {offsets = [0, 0], sizes = [8, 32], strides = [1, 1]} : vector<8x96xf32> to vector<8x32xf32>
    %242 = arith.addf %240, %241 : vector<8x32xf32>
    %243 = arith.negf %242 : vector<8x32xf32>
    %244 = math.exp %243 : vector<8x32xf32>
    %cst_72 = arith.constant 1.000000e+00 : f32
    %245 = vector.broadcast %cst_72 : f32 to vector<8x32xf32>
    %246 = arith.addf %245, %244 : vector<8x32xf32>
    %247 = arith.divf %245, %246 : vector<8x32xf32>
    %248 = vector.extract_strided_slice %239 {offsets = [0, 32], sizes = [8, 32], strides = [1, 1]} : vector<8x96xf32> to vector<8x32xf32>
    %249 = vector.extract_strided_slice %235 {offsets = [0, 32], sizes = [8, 32], strides = [1, 1]} : vector<8x96xf32> to vector<8x32xf32>
    %250 = arith.addf %248, %249 : vector<8x32xf32>
    %251 = arith.negf %250 : vector<8x32xf32>
    %252 = math.exp %251 : vector<8x32xf32>
    %cst_73 = arith.constant 1.000000e+00 : f32
    %253 = vector.broadcast %cst_73 : f32 to vector<8x32xf32>
    %254 = arith.addf %253, %252 : vector<8x32xf32>
    %255 = arith.divf %253, %254 : vector<8x32xf32>
    %256 = vector.extract_strided_slice %239 {offsets = [0, 64], sizes = [8, 32], strides = [1, 1]} : vector<8x96xf32> to vector<8x32xf32>
    %257 = vector.extract_strided_slice %235 {offsets = [0, 64], sizes = [8, 32], strides = [1, 1]} : vector<8x96xf32> to vector<8x32xf32>
    %258 = arith.mulf %247, %257 : vector<8x32xf32>
    %259 = arith.addf %256, %258 : vector<8x32xf32>
    %260 = math.tanh %259 : vector<8x32xf32>
    %cst_74 = arith.constant 1.000000e+00 : f32
    %261 = vector.broadcast %cst_74 : f32 to vector<8x32xf32>
    %262 = arith.subf %261, %255 : vector<8x32xf32>
    %263 = arith.mulf %262, %260 : vector<8x32xf32>
    %264 = arith.mulf %255, %196 : vector<8x32xf32>
    %265 = arith.addf %263, %264 : vector<8x32xf32>
    %266 = arith.index_cast %233 : i32 to index
    %c0_75 = arith.constant 0 : index
    %267 = vector.load %arg29[%266, %c0_75] : memref<64x96xf32, #tpu.memory_space<vmem>>, vector<8x96xf32>
    %268 = vector.extract_strided_slice %267 {offsets = [0, 0], sizes = [8, 32], strides = [1, 1]} : vector<8x96xf32> to vector<8x32xf32>
    %269 = vector.extract_strided_slice %237 {offsets = [0, 0], sizes = [8, 32], strides = [1, 1]} : vector<8x96xf32> to vector<8x32xf32>
    %270 = arith.addf %268, %269 : vector<8x32xf32>
    %271 = arith.negf %270 : vector<8x32xf32>
    %272 = math.exp %271 : vector<8x32xf32>
    %cst_76 = arith.constant 1.000000e+00 : f32
    %273 = vector.broadcast %cst_76 : f32 to vector<8x32xf32>
    %274 = arith.addf %273, %272 : vector<8x32xf32>
    %275 = arith.divf %273, %274 : vector<8x32xf32>
    %276 = vector.extract_strided_slice %267 {offsets = [0, 32], sizes = [8, 32], strides = [1, 1]} : vector<8x96xf32> to vector<8x32xf32>
    %277 = vector.extract_strided_slice %237 {offsets = [0, 32], sizes = [8, 32], strides = [1, 1]} : vector<8x96xf32> to vector<8x32xf32>
    %278 = arith.addf %276, %277 : vector<8x32xf32>
    %279 = arith.negf %278 : vector<8x32xf32>
    %280 = math.exp %279 : vector<8x32xf32>
    %cst_77 = arith.constant 1.000000e+00 : f32
    %281 = vector.broadcast %cst_77 : f32 to vector<8x32xf32>
    %282 = arith.addf %281, %280 : vector<8x32xf32>
    %283 = arith.divf %281, %282 : vector<8x32xf32>
    %284 = vector.extract_strided_slice %267 {offsets = [0, 64], sizes = [8, 32], strides = [1, 1]} : vector<8x96xf32> to vector<8x32xf32>
    %285 = vector.extract_strided_slice %237 {offsets = [0, 64], sizes = [8, 32], strides = [1, 1]} : vector<8x96xf32> to vector<8x32xf32>
    %286 = arith.mulf %275, %285 : vector<8x32xf32>
    %287 = arith.addf %284, %286 : vector<8x32xf32>
    %288 = math.tanh %287 : vector<8x32xf32>
    %cst_78 = arith.constant 1.000000e+00 : f32
    %289 = vector.broadcast %cst_78 : f32 to vector<8x32xf32>
    %290 = arith.subf %289, %283 : vector<8x32xf32>
    %291 = arith.mulf %290, %288 : vector<8x32xf32>
    %292 = arith.mulf %283, %224 : vector<8x32xf32>
    %293 = arith.addf %291, %292 : vector<8x32xf32>
    %294 = arith.index_cast %231 : i32 to index
    %c0_79 = arith.constant 0 : index
    %295 = vector.load %arg30[%294, %c0_79] : memref<64x32xf32, #tpu.memory_space<vmem>>, vector<8x32xf32>
    tpu.vector_store %arg30[%294, %c0_79], %265 {strides = array<i32>} : memref<64x32xf32, #tpu.memory_space<vmem>>, vector<8x32xf32>,
    %296 = arith.index_cast %233 : i32 to index
    %c0_80 = arith.constant 0 : index
    %297 = vector.load %arg31[%296, %c0_80] : memref<64x32xf32, #tpu.memory_space<vmem>>, vector<8x32xf32>
    tpu.vector_store %arg31[%296, %c0_80], %293 {strides = array<i32>} : memref<64x32xf32, #tpu.memory_space<vmem>>, vector<8x32xf32>,
    %c4_i32 = arith.constant 4 : i32
    %c7_i32_81 = arith.constant 7 : i32
    %298 = arith.subi %c7_i32_81, %c4_i32 : i32
    %c8_i32_82 = arith.constant 8 : i32
    %299 = arith.muli %c4_i32, %c8_i32_82 : i32
    %300 = tpu.assume_multiple %299, 8 : i32
    %c8_i32_83 = arith.constant 8 : i32
    %301 = arith.muli %298, %c8_i32_83 : i32
    %302 = tpu.assume_multiple %301, 8 : i32
    %cst_84 = arith.constant dense<0.000000e+00> : vector<8x96xf32>
    %303 = tpu.matmul %265, %13, %cst_84 {dimension_numbers = #tpu.dot_dimension_numbers<[1], [0], [0], [1], [0, 0, 1, 1], [], []>} : vector<8x32xf32>, vector<32x96xf32>, vector<8x96xf32> -> vector<8x96xf32>
    %304 = arith.addf %303, %17 : vector<8x96xf32>
    %cst_85 = arith.constant dense<0.000000e+00> : vector<8x96xf32>
    %305 = tpu.matmul %293, %14, %cst_85 {dimension_numbers = #tpu.dot_dimension_numbers<[1], [0], [0], [1], [0, 0, 1, 1], [], []>} : vector<8x32xf32>, vector<32x96xf32>, vector<8x96xf32> -> vector<8x96xf32>
    %306 = arith.addf %305, %20 : vector<8x96xf32>
    %307 = arith.index_cast %300 : i32 to index
    %c0_86 = arith.constant 0 : index
    %308 = vector.load %arg28[%307, %c0_86] : memref<64x96xf32, #tpu.memory_space<vmem>>, vector<8x96xf32>
    %309 = vector.extract_strided_slice %308 {offsets = [0, 0], sizes = [8, 32], strides = [1, 1]} : vector<8x96xf32> to vector<8x32xf32>
    %310 = vector.extract_strided_slice %304 {offsets = [0, 0], sizes = [8, 32], strides = [1, 1]} : vector<8x96xf32> to vector<8x32xf32>
    %311 = arith.addf %309, %310 : vector<8x32xf32>
    %312 = arith.negf %311 : vector<8x32xf32>
    %313 = math.exp %312 : vector<8x32xf32>
    %cst_87 = arith.constant 1.000000e+00 : f32
    %314 = vector.broadcast %cst_87 : f32 to vector<8x32xf32>
    %315 = arith.addf %314, %313 : vector<8x32xf32>
    %316 = arith.divf %314, %315 : vector<8x32xf32>
    %317 = vector.extract_strided_slice %308 {offsets = [0, 32], sizes = [8, 32], strides = [1, 1]} : vector<8x96xf32> to vector<8x32xf32>
    %318 = vector.extract_strided_slice %304 {offsets = [0, 32], sizes = [8, 32], strides = [1, 1]} : vector<8x96xf32> to vector<8x32xf32>
    %319 = arith.addf %317, %318 : vector<8x32xf32>
    %320 = arith.negf %319 : vector<8x32xf32>
    %321 = math.exp %320 : vector<8x32xf32>
    %cst_88 = arith.constant 1.000000e+00 : f32
    %322 = vector.broadcast %cst_88 : f32 to vector<8x32xf32>
    %323 = arith.addf %322, %321 : vector<8x32xf32>
    %324 = arith.divf %322, %323 : vector<8x32xf32>
    %325 = vector.extract_strided_slice %308 {offsets = [0, 64], sizes = [8, 32], strides = [1, 1]} : vector<8x96xf32> to vector<8x32xf32>
    %326 = vector.extract_strided_slice %304 {offsets = [0, 64], sizes = [8, 32], strides = [1, 1]} : vector<8x96xf32> to vector<8x32xf32>
    %327 = arith.mulf %316, %326 : vector<8x32xf32>
    %328 = arith.addf %325, %327 : vector<8x32xf32>
    %329 = math.tanh %328 : vector<8x32xf32>
    %cst_89 = arith.constant 1.000000e+00 : f32
    %330 = vector.broadcast %cst_89 : f32 to vector<8x32xf32>
    %331 = arith.subf %330, %324 : vector<8x32xf32>
    %332 = arith.mulf %331, %329 : vector<8x32xf32>
    %333 = arith.mulf %324, %265 : vector<8x32xf32>
    %334 = arith.addf %332, %333 : vector<8x32xf32>
    %335 = arith.index_cast %302 : i32 to index
    %c0_90 = arith.constant 0 : index
    %336 = vector.load %arg29[%335, %c0_90] : memref<64x96xf32, #tpu.memory_space<vmem>>, vector<8x96xf32>
    %337 = vector.extract_strided_slice %336 {offsets = [0, 0], sizes = [8, 32], strides = [1, 1]} : vector<8x96xf32> to vector<8x32xf32>
    %338 = vector.extract_strided_slice %306 {offsets = [0, 0], sizes = [8, 32], strides = [1, 1]} : vector<8x96xf32> to vector<8x32xf32>
    %339 = arith.addf %337, %338 : vector<8x32xf32>
    %340 = arith.negf %339 : vector<8x32xf32>
    %341 = math.exp %340 : vector<8x32xf32>
    %cst_91 = arith.constant 1.000000e+00 : f32
    %342 = vector.broadcast %cst_91 : f32 to vector<8x32xf32>
    %343 = arith.addf %342, %341 : vector<8x32xf32>
    %344 = arith.divf %342, %343 : vector<8x32xf32>
    %345 = vector.extract_strided_slice %336 {offsets = [0, 32], sizes = [8, 32], strides = [1, 1]} : vector<8x96xf32> to vector<8x32xf32>
    %346 = vector.extract_strided_slice %306 {offsets = [0, 32], sizes = [8, 32], strides = [1, 1]} : vector<8x96xf32> to vector<8x32xf32>
    %347 = arith.addf %345, %346 : vector<8x32xf32>
    %348 = arith.negf %347 : vector<8x32xf32>
    %349 = math.exp %348 : vector<8x32xf32>
    %cst_92 = arith.constant 1.000000e+00 : f32
    %350 = vector.broadcast %cst_92 : f32 to vector<8x32xf32>
    %351 = arith.addf %350, %349 : vector<8x32xf32>
    %352 = arith.divf %350, %351 : vector<8x32xf32>
    %353 = vector.extract_strided_slice %336 {offsets = [0, 64], sizes = [8, 32], strides = [1, 1]} : vector<8x96xf32> to vector<8x32xf32>
    %354 = vector.extract_strided_slice %306 {offsets = [0, 64], sizes = [8, 32], strides = [1, 1]} : vector<8x96xf32> to vector<8x32xf32>
    %355 = arith.mulf %344, %354 : vector<8x32xf32>
    %356 = arith.addf %353, %355 : vector<8x32xf32>
    %357 = math.tanh %356 : vector<8x32xf32>
    %cst_93 = arith.constant 1.000000e+00 : f32
    %358 = vector.broadcast %cst_93 : f32 to vector<8x32xf32>
    %359 = arith.subf %358, %352 : vector<8x32xf32>
    %360 = arith.mulf %359, %357 : vector<8x32xf32>
    %361 = arith.mulf %352, %293 : vector<8x32xf32>
    %362 = arith.addf %360, %361 : vector<8x32xf32>
    %363 = arith.index_cast %300 : i32 to index
    %c0_94 = arith.constant 0 : index
    %364 = vector.load %arg30[%363, %c0_94] : memref<64x32xf32, #tpu.memory_space<vmem>>, vector<8x32xf32>
    tpu.vector_store %arg30[%363, %c0_94], %334 {strides = array<i32>} : memref<64x32xf32, #tpu.memory_space<vmem>>, vector<8x32xf32>,
    %365 = arith.index_cast %302 : i32 to index
    %c0_95 = arith.constant 0 : index
    %366 = vector.load %arg31[%365, %c0_95] : memref<64x32xf32, #tpu.memory_space<vmem>>, vector<8x32xf32>
    tpu.vector_store %arg31[%365, %c0_95], %362 {strides = array<i32>} : memref<64x32xf32, #tpu.memory_space<vmem>>, vector<8x32xf32>,
    %c5_i32 = arith.constant 5 : i32
    %c7_i32_96 = arith.constant 7 : i32
    %367 = arith.subi %c7_i32_96, %c5_i32 : i32
    %c8_i32_97 = arith.constant 8 : i32
    %368 = arith.muli %c5_i32, %c8_i32_97 : i32
    %369 = tpu.assume_multiple %368, 8 : i32
    %c8_i32_98 = arith.constant 8 : i32
    %370 = arith.muli %367, %c8_i32_98 : i32
    %371 = tpu.assume_multiple %370, 8 : i32
    %cst_99 = arith.constant dense<0.000000e+00> : vector<8x96xf32>
    %372 = tpu.matmul %334, %13, %cst_99 {dimension_numbers = #tpu.dot_dimension_numbers<[1], [0], [0], [1], [0, 0, 1, 1], [], []>} : vector<8x32xf32>, vector<32x96xf32>, vector<8x96xf32> -> vector<8x96xf32>
    %373 = arith.addf %372, %17 : vector<8x96xf32>
    %cst_100 = arith.constant dense<0.000000e+00> : vector<8x96xf32>
    %374 = tpu.matmul %362, %14, %cst_100 {dimension_numbers = #tpu.dot_dimension_numbers<[1], [0], [0], [1], [0, 0, 1, 1], [], []>} : vector<8x32xf32>, vector<32x96xf32>, vector<8x96xf32> -> vector<8x96xf32>
    %375 = arith.addf %374, %20 : vector<8x96xf32>
    %376 = arith.index_cast %369 : i32 to index
    %c0_101 = arith.constant 0 : index
    %377 = vector.load %arg28[%376, %c0_101] : memref<64x96xf32, #tpu.memory_space<vmem>>, vector<8x96xf32>
    %378 = vector.extract_strided_slice %377 {offsets = [0, 0], sizes = [8, 32], strides = [1, 1]} : vector<8x96xf32> to vector<8x32xf32>
    %379 = vector.extract_strided_slice %373 {offsets = [0, 0], sizes = [8, 32], strides = [1, 1]} : vector<8x96xf32> to vector<8x32xf32>
    %380 = arith.addf %378, %379 : vector<8x32xf32>
    %381 = arith.negf %380 : vector<8x32xf32>
    %382 = math.exp %381 : vector<8x32xf32>
    %cst_102 = arith.constant 1.000000e+00 : f32
    %383 = vector.broadcast %cst_102 : f32 to vector<8x32xf32>
    %384 = arith.addf %383, %382 : vector<8x32xf32>
    %385 = arith.divf %383, %384 : vector<8x32xf32>
    %386 = vector.extract_strided_slice %377 {offsets = [0, 32], sizes = [8, 32], strides = [1, 1]} : vector<8x96xf32> to vector<8x32xf32>
    %387 = vector.extract_strided_slice %373 {offsets = [0, 32], sizes = [8, 32], strides = [1, 1]} : vector<8x96xf32> to vector<8x32xf32>
    %388 = arith.addf %386, %387 : vector<8x32xf32>
    %389 = arith.negf %388 : vector<8x32xf32>
    %390 = math.exp %389 : vector<8x32xf32>
    %cst_103 = arith.constant 1.000000e+00 : f32
    %391 = vector.broadcast %cst_103 : f32 to vector<8x32xf32>
    %392 = arith.addf %391, %390 : vector<8x32xf32>
    %393 = arith.divf %391, %392 : vector<8x32xf32>
    %394 = vector.extract_strided_slice %377 {offsets = [0, 64], sizes = [8, 32], strides = [1, 1]} : vector<8x96xf32> to vector<8x32xf32>
    %395 = vector.extract_strided_slice %373 {offsets = [0, 64], sizes = [8, 32], strides = [1, 1]} : vector<8x96xf32> to vector<8x32xf32>
    %396 = arith.mulf %385, %395 : vector<8x32xf32>
    %397 = arith.addf %394, %396 : vector<8x32xf32>
    %398 = math.tanh %397 : vector<8x32xf32>
    %cst_104 = arith.constant 1.000000e+00 : f32
    %399 = vector.broadcast %cst_104 : f32 to vector<8x32xf32>
    %400 = arith.subf %399, %393 : vector<8x32xf32>
    %401 = arith.mulf %400, %398 : vector<8x32xf32>
    %402 = arith.mulf %393, %334 : vector<8x32xf32>
    %403 = arith.addf %401, %402 : vector<8x32xf32>
    %404 = arith.index_cast %371 : i32 to index
    %c0_105 = arith.constant 0 : index
    %405 = vector.load %arg29[%404, %c0_105] : memref<64x96xf32, #tpu.memory_space<vmem>>, vector<8x96xf32>
    %406 = vector.extract_strided_slice %405 {offsets = [0, 0], sizes = [8, 32], strides = [1, 1]} : vector<8x96xf32> to vector<8x32xf32>
    %407 = vector.extract_strided_slice %375 {offsets = [0, 0], sizes = [8, 32], strides = [1, 1]} : vector<8x96xf32> to vector<8x32xf32>
    %408 = arith.addf %406, %407 : vector<8x32xf32>
    %409 = arith.negf %408 : vector<8x32xf32>
    %410 = math.exp %409 : vector<8x32xf32>
    %cst_106 = arith.constant 1.000000e+00 : f32
    %411 = vector.broadcast %cst_106 : f32 to vector<8x32xf32>
    %412 = arith.addf %411, %410 : vector<8x32xf32>
    %413 = arith.divf %411, %412 : vector<8x32xf32>
    %414 = vector.extract_strided_slice %405 {offsets = [0, 32], sizes = [8, 32], strides = [1, 1]} : vector<8x96xf32> to vector<8x32xf32>
    %415 = vector.extract_strided_slice %375 {offsets = [0, 32], sizes = [8, 32], strides = [1, 1]} : vector<8x96xf32> to vector<8x32xf32>
    %416 = arith.addf %414, %415 : vector<8x32xf32>
    %417 = arith.negf %416 : vector<8x32xf32>
    %418 = math.exp %417 : vector<8x32xf32>
    %cst_107 = arith.constant 1.000000e+00 : f32
    %419 = vector.broadcast %cst_107 : f32 to vector<8x32xf32>
    %420 = arith.addf %419, %418 : vector<8x32xf32>
    %421 = arith.divf %419, %420 : vector<8x32xf32>
    %422 = vector.extract_strided_slice %405 {offsets = [0, 64], sizes = [8, 32], strides = [1, 1]} : vector<8x96xf32> to vector<8x32xf32>
    %423 = vector.extract_strided_slice %375 {offsets = [0, 64], sizes = [8, 32], strides = [1, 1]} : vector<8x96xf32> to vector<8x32xf32>
    %424 = arith.mulf %413, %423 : vector<8x32xf32>
    %425 = arith.addf %422, %424 : vector<8x32xf32>
    %426 = math.tanh %425 : vector<8x32xf32>
    %cst_108 = arith.constant 1.000000e+00 : f32
    %427 = vector.broadcast %cst_108 : f32 to vector<8x32xf32>
    %428 = arith.subf %427, %421 : vector<8x32xf32>
    %429 = arith.mulf %428, %426 : vector<8x32xf32>
    %430 = arith.mulf %421, %362 : vector<8x32xf32>
    %431 = arith.addf %429, %430 : vector<8x32xf32>
    %432 = arith.index_cast %369 : i32 to index
    %c0_109 = arith.constant 0 : index
    %433 = vector.load %arg30[%432, %c0_109] : memref<64x32xf32, #tpu.memory_space<vmem>>, vector<8x32xf32>
    tpu.vector_store %arg30[%432, %c0_109], %403 {strides = array<i32>} : memref<64x32xf32, #tpu.memory_space<vmem>>, vector<8x32xf32>,
    %434 = arith.index_cast %371 : i32 to index
    %c0_110 = arith.constant 0 : index
    %435 = vector.load %arg31[%434, %c0_110] : memref<64x32xf32, #tpu.memory_space<vmem>>, vector<8x32xf32>
    tpu.vector_store %arg31[%434, %c0_110], %431 {strides = array<i32>} : memref<64x32xf32, #tpu.memory_space<vmem>>, vector<8x32xf32>,
    %c6_i32 = arith.constant 6 : i32
    %c7_i32_111 = arith.constant 7 : i32
    %436 = arith.subi %c7_i32_111, %c6_i32 : i32
    %c8_i32_112 = arith.constant 8 : i32
    %437 = arith.muli %c6_i32, %c8_i32_112 : i32
    %438 = tpu.assume_multiple %437, 8 : i32
    %c8_i32_113 = arith.constant 8 : i32
    %439 = arith.muli %436, %c8_i32_113 : i32
    %440 = tpu.assume_multiple %439, 8 : i32
    %cst_114 = arith.constant dense<0.000000e+00> : vector<8x96xf32>
    %441 = tpu.matmul %403, %13, %cst_114 {dimension_numbers = #tpu.dot_dimension_numbers<[1], [0], [0], [1], [0, 0, 1, 1], [], []>} : vector<8x32xf32>, vector<32x96xf32>, vector<8x96xf32> -> vector<8x96xf32>
    %442 = arith.addf %441, %17 : vector<8x96xf32>
    %cst_115 = arith.constant dense<0.000000e+00> : vector<8x96xf32>
    %443 = tpu.matmul %431, %14, %cst_115 {dimension_numbers = #tpu.dot_dimension_numbers<[1], [0], [0], [1], [0, 0, 1, 1], [], []>} : vector<8x32xf32>, vector<32x96xf32>, vector<8x96xf32> -> vector<8x96xf32>
    %444 = arith.addf %443, %20 : vector<8x96xf32>
    %445 = arith.index_cast %438 : i32 to index
    %c0_116 = arith.constant 0 : index
    %446 = vector.load %arg28[%445, %c0_116] : memref<64x96xf32, #tpu.memory_space<vmem>>, vector<8x96xf32>
    %447 = vector.extract_strided_slice %446 {offsets = [0, 0], sizes = [8, 32], strides = [1, 1]} : vector<8x96xf32> to vector<8x32xf32>
    %448 = vector.extract_strided_slice %442 {offsets = [0, 0], sizes = [8, 32], strides = [1, 1]} : vector<8x96xf32> to vector<8x32xf32>
    %449 = arith.addf %447, %448 : vector<8x32xf32>
    %450 = arith.negf %449 : vector<8x32xf32>
    %451 = math.exp %450 : vector<8x32xf32>
    %cst_117 = arith.constant 1.000000e+00 : f32
    %452 = vector.broadcast %cst_117 : f32 to vector<8x32xf32>
    %453 = arith.addf %452, %451 : vector<8x32xf32>
    %454 = arith.divf %452, %453 : vector<8x32xf32>
    %455 = vector.extract_strided_slice %446 {offsets = [0, 32], sizes = [8, 32], strides = [1, 1]} : vector<8x96xf32> to vector<8x32xf32>
    %456 = vector.extract_strided_slice %442 {offsets = [0, 32], sizes = [8, 32], strides = [1, 1]} : vector<8x96xf32> to vector<8x32xf32>
    %457 = arith.addf %455, %456 : vector<8x32xf32>
    %458 = arith.negf %457 : vector<8x32xf32>
    %459 = math.exp %458 : vector<8x32xf32>
    %cst_118 = arith.constant 1.000000e+00 : f32
    %460 = vector.broadcast %cst_118 : f32 to vector<8x32xf32>
    %461 = arith.addf %460, %459 : vector<8x32xf32>
    %462 = arith.divf %460, %461 : vector<8x32xf32>
    %463 = vector.extract_strided_slice %446 {offsets = [0, 64], sizes = [8, 32], strides = [1, 1]} : vector<8x96xf32> to vector<8x32xf32>
    %464 = vector.extract_strided_slice %442 {offsets = [0, 64], sizes = [8, 32], strides = [1, 1]} : vector<8x96xf32> to vector<8x32xf32>
    %465 = arith.mulf %454, %464 : vector<8x32xf32>
    %466 = arith.addf %463, %465 : vector<8x32xf32>
    %467 = math.tanh %466 : vector<8x32xf32>
    %cst_119 = arith.constant 1.000000e+00 : f32
    %468 = vector.broadcast %cst_119 : f32 to vector<8x32xf32>
    %469 = arith.subf %468, %462 : vector<8x32xf32>
    %470 = arith.mulf %469, %467 : vector<8x32xf32>
    %471 = arith.mulf %462, %403 : vector<8x32xf32>
    %472 = arith.addf %470, %471 : vector<8x32xf32>
    %473 = arith.index_cast %440 : i32 to index
    %c0_120 = arith.constant 0 : index
    %474 = vector.load %arg29[%473, %c0_120] : memref<64x96xf32, #tpu.memory_space<vmem>>, vector<8x96xf32>
    %475 = vector.extract_strided_slice %474 {offsets = [0, 0], sizes = [8, 32], strides = [1, 1]} : vector<8x96xf32> to vector<8x32xf32>
    %476 = vector.extract_strided_slice %444 {offsets = [0, 0], sizes = [8, 32], strides = [1, 1]} : vector<8x96xf32> to vector<8x32xf32>
    %477 = arith.addf %475, %476 : vector<8x32xf32>
    %478 = arith.negf %477 : vector<8x32xf32>
    %479 = math.exp %478 : vector<8x32xf32>
    %cst_121 = arith.constant 1.000000e+00 : f32
    %480 = vector.broadcast %cst_121 : f32 to vector<8x32xf32>
    %481 = arith.addf %480, %479 : vector<8x32xf32>
    %482 = arith.divf %480, %481 : vector<8x32xf32>
    %483 = vector.extract_strided_slice %474 {offsets = [0, 32], sizes = [8, 32], strides = [1, 1]} : vector<8x96xf32> to vector<8x32xf32>
    %484 = vector.extract_strided_slice %444 {offsets = [0, 32], sizes = [8, 32], strides = [1, 1]} : vector<8x96xf32> to vector<8x32xf32>
    %485 = arith.addf %483, %484 : vector<8x32xf32>
    %486 = arith.negf %485 : vector<8x32xf32>
    %487 = math.exp %486 : vector<8x32xf32>
    %cst_122 = arith.constant 1.000000e+00 : f32
    %488 = vector.broadcast %cst_122 : f32 to vector<8x32xf32>
    %489 = arith.addf %488, %487 : vector<8x32xf32>
    %490 = arith.divf %488, %489 : vector<8x32xf32>
    %491 = vector.extract_strided_slice %474 {offsets = [0, 64], sizes = [8, 32], strides = [1, 1]} : vector<8x96xf32> to vector<8x32xf32>
    %492 = vector.extract_strided_slice %444 {offsets = [0, 64], sizes = [8, 32], strides = [1, 1]} : vector<8x96xf32> to vector<8x32xf32>
    %493 = arith.mulf %482, %492 : vector<8x32xf32>
    %494 = arith.addf %491, %493 : vector<8x32xf32>
    %495 = math.tanh %494 : vector<8x32xf32>
    %cst_123 = arith.constant 1.000000e+00 : f32
    %496 = vector.broadcast %cst_123 : f32 to vector<8x32xf32>
    %497 = arith.subf %496, %490 : vector<8x32xf32>
    %498 = arith.mulf %497, %495 : vector<8x32xf32>
    %499 = arith.mulf %490, %431 : vector<8x32xf32>
    %500 = arith.addf %498, %499 : vector<8x32xf32>
    %501 = arith.index_cast %438 : i32 to index
    %c0_124 = arith.constant 0 : index
    %502 = vector.load %arg30[%501, %c0_124] : memref<64x32xf32, #tpu.memory_space<vmem>>, vector<8x32xf32>
    tpu.vector_store %arg30[%501, %c0_124], %472 {strides = array<i32>} : memref<64x32xf32, #tpu.memory_space<vmem>>, vector<8x32xf32>,
    %503 = arith.index_cast %440 : i32 to index
    %c0_125 = arith.constant 0 : index
    %504 = vector.load %arg31[%503, %c0_125] : memref<64x32xf32, #tpu.memory_space<vmem>>, vector<8x32xf32>
    tpu.vector_store %arg31[%503, %c0_125], %500 {strides = array<i32>} : memref<64x32xf32, #tpu.memory_space<vmem>>, vector<8x32xf32>,
    %c7_i32_126 = arith.constant 7 : i32
    %c7_i32_127 = arith.constant 7 : i32
    %505 = arith.subi %c7_i32_127, %c7_i32_126 : i32
    %c8_i32_128 = arith.constant 8 : i32
    %506 = arith.muli %c7_i32_126, %c8_i32_128 : i32
    %507 = tpu.assume_multiple %506, 8 : i32
    %c8_i32_129 = arith.constant 8 : i32
    %508 = arith.muli %505, %c8_i32_129 : i32
    %509 = tpu.assume_multiple %508, 8 : i32
    %cst_130 = arith.constant dense<0.000000e+00> : vector<8x96xf32>
    %510 = tpu.matmul %472, %13, %cst_130 {dimension_numbers = #tpu.dot_dimension_numbers<[1], [0], [0], [1], [0, 0, 1, 1], [], []>} : vector<8x32xf32>, vector<32x96xf32>, vector<8x96xf32> -> vector<8x96xf32>
    %511 = arith.addf %510, %17 : vector<8x96xf32>
    %cst_131 = arith.constant dense<0.000000e+00> : vector<8x96xf32>
    %512 = tpu.matmul %500, %14, %cst_131 {dimension_numbers = #tpu.dot_dimension_numbers<[1], [0], [0], [1], [0, 0, 1, 1], [], []>} : vector<8x32xf32>, vector<32x96xf32>, vector<8x96xf32> -> vector<8x96xf32>
    %513 = arith.addf %512, %20 : vector<8x96xf32>
    %514 = arith.index_cast %507 : i32 to index
    %c0_132 = arith.constant 0 : index
    %515 = vector.load %arg28[%514, %c0_132] : memref<64x96xf32, #tpu.memory_space<vmem>>, vector<8x96xf32>
    %516 = vector.extract_strided_slice %515 {offsets = [0, 0], sizes = [8, 32], strides = [1, 1]} : vector<8x96xf32> to vector<8x32xf32>
    %517 = vector.extract_strided_slice %511 {offsets = [0, 0], sizes = [8, 32], strides = [1, 1]} : vector<8x96xf32> to vector<8x32xf32>
    %518 = arith.addf %516, %517 : vector<8x32xf32>
    %519 = arith.negf %518 : vector<8x32xf32>
    %520 = math.exp %519 : vector<8x32xf32>
    %cst_133 = arith.constant 1.000000e+00 : f32
    %521 = vector.broadcast %cst_133 : f32 to vector<8x32xf32>
    %522 = arith.addf %521, %520 : vector<8x32xf32>
    %523 = arith.divf %521, %522 : vector<8x32xf32>
    %524 = vector.extract_strided_slice %515 {offsets = [0, 32], sizes = [8, 32], strides = [1, 1]} : vector<8x96xf32> to vector<8x32xf32>
    %525 = vector.extract_strided_slice %511 {offsets = [0, 32], sizes = [8, 32], strides = [1, 1]} : vector<8x96xf32> to vector<8x32xf32>
    %526 = arith.addf %524, %525 : vector<8x32xf32>
    %527 = arith.negf %526 : vector<8x32xf32>
    %528 = math.exp %527 : vector<8x32xf32>
    %cst_134 = arith.constant 1.000000e+00 : f32
    %529 = vector.broadcast %cst_134 : f32 to vector<8x32xf32>
    %530 = arith.addf %529, %528 : vector<8x32xf32>
    %531 = arith.divf %529, %530 : vector<8x32xf32>
    %532 = vector.extract_strided_slice %515 {offsets = [0, 64], sizes = [8, 32], strides = [1, 1]} : vector<8x96xf32> to vector<8x32xf32>
    %533 = vector.extract_strided_slice %511 {offsets = [0, 64], sizes = [8, 32], strides = [1, 1]} : vector<8x96xf32> to vector<8x32xf32>
    %534 = arith.mulf %523, %533 : vector<8x32xf32>
    %535 = arith.addf %532, %534 : vector<8x32xf32>
    %536 = math.tanh %535 : vector<8x32xf32>
    %cst_135 = arith.constant 1.000000e+00 : f32
    %537 = vector.broadcast %cst_135 : f32 to vector<8x32xf32>
    %538 = arith.subf %537, %531 : vector<8x32xf32>
    %539 = arith.mulf %538, %536 : vector<8x32xf32>
    %540 = arith.mulf %531, %472 : vector<8x32xf32>
    %541 = arith.addf %539, %540 : vector<8x32xf32>
    %542 = arith.index_cast %509 : i32 to index
    %c0_136 = arith.constant 0 : index
    %543 = vector.load %arg29[%542, %c0_136] : memref<64x96xf32, #tpu.memory_space<vmem>>, vector<8x96xf32>
    %544 = vector.extract_strided_slice %543 {offsets = [0, 0], sizes = [8, 32], strides = [1, 1]} : vector<8x96xf32> to vector<8x32xf32>
    %545 = vector.extract_strided_slice %513 {offsets = [0, 0], sizes = [8, 32], strides = [1, 1]} : vector<8x96xf32> to vector<8x32xf32>
    %546 = arith.addf %544, %545 : vector<8x32xf32>
    %547 = arith.negf %546 : vector<8x32xf32>
    %548 = math.exp %547 : vector<8x32xf32>
    %cst_137 = arith.constant 1.000000e+00 : f32
    %549 = vector.broadcast %cst_137 : f32 to vector<8x32xf32>
    %550 = arith.addf %549, %548 : vector<8x32xf32>
    %551 = arith.divf %549, %550 : vector<8x32xf32>
    %552 = vector.extract_strided_slice %543 {offsets = [0, 32], sizes = [8, 32], strides = [1, 1]} : vector<8x96xf32> to vector<8x32xf32>
    %553 = vector.extract_strided_slice %513 {offsets = [0, 32], sizes = [8, 32], strides = [1, 1]} : vector<8x96xf32> to vector<8x32xf32>
    %554 = arith.addf %552, %553 : vector<8x32xf32>
    %555 = arith.negf %554 : vector<8x32xf32>
    %556 = math.exp %555 : vector<8x32xf32>
    %cst_138 = arith.constant 1.000000e+00 : f32
    %557 = vector.broadcast %cst_138 : f32 to vector<8x32xf32>
    %558 = arith.addf %557, %556 : vector<8x32xf32>
    %559 = arith.divf %557, %558 : vector<8x32xf32>
    %560 = vector.extract_strided_slice %543 {offsets = [0, 64], sizes = [8, 32], strides = [1, 1]} : vector<8x96xf32> to vector<8x32xf32>
    %561 = vector.extract_strided_slice %513 {offsets = [0, 64], sizes = [8, 32], strides = [1, 1]} : vector<8x96xf32> to vector<8x32xf32>
    %562 = arith.mulf %551, %561 : vector<8x32xf32>
    %563 = arith.addf %560, %562 : vector<8x32xf32>
    %564 = math.tanh %563 : vector<8x32xf32>
    %cst_139 = arith.constant 1.000000e+00 : f32
    %565 = vector.broadcast %cst_139 : f32 to vector<8x32xf32>
    %566 = arith.subf %565, %559 : vector<8x32xf32>
    %567 = arith.mulf %566, %564 : vector<8x32xf32>
    %568 = arith.mulf %559, %500 : vector<8x32xf32>
    %569 = arith.addf %567, %568 : vector<8x32xf32>
    %570 = arith.index_cast %507 : i32 to index
    %c0_140 = arith.constant 0 : index
    %571 = vector.load %arg30[%570, %c0_140] : memref<64x32xf32, #tpu.memory_space<vmem>>, vector<8x32xf32>
    tpu.vector_store %arg30[%570, %c0_140], %541 {strides = array<i32>} : memref<64x32xf32, #tpu.memory_space<vmem>>, vector<8x32xf32>,
    %572 = arith.index_cast %509 : i32 to index
    %c0_141 = arith.constant 0 : index
    %573 = vector.load %arg31[%572, %c0_141] : memref<64x32xf32, #tpu.memory_space<vmem>>, vector<8x32xf32>
    tpu.vector_store %arg31[%572, %c0_141], %569 {strides = array<i32>} : memref<64x32xf32, #tpu.memory_space<vmem>>, vector<8x32xf32>,
    %c8_i32_142 = arith.constant 8 : i32
    %c0_143 = arith.constant 0 : index
    %c0_144 = arith.constant 0 : index
    %574 = vector.load %arg11[%c0_143, %c0_144] : memref<32x32xf32, #tpu.memory_space<vmem>>, vector<32x32xf32>
    %cst_145 = arith.constant dense<0.000000e+00> : vector<8x32xf32>
    %575 = tpu.matmul %541, %574, %cst_145 {dimension_numbers = #tpu.dot_dimension_numbers<[1], [0], [0], [1], [0, 0, 1, 1], [], []>} : vector<8x32xf32>, vector<32x32xf32>, vector<8x32xf32> -> vector<8x32xf32>
    %c0_146 = arith.constant 0 : index
    %c0_147 = arith.constant 0 : index
    %576 = vector.load %arg12[%c0_146, %c0_147] : memref<32x32xf32, #tpu.memory_space<vmem>>, vector<32x32xf32>
    %cst_148 = arith.constant dense<0.000000e+00> : vector<8x32xf32>
    %577 = tpu.matmul %569, %576, %cst_148 {dimension_numbers = #tpu.dot_dimension_numbers<[1], [0], [0], [1], [0, 0, 1, 1], [], []>} : vector<8x32xf32>, vector<32x32xf32>, vector<8x32xf32> -> vector<8x32xf32>
    %578 = arith.addf %575, %577 : vector<8x32xf32>
    %c0_149 = arith.constant 0 : index
    %c0_150 = arith.constant 0 : index
    %579 = vector.load %arg27[%c0_149, %c0_150] : memref<8x32xf32, #tpu.memory_space<vmem>>, vector<8x32xf32>
    tpu.vector_store %arg27[%c0_149, %c0_150], %578 {strides = array<i32>} : memref<8x32xf32, #tpu.memory_space<vmem>>, vector<8x32xf32>,
    %c0_151 = arith.constant 0 : index
    %c0_152 = arith.constant 0 : index
    %580 = vector.load %arg30[%c0_151, %c0_152] : memref<64x32xf32, #tpu.memory_space<vmem>>, vector<64x32xf32>
    %c0_153 = arith.constant 0 : index
    %c0_154 = arith.constant 0 : index
    %581 = vector.load %arg31[%c0_153, %c0_154] : memref<64x32xf32, #tpu.memory_space<vmem>>, vector<64x32xf32>
    %c0_155 = arith.constant 0 : index
    %c0_156 = arith.constant 0 : index
    %582 = vector.load %arg13[%c0_155, %c0_156] : memref<32x32xf32, #tpu.memory_space<vmem>>, vector<32x32xf32>
    %cst_157 = arith.constant dense<0.000000e+00> : vector<64x32xf32>
    %583 = tpu.matmul %580, %582, %cst_157 {dimension_numbers = #tpu.dot_dimension_numbers<[1], [0], [0], [1], [0, 0, 1, 1], [], []>} : vector<64x32xf32>, vector<32x32xf32>, vector<64x32xf32> -> vector<64x32xf32>
    %c0_158 = arith.constant 0 : index
    %c0_159 = arith.constant 0 : index
    %584 = vector.load %arg14[%c0_158, %c0_159] : memref<32x32xf32, #tpu.memory_space<vmem>>, vector<32x32xf32>
    %cst_160 = arith.constant dense<0.000000e+00> : vector<64x32xf32>
    %585 = tpu.matmul %581, %584, %cst_160 {dimension_numbers = #tpu.dot_dimension_numbers<[1], [0], [0], [1], [0, 0, 1, 1], [], []>} : vector<64x32xf32>, vector<32x32xf32>, vector<64x32xf32> -> vector<64x32xf32>
    %586 = arith.addf %583, %585 : vector<64x32xf32>
    %c0_161 = arith.constant 0 : index
    %c0_162 = arith.constant 0 : index
    %587 = vector.load %arg15[%c0_161, %c0_162] : memref<1x32xf32, #tpu.memory_space<vmem>>, vector<1x32xf32>
    %588 = vector.broadcast %587 : vector<1x32xf32> to vector<64x32xf32>
    %589 = arith.addf %586, %588 : vector<64x32xf32>
    %c0_163 = arith.constant 0 : index
    %c0_164 = arith.constant 0 : index
    %590 = vector.load %arg1[%c0_163, %c0_164] : memref<8x32xf32, #tpu.memory_space<vmem>>, vector<8x32xf32>
    %c0_165 = arith.constant 0 : index
    %c0_166 = arith.constant 0 : index
    %591 = vector.load %arg16[%c0_165, %c0_166] : memref<32x32xf32, #tpu.memory_space<vmem>>, vector<32x32xf32>
    %cst_167 = arith.constant dense<0.000000e+00> : vector<8x32xf32>
    %592 = tpu.matmul %590, %591, %cst_167 {dimension_numbers = #tpu.dot_dimension_numbers<[1], [0], [0], [1], [0, 0, 1, 1], [], []>} : vector<8x32xf32>, vector<32x32xf32>, vector<8x32xf32> -> vector<8x32xf32>
    %c0_168 = arith.constant 0 : index
    %c0_169 = arith.constant 0 : index
    %593 = vector.load %arg17[%c0_168, %c0_169] : memref<1x32xf32, #tpu.memory_space<vmem>>, vector<1x32xf32>
    %594 = vector.broadcast %593 : vector<1x32xf32> to vector<8x32xf32>
    %595 = arith.addf %592, %594 : vector<8x32xf32>
    %c0_170 = arith.constant 0 : index
    %c0_171 = arith.constant 0 : index
    %596 = vector.load %arg2[%c0_170, %c0_171] : memref<32x32xf32, #tpu.memory_space<vmem>>, vector<32x32xf32>
    %c0_172 = arith.constant 0 : index
    %c0_173 = arith.constant 0 : index
    %597 = vector.load %arg18[%c0_172, %c0_173] : memref<32x32xf32, #tpu.memory_space<vmem>>, vector<32x32xf32>
    %cst_174 = arith.constant dense<0.000000e+00> : vector<32x32xf32>
    %598 = tpu.matmul %596, %597, %cst_174 {dimension_numbers = #tpu.dot_dimension_numbers<[1], [0], [0], [1], [0, 0, 1, 1], [], []>} : vector<32x32xf32>, vector<32x32xf32>, vector<32x32xf32> -> vector<32x32xf32>
    %c0_175 = arith.constant 0 : index
    %c0_176 = arith.constant 0 : index
    %599 = vector.load %arg19[%c0_175, %c0_176] : memref<1x32xf32, #tpu.memory_space<vmem>>, vector<1x32xf32>
    %600 = vector.broadcast %599 : vector<1x32xf32> to vector<32x32xf32>
    %601 = arith.addf %598, %600 : vector<32x32xf32>
    %602 = vector.shape_cast %595 : vector<8x32xf32> to vector<1x8x32xf32>
    %603 = vector.shape_cast %602 : vector<1x8x32xf32> to vector<1x8x32xf32>
    %604 = vector.broadcast %603 : vector<1x8x32xf32> to vector<8x8x32xf32>
    %605 = vector.shape_cast %604 : vector<8x8x32xf32> to vector<64x32xf32>
    %cst_177 = arith.constant 0.000000e+00 : f32
    %606 = vector.broadcast %cst_177 : f32 to vector<64x32xf32>
    %607 = vector.extract_strided_slice %601 {offsets = [0, 0], sizes = [8, 32], strides = [1, 1]} : vector<32x32xf32> to vector<8x32xf32>
    %608 = vector.shape_cast %607 : vector<8x32xf32> to vector<1x8x32xf32>
    %609 = vector.shape_cast %608 : vector<1x8x32xf32> to vector<1x8x32xf32>
    %610 = vector.broadcast %609 : vector<1x8x32xf32> to vector<8x8x32xf32>
    %611 = vector.shape_cast %610 : vector<8x8x32xf32> to vector<64x32xf32>
    %612 = arith.addf %589, %605 : vector<64x32xf32>
    %613 = arith.addf %612, %611 : vector<64x32xf32>
    %614 = math.tanh %613 : vector<64x32xf32>
    %615 = arith.addf %606, %614 : vector<64x32xf32>
    %616 = vector.extract_strided_slice %601 {offsets = [8, 0], sizes = [8, 32], strides = [1, 1]} : vector<32x32xf32> to vector<8x32xf32>
    %617 = vector.shape_cast %616 : vector<8x32xf32> to vector<1x8x32xf32>
    %618 = vector.shape_cast %617 : vector<1x8x32xf32> to vector<1x8x32xf32>
    %619 = vector.broadcast %618 : vector<1x8x32xf32> to vector<8x8x32xf32>
    %620 = vector.shape_cast %619 : vector<8x8x32xf32> to vector<64x32xf32>
    %621 = arith.addf %589, %605 : vector<64x32xf32>
    %622 = arith.addf %621, %620 : vector<64x32xf32>
    %623 = math.tanh %622 : vector<64x32xf32>
    %624 = arith.addf %615, %623 : vector<64x32xf32>
    %625 = vector.extract_strided_slice %601 {offsets = [16, 0], sizes = [8, 32], strides = [1, 1]} : vector<32x32xf32> to vector<8x32xf32>
    %626 = vector.shape_cast %625 : vector<8x32xf32> to vector<1x8x32xf32>
    %627 = vector.shape_cast %626 : vector<1x8x32xf32> to vector<1x8x32xf32>
    %628 = vector.broadcast %627 : vector<1x8x32xf32> to vector<8x8x32xf32>
    %629 = vector.shape_cast %628 : vector<8x8x32xf32> to vector<64x32xf32>
    %630 = arith.addf %589, %605 : vector<64x32xf32>
    %631 = arith.addf %630, %629 : vector<64x32xf32>
    %632 = math.tanh %631 : vector<64x32xf32>
    %633 = arith.addf %624, %632 : vector<64x32xf32>
    %634 = vector.extract_strided_slice %601 {offsets = [24, 0], sizes = [8, 32], strides = [1, 1]} : vector<32x32xf32> to vector<8x32xf32>
    %635 = vector.shape_cast %634 : vector<8x32xf32> to vector<1x8x32xf32>
    %636 = vector.shape_cast %635 : vector<1x8x32xf32> to vector<1x8x32xf32>
    %637 = vector.broadcast %636 : vector<1x8x32xf32> to vector<8x8x32xf32>
    %638 = vector.shape_cast %637 : vector<8x8x32xf32> to vector<64x32xf32>
    %639 = arith.addf %589, %605 : vector<64x32xf32>
    %640 = arith.addf %639, %638 : vector<64x32xf32>
    %641 = math.tanh %640 : vector<64x32xf32>
    %642 = arith.addf %633, %641 : vector<64x32xf32>
    %c0_178 = arith.constant 0 : index
    %c0_179 = arith.constant 0 : index
    %643 = vector.load %arg20[%c0_178, %c0_179] : memref<1x32xf32, #tpu.memory_space<vmem>>, vector<1x32xf32>
    %644 = vector.broadcast %643 : vector<1x32xf32> to vector<64x32xf32>
    %645 = arith.mulf %642, %644 : vector<64x32xf32>
    %cst_180 = arith.constant dense<0.000000e+00> : vector<64xf32>
    %646 = vector.multi_reduction <add>, %645, %cst_180 [1] : vector<64x32xf32> to vector<64xf32>
    %647 = vector.shape_cast %646 : vector<64xf32> to vector<64x1xf32>
    %c0_181 = arith.constant 0 : index
    %c0_182 = arith.constant 0 : index
    %648 = vector.load %arg21[%c0_181, %c0_182] : memref<1x1xf32, #tpu.memory_space<vmem>>, vector<1x1xf32>
    %cst_183 = arith.constant 4.000000e+00 : f32
    %649 = vector.broadcast %cst_183 : f32 to vector<1x1xf32>
    %650 = arith.mulf %649, %648 : vector<1x1xf32>
    %651 = vector.broadcast %650 : vector<1x1xf32> to vector<64x1xf32>
    %652 = arith.addf %647, %651 : vector<64x1xf32>
    %653 = vector.broadcast %652 : vector<64x1xf32> to vector<64x32xf32>
    %654 = arith.mulf %653, %605 : vector<64x32xf32>
    %c0_184 = arith.constant 0 : index
    %c0_185 = arith.constant 0 : index
    %655 = vector.load %arg22[%c0_184, %c0_185] : memref<32x32xf32, #tpu.memory_space<vmem>>, vector<32x32xf32>
    %cst_186 = arith.constant dense<0.000000e+00> : vector<64x32xf32>
    %656 = tpu.matmul %654, %655, %cst_186 {dimension_numbers = #tpu.dot_dimension_numbers<[1], [0], [0], [1], [0, 0, 1, 1], [], []>} : vector<64x32xf32>, vector<32x32xf32>, vector<64x32xf32> -> vector<64x32xf32>
    %c0_187 = arith.constant 0 : index
    %c0_188 = arith.constant 0 : index
    %657 = vector.load %arg23[%c0_187, %c0_188] : memref<32x32xf32, #tpu.memory_space<vmem>>, vector<32x32xf32>
    %cst_189 = arith.constant dense<0.000000e+00> : vector<64x32xf32>
    %658 = tpu.matmul %580, %657, %cst_189 {dimension_numbers = #tpu.dot_dimension_numbers<[1], [0], [0], [1], [0, 0, 1, 1], [], []>} : vector<64x32xf32>, vector<32x32xf32>, vector<64x32xf32> -> vector<64x32xf32>
    %659 = arith.addf %656, %658 : vector<64x32xf32>
    %c0_190 = arith.constant 0 : index
    %c0_191 = arith.constant 0 : index
    %660 = vector.load %arg24[%c0_190, %c0_191] : memref<32x32xf32, #tpu.memory_space<vmem>>, vector<32x32xf32>
    %cst_192 = arith.constant dense<0.000000e+00> : vector<64x32xf32>
    %661 = tpu.matmul %581, %660, %cst_192 {dimension_numbers = #tpu.dot_dimension_numbers<[1], [0], [0], [1], [0, 0, 1, 1], [], []>} : vector<64x32xf32>, vector<32x32xf32>, vector<64x32xf32> -> vector<64x32xf32>
    %662 = arith.addf %659, %661 : vector<64x32xf32>
    %c0_193 = arith.constant 0 : index
    %c0_194 = arith.constant 0 : index
    %663 = vector.load %arg25[%c0_193, %c0_194] : memref<1x32xf32, #tpu.memory_space<vmem>>, vector<1x32xf32>
    %664 = vector.broadcast %663 : vector<1x32xf32> to vector<64x32xf32>
    %665 = arith.addf %662, %664 : vector<64x32xf32>
    %c0_195 = arith.constant 0 : index
    %c0_196 = arith.constant 0 : index
    %666 = vector.load %arg26[%c0_195, %c0_196] : memref<64x32xf32, #tpu.memory_space<vmem>>, vector<64x32xf32>
    tpu.vector_store %arg26[%c0_195, %c0_196], %665 {strides = array<i32>} : memref<64x32xf32, #tpu.memory_space<vmem>>, vector<64x32xf32>,
    return
  }
}

</mosaic_0001>

<bundles_post_ra>
// kernel: encoder_forward.1
= control target key start
LH: loop header
LB: loop body
LE: loop exit
PB: predicated region body
PF: predicated region fallthrough
CT: control target
= control target key end

     0   :  { %vm106_vm0 = vcmask 261120   ;;  %v4350_v3 = vmov 0.0|0.0   ;;  %vm4351_vm1 = vmmov 0   ;;  %v4352_v4 = vmov 0.0   ;;  %s5243_s3 = inlined_call_operand.vmem [shape: f32[32,96], index: 3, kind: input, shape index: {}]   ;;  %s5244_s0 = inlined_call_operand.vmem [shape: f32[64,32], index: 0, kind: input, shape index: {}]   ;;  %s5245_s5 = inlined_call_operand.vmem [shape: f32[32,96], index: 5, kind: input, shape index: {}]   ;;  %s5246_s7 = inlined_call_operand.vmem [shape: f32[32,96], index: 7, kind: input, shape index: {}]   ;;  %s5247_s9 = inlined_call_operand.vmem [shape: f32[32,96], index: 9, kind: input, shape index: {}]   ;;  %s5248_s4 = inlined_call_operand.vmem [shape: f32[1,96], index: 4, kind: input, shape index: {}]   ;;  %s5249_s6 = inlined_call_operand.vmem [shape: f32[1,96], index: 6, kind: input, shape index: {}]   ;;  %s5250_s10 = inlined_call_operand.vmem [shape: f32[1,96], index: 10, kind: input, shape index: {}]   ;;  %s5251_s8 = inlined_call_operand.vmem [shape: f32[1,96], index: 8, kind: input, shape index: {}]   ;;  %s5252_s12 = inlined_call_operand.vmem [shape: f32[32,32], index: 12, kind: input, shape index: {}]   ;;  %s5253_s14 = inlined_call_operand.vmem [shape: f32[32,32], index: 14, kind: input, shape index: {}]   ;;  %s5254_s13 = inlined_call_operand.vmem [shape: f32[32,32], index: 13, kind: input, shape index: {}]   ;;  %s5255_s11 = inlined_call_operand.vmem [shape: f32[32,32], index: 11, kind: input, shape index: {}]   ;;  %s5256_s16 = inlined_call_operand.vmem [shape: f32[32,32], index: 16, kind: input, shape index: {}]   ;;  %s5257_s18 = inlined_call_operand.vmem [shape: f32[32,32], index: 18, kind: input, shape index: {}]   ;;  %s5258_s1 = inlined_call_operand.vmem [shape: f32[8,32], index: 1, kind: input, shape index: {}]   ;;  %s5259_s23 = inlined_call_operand.vmem [shape: f32[32,32], index: 23, kind: input, shape index: {}]   ;;  %s5260_s2 = inlined_call_operand.vmem [shape: f32[32,32], index: 2, kind: input, shape index: {}]   ;;  %s5261_s21 = inlined_call_operand.<no memory space> [shape: f32[1,1], index: 21, kind: input, shape index: {}]   ;;  %s5262_s27 = inlined_call_operand.vmem [shape: f32[8,32], index: 27, kind: output, shape index: {1}]   ;;  %s5263_s17 = inlined_call_operand.vmem [shape: f32[1,32], index: 17, kind: input, shape index: {}]   ;;  %s5264_s15 = inlined_call_operand.vmem [shape: f32[1,32], index: 15, kind: input, shape index: {}]   ;;  %s5265_s19 = inlined_call_operand.vmem [shape: f32[1,32], index: 19, kind: input, shape index: {}]   ;;  %s5266_s20 = inlined_call_operand.vmem [shape: f32[1,32], index: 20, kind: input, shape index: {}]   ;;  %s5267_s22 = inlined_call_operand.vmem [shape: f32[32,32], index: 22, kind: input, shape index: {}]   ;;  %s5268_s24 = inlined_call_operand.vmem [shape: f32[32,32], index: 24, kind: input, shape index: {}]   ;;  %s5269_s25 = inlined_call_operand.vmem [shape: f32[1,32], index: 25, kind: input, shape index: {}]   ;;  %s5270_s26 = inlined_call_operand.vmem [shape: f32[64,32], index: 26, kind: output, shape index: {0}]  }
   0x1   :  { %5279 = sst [smem:[#allocation7_spill]] %s5243_s3  ;;  %4006 = vmatprep.subr.bf16.mxu0 %v4350_v3  ;;  %3685 = vmatprep.mubr.msk.f32.mxu0 %vm4351_vm1, %v4352_v4  ;;  %vm236_vm2 = vcmask 785408  }
   0x2   :  { %5280 = sst [smem:[#allocation8_spill]] %s5244_s0  ;;  %s4353_s0 = smov 64  }
   0x3   :  { %5281 = sst [smem:[#allocation9_spill]] %s5245_s5 }
   0x4   :  { %5282 = sst [smem:[#allocation10_spill]] %s5246_s7  ;;  %s5293_s7 = sld [smem:[#allocation9_spill]] }
   0x5   :  { %5283 = sst [smem:[#allocation11_spill]] %s5247_s9  ;;  %s5291_s9 = sld [smem:[#allocation7_spill]] }
   0x6   :  { %5284 = sst [smem:[#allocation12_spill]] %s5248_s4  ;;  %s5295_s30 = sld [smem:[#allocation11_spill]] }
   0x7   :  { %5285 = sst [smem:[#allocation13_spill]] %s5249_s6  ;;  %s5292_s6 = sld [smem:[#allocation8_spill]] }
   0x8   :  { %5286 = sst [smem:[#allocation14_spill]] %s5250_s10  ;;  %s5297_s10 = sld [smem:[#allocation13_spill]] }
   0x9   :  { %5287 = sst [smem:[#allocation15_spill]] %s5251_s8 }
   0xa   :  { %5288 = sst [smem:[#allocation16_spill]] %s5252_s12  ;;  %v245_v9 = vld [vmem:[%s5293_s7] sm:$0xff]  ;;  %v246_v10 = vld [vmem:[%s5293_s7 + $0x8] sm:$0xff]  ;;  %s5294_s12 = sld [smem:[#allocation10_spill]]  ;;  %v247_v14 = vld [vmem:[%s5293_s7 + $0x10] sm:$0xff] }
   0xb   :  { %5289 = sst [smem:[#allocation17_spill]] %s5253_s14  ;;  %v95_v0 = vld [vmem:[%s5291_s9] sm:$0xff]  ;;  %v96_v1 = vld [vmem:[%s5291_s9 + $0x8] sm:$0xff]  ;;  %v97_v2 = vld [vmem:[%s5291_s9 + $0x10] sm:$0xff]  ;;  %v3986_v11 = vpack.c.bf16 %v246_v10, %v245_v9  ;;  %s5299_s28 = sld [smem:[#allocation15_spill]] }
   0xc   :  { %5290 = sst [smem:[#allocation18_spill]] %s5254_s13  ;;  %v3978_v5 = vpack.c.bf16 %v96_v1, %v95_v0  ;;  %v98_v6 = vld [vmem:[%s5291_s9 + $0x18] sm:$0xff]  ;;  %v373_v28 = vld [vmem:[%s5295_s30] sm:$0xff]  ;;  %v374_v29 = vld [vmem:[%s5295_s30 + $0x8] sm:$0xff]  ;;  %s5296_s13 = sld [smem:[#allocation12_spill]] }
   0xd   :  { %v87_v7 = vld [vmem:[%s5292_s6] sm:$0xff]  ;;  %v3982_v8 = vpack.c.bf16 %v98_v6, %v97_v2  ;;  %v248_v15 = vld [vmem:[%s5293_s7 + $0x18] sm:$0xff]  ;;  %v88_v17 = vld [vmem:[%s5292_s6 + $0x8] sm:$0xff]  ;;  %v4596_v30 = vpack.c.bf16 %v374_v29, %v373_v28  ;;  %s5300_s3 = sld [smem:[#allocation16_spill]]  ;;  %s5301_s7 = sld [smem:[#allocation17_spill]] }
   0xe   :  { %3623 = vmatprep.mubr.msk.f32.mxu1 %vm106_vm0, %v87_v7  ;;  %3979 = vmatprep.subr.bf16.mxu1 %v3978_v5  ;;  %v89_v20 = vld [vmem:[%s5292_s6 + $0x10] sm:$0xff]  ;;  %v3990_v21 = vpack.c.bf16 %v248_v15, %v247_v14  ;;  %v90_v23 = vld [vmem:[%s5292_s6 + $0x18] sm:$0xff]  ;;  %v91_v24 = vld [vmem:[%s5292_s6 + $0x20] sm:$0xff] }
   0xf   :  { %3981 = vmatpush3.bf16.msra.mxu1 %v3978_v5  ;;  %v92_v25 = vld [vmem:[%s5292_s6 + $0x28] sm:$0xff]  ;;  %v93_v26 = vld [vmem:[%s5292_s6 + $0x30] sm:$0xff]  ;;  %v94_v27 = vld [vmem:[%s5292_s6 + $0x38] sm:$0xff] }
  0x10   :  { %3983 = vmatprep.subr.bf16.mxu1 %v3982_v8  ;;  %v369_v12 = vld [vmem:[%s5294_s12] sm:$0xff]  ;;  %v370_v13 = vld [vmem:[%s5294_s12 + $0x8] sm:$0xff]  ;;  %v371_v18 = vld [vmem:[%s5294_s12 + $0x10] sm:$0xff] }
  0x11   :  { %v4533_v16 = vpack.c.bf16 %v370_v13, %v369_v12  ;;  %v372_v19 = vld [vmem:[%s5294_s12 + $0x18] sm:$0xff]  ;;  %v375_v31 = vld [vmem:[%s5295_s30 + $0x10] sm:$0xff]  ;;  %v3335_v51 = vld [vmem:[%s5297_s10] ss:$0 sm:$0xff]  ;;  %s4354_s12 = smov 96   ;;  %s5302_s10 = sld [smem:[#allocation18_spill]] }
  0x12   :  { %v4550_v22 = vpack.c.bf16 %v372_v19, %v371_v18  ;;  %v376_v32 = vld [vmem:[%s5295_s30 + $0x18] sm:$0xff]  ;;  %v3326_v34 = vld [vmem:[%s5296_s13] ss:$0 sm:$0xff]  ;;  %s5298_s30 = sld [smem:[#allocation14_spill]] }
  0x13   :  { %3985 = vmatpush3.bf16.msra.mxu1 %v3982_v8  ;;  %4008 = vmatpush3.bf16.msra.mxu0 %v4533_v16  ;;  %v4606_v33 = vpack.c.bf16 %v376_v32, %v375_v31  ;;  %v4651_v12 = vld [vmem:[%s5299_s28] ss:$0 sm:$0xff] }
  0x14   :  { %3987 = vmatprep.subr.bf16.mxu1 %v3986_v11  ;;  %4009 = vmatprep.subr.bf16.mxu0 %v4350_v3 }
  0x16   :  { %3624 = vmatmul.mubr.msk.f32.vlgmr.msra.gmra.mrb[0].mxu1 %vm106_vm0, %v88_v17 }
  0x17   :  { %3989 = vmatpush3.bf16.msra.mxu1 %v3986_v11  ;;  %3626 = vmatprep.mubr.msk.f32.mxu1 %vm106_vm0, %v89_v20 }
  0x18   :  { %3991 = vmatprep.subr.bf16.mxu1 %v3990_v21  ;;  %4011 = vmatpush3.bf16.msra.mxu0 %v4550_v22  ;;  %v4645_v8 = vld [vmem:[%s5298_s30] ss:$0 sm:$0xff] }
  0x19   :  { %4018 = vmatprep.subr.bf16.mxu0 %v4350_v3 }
  0x1a   :  { %3627 = vmatmul.mubr.msk.f32.gmra.mrb[2].mxu1 %vm106_vm0, %v90_v23 }
  0x1b   :  { %3629 = vmatprep.mubr.msk.f32.mxu1 %vm106_vm0, %v91_v24  ;;  %3993 = vmatpush3.bf16.msra.mxu1 %v3990_v21 }
  0x1c   :  { %3994 = vmatprep.subr.bf16.mxu1 %v4350_v3 }
  0x1e   :  { %3630 = vmatmul.mubr.msk.f32.gmra.mrb[4].mxu1 %vm106_vm0, %v92_v25 }
  0x1f   :  { %3632 = vmatprep.mubr.msk.f32.mxu1 %vm106_vm0, %v93_v26 }
  0x22   :  { %3633 = vmatmul.mubr.msk.f32.gmra.mrb[6].mxu1 %vm106_vm0, %v94_v27 }
  0x23   :  { %3643 = vmatprep.mubr.msk.f32.mxu1 %vm106_vm0, %v87_v7 }
  0x26   :  { %3644 = vmatmul.mubr.msk.f32.vlgmr.msra.gmra.mrb[8].mxu1 %vm106_vm0, %v88_v17 }
  0x27   :  { %3996 = vmatpush3.bf16.msra.mxu1 %v4533_v16  ;;  %3646 = vmatprep.mubr.msk.f32.mxu1 %vm106_vm0, %v89_v20 }
  0x28   :  { %3997 = vmatprep.subr.bf16.mxu1 %v4350_v3 }
  0x2a   :  { %3647 = vmatmul.mubr.msk.f32.gmra.mrb[10].mxu1 %vm106_vm0, %v90_v23 }
  0x2b   :  { %3649 = vmatprep.mubr.msk.f32.mxu1 %vm106_vm0, %v91_v24  ;;  %3999 = vmatpush3.bf16.msra.mxu1 %v4550_v22 }
  0x2c   :  { %4000 = vmatprep.subr.bf16.mxu1 %v4350_v3 }
  0x2e   :  { %3650 = vmatmul.mubr.msk.f32.gmra.mrb[12].mxu1 %vm106_vm0, %v92_v25 }
  0x2f   :  { %3652 = vmatprep.mubr.msk.f32.mxu1 %vm106_vm0, %v93_v26 }
  0x32   :  { %3653 = vmatmul.mubr.msk.f32.gmra.mrb[14].mxu1 %vm106_vm0, %v94_v27 }
  0x33   :  { %3663 = vmatprep.mubr.msk.f32.mxu1 %vm4351_vm1, %v4352_v4 }
  0x36   :  { %3664 = vmatmul.mubr.f32.vlgmr.msra.gmra.mrb[16].mxu1 %v4352_v4 }
  0x37   :  { %4002 = vmatpush3.bf16.msra.mxu1 %v4596_v30  ;;  %3674 = vmatprep.mubr.msk.f32.mxu1 %vm4351_vm1, %v4352_v4 }
  0x38   :  { %4003 = vmatprep.subr.bf16.mxu1 %v4350_v3 }
  0x3b   :  { %4005 = vmatpush3.bf16.msra.mxu1 %v4606_v33 }
  0x3c   :  { %4012 = vmatprep.subr.bf16.mxu1 %v4350_v3 }
  0x3e   :  { %3675 = vmatmul.mubr.f32.vlgmr.msra.gmra.mrb[18].mxu1 %v4352_v4 }
  0x3f   :  { %4014 = vmatpush3.bf16.msra.mxu1 %v4596_v30  ;;  %3696 = vmatprep.mubr.msk.f32.mxu1 %vm4351_vm1, %v4352_v4 }
  0x40   :  { %4015 = vmatprep.subr.bf16.mxu1 %v4350_v3 }
  0x43   :  { %4017 = vmatpush3.bf16.msra.mxu1 %v4606_v33 }
  0x44   :  { %4024 = vmatprep.subr.bf16.mxu1 %v4350_v3 }
  0xe9   :  { %v3625_v35 = vpop.f32.mrb[0].mxu1 }
  0xea   :  { %v203_v36 = vadd.f32 %v3625_v35, %v3326_v34  ;;  %v197_v37 = vpop.f32.mrb[1].mxu1 }
  0xeb   :  { %v198_v38 = vadd.f32 %v3326_v34, %v197_v37 }
  0xec   :  { %238 = vst.msk [vmem:[#allocation2 + $0x8] sm:$0xff] %vm236_vm2, %v203_v36 }
  0xed   :  { %237 = vst.msk [vmem:[#allocation2] sm:$0xff] %vm236_vm2, %v198_v38  ;;  %v3628_v39 = vpop.f32.mrb[2].mxu1 }
  0xee   :  { %v213_v40 = vadd.f32 %v3628_v39, %v3326_v34  ;;  %v207_v41 = vpop.f32.mrb[3].mxu1 }
  0xef   :  { %v208_v42 = vadd.f32 %v3326_v34, %v207_v41 }
  0xf0   :  { %240 = vst.msk [vmem:[#allocation2 + $0x18] sm:$0xff] %vm236_vm2, %v213_v40 }
  0xf1   :  { %239 = vst.msk [vmem:[#allocation2 + $0x10] sm:$0xff] %vm236_vm2, %v208_v42  ;;  %v3631_v43 = vpop.f32.mrb[4].mxu1 }
  0xf2   :  { %v223_v44 = vadd.f32 %v3631_v43, %v3326_v34  ;;  %v217_v45 = vpop.f32.mrb[5].mxu1 }
  0xf3   :  { %v218_v46 = vadd.f32 %v3326_v34, %v217_v45 }
  0xf4   :  { %242 = vst.msk [vmem:[#allocation2 + $0x28] sm:$0xff] %vm236_vm2, %v223_v44  ;;  %v534_v17 = vld [vmem:[#allocation2] sm:$0xff] }
  0xf5   :  { %241 = vst.msk [vmem:[#allocation2 + $0x20] sm:$0xff] %vm236_vm2, %v218_v46  ;;  %v3634_v47 = vpop.f32.mrb[6].mxu1 }
  0xf6   :  { %v233_v48 = vadd.f32 %v3634_v47, %v3326_v34  ;;  %v227_v49 = vpop.f32.mrb[7].mxu1 }
  0xf7   :  { %v228_v50 = vadd.f32 %v3326_v34, %v227_v49 }
  0xf8   :  { %244 = vst.msk [vmem:[#allocation2 + $0x38] sm:$0xff] %vm236_vm2, %v233_v48 }
  0xf9   :  { %243 = vst.msk [vmem:[#allocation2 + $0x30] sm:$0xff] %vm236_vm2, %v228_v50  ;;  %v3645_v52 = vpop.f32.mrb[8].mxu1 }
  0xfa   :  { %v328_v53 = vadd.f32 %v3645_v52, %v3335_v51  ;;  %v322_v54 = vpop.f32.mrb[9].mxu1 }
  0xfb   :  { %v323_v55 = vadd.f32 %v3335_v51, %v322_v54 }
  0xfc   :  { %362 = vst.msk [vmem:[#allocation3 + $0x8] sm:$0xff] %vm236_vm2, %v328_v53 }
  0xfd   :  { %361 = vst.msk [vmem:[#allocation3] sm:$0xff] %vm236_vm2, %v323_v55  ;;  %v3648_v56 = vpop.f32.mrb[10].mxu1 }
  0xfe   :  { %v338_v57 = vadd.f32 %v3648_v56, %v3335_v51  ;;  %v332_v58 = vpop.f32.mrb[11].mxu1 }
  0xff   :  { %v333_v59 = vadd.f32 %v3335_v51, %v332_v58 }
 0x100   :  { %364 = vst.msk [vmem:[#allocation3 + $0x18] sm:$0xff] %vm236_vm2, %v338_v57 }
 0x101   :  { %363 = vst.msk [vmem:[#allocation3 + $0x10] sm:$0xff] %vm236_vm2, %v333_v59  ;;  %v3651_v60 = vpop.f32.mrb[12].mxu1 }
 0x102   :  { %v348_v61 = vadd.f32 %v3651_v60, %v3335_v51  ;;  %v342_v62 = vpop.f32.mrb[13].mxu1  ;;  %v745_v60 = vld [vmem:[#allocation2 + $0x8] sm:$0xff] }
 0x103   :  { %v343_v63 = vadd.f32 %v3335_v51, %v342_v62 }
 0x104   :  { %366 = vst.msk [vmem:[#allocation3 + $0x28] sm:$0xff] %vm236_vm2, %v348_v61 }
 0x105   :  { %365 = vst.msk [vmem:[#allocation3 + $0x20] sm:$0xff] %vm236_vm2, %v343_v63  ;;  %v3654_v0 = vpop.f32.mrb[14].mxu1 }
 0x106   :  { %v358_v1 = vadd.f32 %v3654_v0, %v3335_v51  ;;  %v352_v2 = vpop.f32.mrb[15].mxu1 }
 0x107   :  { %v353_v5 = vadd.f32 %v3335_v51, %v352_v2 }
 0x108   :  { %368 = vst.msk [vmem:[#allocation3 + $0x38] sm:$0xff] %vm236_vm2, %v358_v1 }
 0x109   :  { %367 = vst.msk [vmem:[#allocation3 + $0x30] sm:$0xff] %vm236_vm2, %v353_v5  ;;  %v460_v6 = vpop.f32.mrb[16].mxu1 }
 0x10a   :  { %v3665_v7 = vpop.f32.mrb[17].mxu1  ;;  %v461_v13 = vadd.f32 %v4651_v12, %v460_v6 }
 0x10c   :  { %v535_v18 = vadd.f32 %v534_v17, %v461_v13 }
 0x10e   :  { %v3346_v20 = vmul.f32 -1.442695, %v535_v18 }
 0x10f   :  { %v562_v14 = vld [vmem:[#allocation3 + $0x38] sm:$0xff] }
 0x110   :  { %v773_v58 = vld [vmem:[#allocation3 + $0x30] sm:$0xff] }
 0x111   :  { %v530_v9 = vpop.f32.mrb[18].mxu1 }
 0x112   :  { %v531_v10 = vadd.f32 %v4645_v8, %v530_v9  ;;  %v3676_v11 = vpop.f32.mrb[19].mxu1 }
 0x114   :  { %571 = vrot.lane.b32.xlu0 %v531_v10, %s4353_s0  ;;  %v563_v15 = vadd.f32 %v562_v14, %v531_v10 }
 0x116   :  { %v3347_v19 = vmul.f32 -1.442695, %v563_v15 }
 0x118   :  { %543 = vrot.lane.b32.xlu0 %v461_v13, %s4353_s0  ;;  %4190 = vpow2.f32 %v3347_v19 }
 0x119   :  { %4192 = vpow2.f32 %v3346_v20 }
 0x122   :  { %v4191_v21 = vpop.eup %4190 }
 0x123   :  { %v567_v23 = vadd.f32 1.0, %v4191_v21  ;;  %v4193_v24 = vpop.eup %4192 }
 0x124   :  { %v539_v25 = vadd.f32 1.0, %v4193_v24 }
 0x125   :  { %4194 = vrcp.f32 %v567_v23 }
 0x126   :  { %4196 = vrcp.f32 %v539_v25 }
 0x12f   :  { %v4195_v26 = vpop.eup %4194 }
 0x130   :  { %v4197_v29 = vpop.eup %4196  ;;  %v581_v40 = vsub.f32 1.0, %v4195_v26  ;;  %v587_v42 = vmul.f32 0.0, %v4195_v26 }
 0x131   :  { %v553_v45 = vsub.f32 1.0, %v4197_v29  ;;  %v559_v47 = vmul.f32 0.0, %v4197_v29 }
 0x186   :  { %v572_v27 = vpop.permute.xlu0 %571 }
 0x187   :  { %v574_v28 = vmul.f32 %v4195_v26, %v572_v27 }
 0x189   :  { %576 = vrot.lane.b32.xlu1 %v574_v28, %s4353_s0 }
 0x18a   :  { %v544_v31 = vpop.permute.xlu0 %543 }
 0x18b   :  { %v546_v32 = vmul.f32 %v4197_v29, %v544_v31 }
 0x18d   :  { %548 = vrot.lane.b32.xlu1 %v546_v32, %s4353_s0 }
 0x1fb   :  { %v577_v34 = vpop.permute.xlu1 %576 }
 0x1fc   :  { %v579_v35 = vadd.f32 %v577_v34, %v562_v14 }
 0x1fe   :  { %4198 = vtanh.f32 %v579_v35 }
 0x1ff   :  { %v549_v36 = vpop.permute.xlu1 %548 }
 0x200   :  { %v551_v37 = vadd.f32 %v549_v36, %v534_v17 }
 0x202   :  { %4200 = vtanh.f32 %v551_v37 }
 0x208   :  { %v4199_v38 = vpop.eup %4198 }
 0x209   :  { %583 = vrot.lane.b32.xlu0 %v4199_v38, %s4354_s12 }
 0x20c   :  { %v4201_v39 = vpop.eup %4200 }
 0x20d   :  { %555 = vrot.lane.b32.xlu1 %v4201_v39, %s4354_s12 }
 0x27b   :  { %v584_v41 = vpop.permute.xlu0 %583 }
 0x27c   :  { %v586_v43 = vmul.f32 %v584_v41, %v581_v40 }
 0x27e   :  { %v4660_v44 = vadd.f32 %v587_v42, %v586_v43  ;;  %v985_v42 = vld [vmem:[#allocation3 + $0x28] sm:$0xff] }
 0x27f   :  { %v556_v46 = vpop.permute.xlu1 %555 }
 0x280   :  { %v558_v48 = vmul.f32 %v556_v46, %v553_v45  ;;  %595 = vrot.lane.b32.xlu0 %v4660_v44, %s4354_s12 }
 0x282   :  { %v4664_v49 = vadd.f32 %v559_v47, %v558_v48 }
 0x284   :  { %590 = vrot.lane.b32.xlu1 %v4664_v49, %s4354_s12 }
 0x2f2   :  { %v596_v50 = vpop.permute.xlu0 %595 }
 0x2f3   :  { %599 = vst.msk [vmem:[#allocation5 + $0x38] sm:$0xff] %vm106_vm0, %v596_v50  ;;  %3697 = vmatmul.mubr.msk.f32.vlgmr.msra.gmra.mrb[20].mxu1 %vm106_vm0, %v596_v50 }
 0x2f4   :  { %4026 = vmatpush3.bf16.msra.mxu1 %v4596_v30  ;;  %3718 = vmatprep.mubr.msk.f32.mxu1 %vm4351_vm1, %v4352_v4 }
 0x2f5   :  { %4027 = vmatprep.subr.bf16.mxu1 %v4350_v3 }
 0x2f6   :  { %v591_v51 = vpop.permute.xlu1 %590 }
 0x2f7   :  { %593 = vst.msk [vmem:[#allocation4] sm:$0xff] %vm106_vm0, %v591_v51  ;;  %3686 = vmatmul.mubr.msk.f32.vlgmr.msra.gmra.mrb[0].mxu0 %vm106_vm0, %v591_v51 }
 0x2f8   :  { %4020 = vmatpush3.bf16.msra.mxu0 %v4533_v16  ;;  %4029 = vmatpush3.bf16.msra.mxu1 %v4606_v33 }
 0x2f9   :  { %4021 = vmatprep.subr.bf16.mxu0 %v4350_v3  ;;  %3707 = vmatprep.mubr.msk.f32.mxu0 %vm4351_vm1, %v4352_v4 }
 0x2fa   :  { %4036 = vmatprep.subr.bf16.mxu1 %v4350_v3 }
 0x2fc   :  { %4023 = vmatpush3.bf16.msra.mxu0 %v4550_v22 }
 0x2fd   :  { %4030 = vmatprep.subr.bf16.mxu0 %v4350_v3 }
 0x3c6   :  { %v740_v52 = vpop.f32.mrb[20].mxu1 }
 0x3c7   :  { %v741_v53 = vadd.f32 %v4645_v8, %v740_v52  ;;  %v3698_v54 = vpop.f32.mrb[21].mxu1 }
 0x3c9   :  { %782 = vrot.lane.b32.xlu0 %v741_v53, %s4353_s0  ;;  %v774_v59 = vadd.f32 %v773_v58, %v741_v53 }
 0x3ca   :  { %v668_v55 = vpop.f32.mrb[0].mxu0 }
 0x3cb   :  { %v669_v56 = vadd.f32 %v4651_v12, %v668_v55  ;;  %v3687_v57 = vpop.f32.mrb[1].mxu0  ;;  %v3351_v61 = vmul.f32 -1.442695, %v774_v59 }
 0x3cd   :  { %754 = vrot.lane.b32.xlu1 %v669_v56, %s4353_s0  ;;  %v746_v62 = vadd.f32 %v745_v60, %v669_v56  ;;  %4202 = vpow2.f32 %v3351_v61 }
 0x3cf   :  { %v3350_v63 = vmul.f32 -1.442695, %v746_v62 }
 0x3d1   :  { %4204 = vpow2.f32 %v3350_v63 }
 0x3d7   :  { %v4203_v0 = vpop.eup %4202 }
 0x3d8   :  { %v778_v1 = vadd.f32 1.0, %v4203_v0 }
 0x3da   :  { %4206 = vrcp.f32 %v778_v1 }
 0x3db   :  { %v4205_v2 = vpop.eup %4204 }
 0x3dc   :  { %v750_v5 = vadd.f32 1.0, %v4205_v2 }
 0x3de   :  { %4208 = vrcp.f32 %v750_v5 }
 0x3e4   :  { %v4207_v6 = vpop.eup %4206 }
 0x3e5   :  { %v792_v21 = vsub.f32 1.0, %v4207_v6  ;;  %v798_v24 = vmul.f32 %v4207_v6, %v4660_v44  ;;  %v957_v44 = vld [vmem:[#allocation2 + $0x10] sm:$0xff] }
 0x3e8   :  { %v4209_v10 = vpop.eup %4208 }
 0x3e9   :  { %v764_v27 = vsub.f32 1.0, %v4209_v10  ;;  %v770_v29 = vmul.f32 %v4209_v10, %v4664_v49 }
 0x43b   :  { %v783_v7 = vpop.permute.xlu0 %782 }
 0x43c   :  { %v785_v9 = vmul.f32 %v4207_v6, %v783_v7 }
 0x43e   :  { %787 = vrot.lane.b32.xlu0 %v785_v9, %s4353_s0 }
 0x43f   :  { %v755_v11 = vpop.permute.xlu1 %754 }
 0x440   :  { %v757_v13 = vmul.f32 %v4209_v10, %v755_v11 }
 0x442   :  { %759 = vrot.lane.b32.xlu1 %v757_v13, %s4353_s0 }
 0x4b0   :  { %v788_v14 = vpop.permute.xlu0 %787 }
 0x4b1   :  { %v790_v15 = vadd.f32 %v788_v14, %v773_v58 }
 0x4b3   :  { %4210 = vtanh.f32 %v790_v15 }
 0x4b4   :  { %v760_v17 = vpop.permute.xlu1 %759 }
 0x4b5   :  { %v762_v18 = vadd.f32 %v760_v17, %v745_v60 }
 0x4b7   :  { %4212 = vtanh.f32 %v762_v18 }
 0x4bd   :  { %v4211_v19 = vpop.eup %4210 }
 0x4be   :  { %794 = vrot.lane.b32.xlu0 %v4211_v19, %s4354_s12 }
 0x4c1   :  { %v4213_v20 = vpop.eup %4212 }
 0x4c2   :  { %766 = vrot.lane.b32.xlu1 %v4213_v20, %s4354_s12 }
 0x530   :  { %v795_v23 = vpop.permute.xlu0 %794 }
 0x531   :  { %v797_v25 = vmul.f32 %v795_v23, %v792_v21 }
 0x533   :  { %v4693_v26 = vadd.f32 %v798_v24, %v797_v25  ;;  %v1197_v24 = vld [vmem:[#allocation3 + $0x20] sm:$0xff] }
 0x534   :  { %v767_v28 = vpop.permute.xlu1 %766 }
 0x535   :  { %v769_v31 = vmul.f32 %v767_v28, %v764_v27  ;;  %807 = vrot.lane.b32.xlu0 %v4693_v26, %s4354_s12 }
 0x537   :  { %v4698_v32 = vadd.f32 %v770_v29, %v769_v31 }
 0x539   :  { %801 = vrot.lane.b32.xlu1 %v4698_v32, %s4354_s12 }
 0x5a7   :  { %v808_v34 = vpop.permute.xlu0 %807 }
 0x5a8   :  { %811 = vst.msk [vmem:[#allocation5 + $0x30] sm:$0xff] %vm106_vm0, %v808_v34  ;;  %3719 = vmatmul.mubr.msk.f32.vlgmr.msra.gmra.mrb[22].mxu1 %vm106_vm0, %v808_v34 }
 0x5a9   :  { %4038 = vmatpush3.bf16.msra.mxu1 %v4596_v30  ;;  %3740 = vmatprep.mubr.msk.f32.mxu1 %vm4351_vm1, %v4352_v4 }
 0x5aa   :  { %4039 = vmatprep.subr.bf16.mxu1 %v4350_v3 }
 0x5ab   :  { %v802_v35 = vpop.permute.xlu1 %801 }
 0x5ac   :  { %805 = vst.msk [vmem:[#allocation4 + $0x8] sm:$0xff] %vm106_vm0, %v802_v35  ;;  %3708 = vmatmul.mubr.msk.f32.vlgmr.msra.gmra.mrb[2].mxu0 %vm106_vm0, %v802_v35 }
 0x5ad   :  { %4032 = vmatpush3.bf16.msra.mxu0 %v4533_v16  ;;  %4041 = vmatpush3.bf16.msra.mxu1 %v4606_v33 }
 0x5ae   :  { %4033 = vmatprep.subr.bf16.mxu0 %v4350_v3  ;;  %3729 = vmatprep.mubr.msk.f32.mxu0 %vm4351_vm1, %v4352_v4 }
 0x5af   :  { %4048 = vmatprep.subr.bf16.mxu1 %v4350_v3 }
 0x5b1   :  { %4035 = vmatpush3.bf16.msra.mxu0 %v4550_v22 }
 0x5b2   :  { %4042 = vmatprep.subr.bf16.mxu0 %v4350_v3 }
 0x67b   :  { %v952_v36 = vpop.f32.mrb[22].mxu1 }
 0x67c   :  { %v953_v37 = vadd.f32 %v4645_v8, %v952_v36  ;;  %v3720_v38 = vpop.f32.mrb[23].mxu1 }
 0x67e   :  { %994 = vrot.lane.b32.xlu0 %v953_v37, %s4353_s0  ;;  %v986_v43 = vadd.f32 %v985_v42, %v953_v37 }
 0x67f   :  { %v880_v39 = vpop.f32.mrb[2].mxu0 }
 0x680   :  { %v881_v40 = vadd.f32 %v4651_v12, %v880_v39  ;;  %v3709_v41 = vpop.f32.mrb[3].mxu0  ;;  %v3355_v45 = vmul.f32 -1.442695, %v986_v43 }
 0x682   :  { %966 = vrot.lane.b32.xlu1 %v881_v40, %s4353_s0  ;;  %v958_v46 = vadd.f32 %v957_v44, %v881_v40  ;;  %4214 = vpow2.f32 %v3355_v45 }
 0x684   :  { %v3354_v47 = vmul.f32 -1.442695, %v958_v46 }
 0x686   :  { %4216 = vpow2.f32 %v3354_v47 }
 0x68c   :  { %v4215_v48 = vpop.eup %4214 }
 0x68d   :  { %v990_v49 = vadd.f32 1.0, %v4215_v48 }
 0x68f   :  { %4218 = vrcp.f32 %v990_v49 }
 0x690   :  { %v4217_v50 = vpop.eup %4216 }
 0x691   :  { %v962_v51 = vadd.f32 1.0, %v4217_v50 }
 0x693   :  { %4220 = vrcp.f32 %v962_v51 }
 0x699   :  { %v4219_v52 = vpop.eup %4218 }
 0x69a   :  { %v1004_v0 = vsub.f32 1.0, %v4219_v52  ;;  %v1010_v2 = vmul.f32 %v4219_v52, %v4693_v26  ;;  %v1169_v26 = vld [vmem:[#allocation2 + $0x18] sm:$0xff] }
 0x69d   :  { %v4221_v55 = vpop.eup %4220 }
 0x69e   :  { %v976_v7 = vsub.f32 1.0, %v4221_v55  ;;  %v982_v10 = vmul.f32 %v4221_v55, %v4698_v32 }
 0x6f0   :  { %v995_v53 = vpop.permute.xlu0 %994 }
 0x6f1   :  { %v997_v54 = vmul.f32 %v4219_v52, %v995_v53 }
 0x6f3   :  { %999 = vrot.lane.b32.xlu0 %v997_v54, %s4353_s0 }
 0x6f4   :  { %v967_v56 = vpop.permute.xlu1 %966 }
 0x6f5   :  { %v969_v57 = vmul.f32 %v4221_v55, %v967_v56 }
 0x6f7   :  { %971 = vrot.lane.b32.xlu1 %v969_v57, %s4353_s0 }
 0x765   :  { %v1000_v58 = vpop.permute.xlu0 %999 }
 0x766   :  { %v1002_v59 = vadd.f32 %v1000_v58, %v985_v42 }
 0x768   :  { %4222 = vtanh.f32 %v1002_v59 }
 0x769   :  { %v972_v60 = vpop.permute.xlu1 %971 }
 0x76a   :  { %v974_v61 = vadd.f32 %v972_v60, %v957_v44 }
 0x76c   :  { %4224 = vtanh.f32 %v974_v61 }
 0x772   :  { %v4223_v62 = vpop.eup %4222 }
 0x773   :  { %1006 = vrot.lane.b32.xlu0 %v4223_v62, %s4354_s12 }
 0x776   :  { %v4225_v63 = vpop.eup %4224 }
 0x777   :  { %978 = vrot.lane.b32.xlu1 %v4225_v63, %s4354_s12 }
 0x7e5   :  { %v1007_v1 = vpop.permute.xlu0 %1006 }
 0x7e6   :  { %v1009_v5 = vmul.f32 %v1007_v1, %v1004_v0 }
 0x7e8   :  { %v4727_v6 = vadd.f32 %v1010_v2, %v1009_v5  ;;  %v1409_v2 = vld [vmem:[#allocation3 + $0x18] sm:$0xff] }
 0x7e9   :  { %v979_v9 = vpop.permute.xlu1 %978 }
 0x7ea   :  { %v981_v11 = vmul.f32 %v979_v9, %v976_v7  ;;  %1019 = vrot.lane.b32.xlu0 %v4727_v6, %s4354_s12 }
 0x7ec   :  { %v4732_v13 = vadd.f32 %v982_v10, %v981_v11 }
 0x7ee   :  { %1013 = vrot.lane.b32.xlu1 %v4732_v13, %s4354_s12 }
 0x85c   :  { %v1020_v14 = vpop.permute.xlu0 %1019 }
 0x85d   :  { %1023 = vst.msk [vmem:[#allocation5 + $0x28] sm:$0xff] %vm106_vm0, %v1020_v14  ;;  %3741 = vmatmul.mubr.msk.f32.vlgmr.msra.gmra.mrb[24].mxu1 %vm106_vm0, %v1020_v14 }
 0x85e   :  { %4050 = vmatpush3.bf16.msra.mxu1 %v4596_v30  ;;  %3762 = vmatprep.mubr.msk.f32.mxu1 %vm4351_vm1, %v4352_v4 }
 0x85f   :  { %4051 = vmatprep.subr.bf16.mxu1 %v4350_v3 }
 0x860   :  { %v1014_v15 = vpop.permute.xlu1 %1013 }
 0x861   :  { %1017 = vst.msk [vmem:[#allocation4 + $0x10] sm:$0xff] %vm106_vm0, %v1014_v15  ;;  %3730 = vmatmul.mubr.msk.f32.vlgmr.msra.gmra.mrb[4].mxu0 %vm106_vm0, %v1014_v15 }
 0x862   :  { %4044 = vmatpush3.bf16.msra.mxu0 %v4533_v16  ;;  %4053 = vmatpush3.bf16.msra.mxu1 %v4606_v33 }
 0x863   :  { %4045 = vmatprep.subr.bf16.mxu0 %v4350_v3  ;;  %3751 = vmatprep.mubr.msk.f32.mxu0 %vm4351_vm1, %v4352_v4 }
 0x864   :  { %4060 = vmatprep.subr.bf16.mxu1 %v4350_v3 }
 0x866   :  { %4047 = vmatpush3.bf16.msra.mxu0 %v4550_v22 }
 0x867   :  { %4054 = vmatprep.subr.bf16.mxu0 %v4350_v3 }
 0x930   :  { %v1164_v17 = vpop.f32.mrb[24].mxu1 }
 0x931   :  { %v1165_v18 = vadd.f32 %v4645_v8, %v1164_v17  ;;  %v3742_v19 = vpop.f32.mrb[25].mxu1 }
 0x933   :  { %1206 = vrot.lane.b32.xlu0 %v1165_v18, %s4353_s0  ;;  %v1198_v25 = vadd.f32 %v1197_v24, %v1165_v18 }
 0x934   :  { %v1092_v20 = vpop.f32.mrb[4].mxu0 }
 0x935   :  { %v1093_v21 = vadd.f32 %v4651_v12, %v1092_v20  ;;  %v3731_v23 = vpop.f32.mrb[5].mxu0  ;;  %v3359_v27 = vmul.f32 -1.442695, %v1198_v25 }
 0x937   :  { %1178 = vrot.lane.b32.xlu1 %v1093_v21, %s4353_s0  ;;  %v1170_v28 = vadd.f32 %v1169_v26, %v1093_v21  ;;  %4226 = vpow2.f32 %v3359_v27 }
 0x939   :  { %v3358_v29 = vmul.f32 -1.442695, %v1170_v28 }
 0x93b   :  { %4228 = vpow2.f32 %v3358_v29 }
 0x941   :  { %v4227_v31 = vpop.eup %4226 }
 0x942   :  { %v1202_v32 = vadd.f32 1.0, %v4227_v31 }
 0x944   :  { %4230 = vrcp.f32 %v1202_v32 }
 0x945   :  { %v4229_v34 = vpop.eup %4228 }
 0x946   :  { %v1174_v35 = vadd.f32 1.0, %v4229_v34 }
 0x948   :  { %4232 = vrcp.f32 %v1174_v35 }
 0x94e   :  { %v4231_v36 = vpop.eup %4230 }
 0x94f   :  { %v1216_v48 = vsub.f32 1.0, %v4231_v36  ;;  %v1222_v50 = vmul.f32 %v4231_v36, %v4727_v6  ;;  %v1381_v6 = vld [vmem:[#allocation2 + $0x20] sm:$0xff] }
 0x952   :  { %v4233_v39 = vpop.eup %4232 }
 0x953   :  { %v1188_v53 = vsub.f32 1.0, %v4233_v39  ;;  %v1194_v55 = vmul.f32 %v4233_v39, %v4732_v13 }
 0x9a5   :  { %v1207_v37 = vpop.permute.xlu0 %1206 }
 0x9a6   :  { %v1209_v38 = vmul.f32 %v4231_v36, %v1207_v37 }
 0x9a8   :  { %1211 = vrot.lane.b32.xlu0 %v1209_v38, %s4353_s0 }
 0x9a9   :  { %v1179_v40 = vpop.permute.xlu1 %1178 }
 0x9aa   :  { %v1181_v41 = vmul.f32 %v4233_v39, %v1179_v40 }
 0x9ac   :  { %1183 = vrot.lane.b32.xlu1 %v1181_v41, %s4353_s0 }
 0xa1a   :  { %v1212_v42 = vpop.permute.xlu0 %1211 }
 0xa1b   :  { %v1214_v43 = vadd.f32 %v1212_v42, %v1197_v24 }
 0xa1d   :  { %4234 = vtanh.f32 %v1214_v43 }
 0xa1e   :  { %v1184_v44 = vpop.permute.xlu1 %1183 }
 0xa1f   :  { %v1186_v45 = vadd.f32 %v1184_v44, %v1169_v26 }
 0xa21   :  { %4236 = vtanh.f32 %v1186_v45 }
 0xa27   :  { %v4235_v46 = vpop.eup %4234 }
 0xa28   :  { %1218 = vrot.lane.b32.xlu0 %v4235_v46, %s4354_s12 }
 0xa2b   :  { %v4237_v47 = vpop.eup %4236 }
 0xa2c   :  { %1190 = vrot.lane.b32.xlu1 %v4237_v47, %s4354_s12 }
 0xa9a   :  { %v1219_v49 = vpop.permute.xlu0 %1218 }
 0xa9b   :  { %v1221_v51 = vmul.f32 %v1219_v49, %v1216_v48 }
 0xa9d   :  { %v4761_v52 = vadd.f32 %v1222_v50, %v1221_v51  ;;  %v1621_v50 = vld [vmem:[#allocation3 + $0x10] sm:$0xff] }
 0xa9e   :  { %v1191_v54 = vpop.permute.xlu1 %1190 }
 0xa9f   :  { %v1193_v56 = vmul.f32 %v1191_v54, %v1188_v53  ;;  %1231 = vrot.lane.b32.xlu0 %v4761_v52, %s4354_s12 }
 0xaa1   :  { %v4766_v57 = vadd.f32 %v1194_v55, %v1193_v56 }
 0xaa3   :  { %1225 = vrot.lane.b32.xlu1 %v4766_v57, %s4354_s12 }
 0xb11   :  { %v1232_v58 = vpop.permute.xlu0 %1231 }
 0xb12   :  { %1235 = vst.msk [vmem:[#allocation5 + $0x20] sm:$0xff] %vm106_vm0, %v1232_v58  ;;  %3763 = vmatmul.mubr.msk.f32.vlgmr.msra.gmra.mrb[26].mxu1 %vm106_vm0, %v1232_v58 }
 0xb13   :  { %4062 = vmatpush3.bf16.msra.mxu1 %v4596_v30  ;;  %3784 = vmatprep.mubr.msk.f32.mxu1 %vm4351_vm1, %v4352_v4 }
 0xb14   :  { %4063 = vmatprep.subr.bf16.mxu1 %v4350_v3 }
 0xb15   :  { %v1226_v59 = vpop.permute.xlu1 %1225 }
 0xb16   :  { %1229 = vst.msk [vmem:[#allocation4 + $0x18] sm:$0xff] %vm106_vm0, %v1226_v59  ;;  %3752 = vmatmul.mubr.msk.f32.vlgmr.msra.gmra.mrb[6].mxu0 %vm106_vm0, %v1226_v59 }
 0xb17   :  { %4056 = vmatpush3.bf16.msra.mxu0 %v4533_v16  ;;  %4065 = vmatpush3.bf16.msra.mxu1 %v4606_v33 }
 0xb18   :  { %4057 = vmatprep.subr.bf16.mxu0 %v4350_v3  ;;  %3773 = vmatprep.mubr.msk.f32.mxu0 %vm4351_vm1, %v4352_v4 }
 0xb19   :  { %4072 = vmatprep.subr.bf16.mxu1 %v4350_v3 }
 0xb1b   :  { %4059 = vmatpush3.bf16.msra.mxu0 %v4550_v22 }
 0xb1c   :  { %4066 = vmatprep.subr.bf16.mxu0 %v4350_v3 }
 0xbe5   :  { %v1376_v60 = vpop.f32.mrb[26].mxu1 }
 0xbe6   :  { %v1377_v61 = vadd.f32 %v4645_v8, %v1376_v60  ;;  %v3764_v62 = vpop.f32.mrb[27].mxu1 }
 0xbe8   :  { %1418 = vrot.lane.b32.xlu0 %v1377_v61, %s4353_s0  ;;  %v1410_v5 = vadd.f32 %v1409_v2, %v1377_v61 }
 0xbe9   :  { %v1304_v63 = vpop.f32.mrb[6].mxu0 }
 0xbea   :  { %v1305_v0 = vadd.f32 %v4651_v12, %v1304_v63  ;;  %v3753_v1 = vpop.f32.mrb[7].mxu0  ;;  %v3363_v7 = vmul.f32 -1.442695, %v1410_v5 }
 0xbec   :  { %1390 = vrot.lane.b32.xlu1 %v1305_v0, %s4353_s0  ;;  %v1382_v9 = vadd.f32 %v1381_v6, %v1305_v0  ;;  %4238 = vpow2.f32 %v3363_v7 }
 0xbee   :  { %v3362_v10 = vmul.f32 -1.442695, %v1382_v9 }
 0xbf0   :  { %4240 = vpow2.f32 %v3362_v10 }
 0xbf6   :  { %v4239_v11 = vpop.eup %4238 }
 0xbf7   :  { %v1414_v13 = vadd.f32 1.0, %v4239_v11 }
 0xbf9   :  { %4242 = vrcp.f32 %v1414_v13 }
 0xbfa   :  { %v4241_v14 = vpop.eup %4240 }
 0xbfb   :  { %v1386_v15 = vadd.f32 1.0, %v4241_v14 }
 0xbfd   :  { %4244 = vrcp.f32 %v1386_v15 }
 0xc03   :  { %v4243_v17 = vpop.eup %4242 }
 0xc04   :  { %v1428_v31 = vsub.f32 1.0, %v4243_v17  ;;  %v1434_v34 = vmul.f32 %v4243_v17, %v4761_v52  ;;  %v1593_v52 = vld [vmem:[#allocation2 + $0x28] sm:$0xff] }
 0xc07   :  { %v4245_v20 = vpop.eup %4244 }
 0xc08   :  { %v1400_v37 = vsub.f32 1.0, %v4245_v20  ;;  %v1406_v39 = vmul.f32 %v4245_v20, %v4766_v57 }
 0xc5a   :  { %v1419_v18 = vpop.permute.xlu0 %1418 }
 0xc5b   :  { %v1421_v19 = vmul.f32 %v4243_v17, %v1419_v18 }
 0xc5d   :  { %1423 = vrot.lane.b32.xlu0 %v1421_v19, %s4353_s0 }
 0xc5e   :  { %v1391_v21 = vpop.permute.xlu1 %1390 }
 0xc5f   :  { %v1393_v23 = vmul.f32 %v4245_v20, %v1391_v21 }
 0xc61   :  { %1395 = vrot.lane.b32.xlu1 %v1393_v23, %s4353_s0 }
 0xccf   :  { %v1424_v24 = vpop.permute.xlu0 %1423 }
 0xcd0   :  { %v1426_v25 = vadd.f32 %v1424_v24, %v1409_v2 }
 0xcd2   :  { %4246 = vtanh.f32 %v1426_v25 }
 0xcd3   :  { %v1396_v26 = vpop.permute.xlu1 %1395 }
 0xcd4   :  { %v1398_v27 = vadd.f32 %v1396_v26, %v1381_v6 }
 0xcd6   :  { %4248 = vtanh.f32 %v1398_v27 }
 0xcdc   :  { %v4247_v28 = vpop.eup %4246 }
 0xcdd   :  { %1430 = vrot.lane.b32.xlu0 %v4247_v28, %s4354_s12 }
 0xce0   :  { %v4249_v29 = vpop.eup %4248 }
 0xce1   :  { %1402 = vrot.lane.b32.xlu1 %v4249_v29, %s4354_s12 }
 0xd4f   :  { %v1431_v32 = vpop.permute.xlu0 %1430 }
 0xd50   :  { %v1433_v35 = vmul.f32 %v1431_v32, %v1428_v31  ;;  %v1805_v32 = vld [vmem:[#allocation2 + $0x30] sm:$0xff] }
 0xd52   :  { %v4795_v36 = vadd.f32 %v1434_v34, %v1433_v35 }
 0xd53   :  { %v1403_v38 = vpop.permute.xlu1 %1402 }
 0xd54   :  { %v1405_v40 = vmul.f32 %v1403_v38, %v1400_v37  ;;  %1443 = vrot.lane.b32.xlu0 %v4795_v36, %s4354_s12 }
 0xd56   :  { %v4800_v41 = vadd.f32 %v1406_v39, %v1405_v40 }
 0xd58   :  { %1437 = vrot.lane.b32.xlu1 %v4800_v41, %s4354_s12 }
 0xdc6   :  { %v1444_v42 = vpop.permute.xlu0 %1443 }
 0xdc7   :  { %1447 = vst.msk [vmem:[#allocation5 + $0x18] sm:$0xff] %vm106_vm0, %v1444_v42  ;;  %3785 = vmatmul.mubr.msk.f32.vlgmr.msra.gmra.mrb[28].mxu1 %vm106_vm0, %v1444_v42 }
 0xdc8   :  { %4074 = vmatpush3.bf16.msra.mxu1 %v4596_v30  ;;  %3806 = vmatprep.mubr.msk.f32.mxu1 %vm4351_vm1, %v4352_v4 }
 0xdc9   :  { %4075 = vmatprep.subr.bf16.mxu1 %v4350_v3 }
 0xdca   :  { %v1438_v43 = vpop.permute.xlu1 %1437 }
 0xdcb   :  { %1441 = vst.msk [vmem:[#allocation4 + $0x20] sm:$0xff] %vm106_vm0, %v1438_v43  ;;  %3774 = vmatmul.mubr.msk.f32.vlgmr.msra.gmra.mrb[8].mxu0 %vm106_vm0, %v1438_v43 }
 0xdcc   :  { %4068 = vmatpush3.bf16.msra.mxu0 %v4533_v16  ;;  %4077 = vmatpush3.bf16.msra.mxu1 %v4606_v33 }
 0xdcd   :  { %4069 = vmatprep.subr.bf16.mxu0 %v4350_v3  ;;  %3795 = vmatprep.mubr.msk.f32.mxu0 %vm4351_vm1, %v4352_v4 }
 0xdce   :  { %4084 = vmatprep.subr.bf16.mxu1 %v4350_v3 }
 0xdd0   :  { %4071 = vmatpush3.bf16.msra.mxu0 %v4550_v22 }
 0xdd1   :  { %4078 = vmatprep.subr.bf16.mxu0 %v4350_v3 }
 0xe9a   :  { %v1588_v44 = vpop.f32.mrb[28].mxu1 }
 0xe9b   :  { %v1589_v45 = vadd.f32 %v4645_v8, %v1588_v44  ;;  %v3786_v46 = vpop.f32.mrb[29].mxu1 }
 0xe9d   :  { %1630 = vrot.lane.b32.xlu0 %v1589_v45, %s4353_s0  ;;  %v1622_v51 = vadd.f32 %v1621_v50, %v1589_v45 }
 0xe9e   :  { %v1516_v47 = vpop.f32.mrb[8].mxu0 }
 0xe9f   :  { %v1517_v48 = vadd.f32 %v4651_v12, %v1516_v47  ;;  %v3775_v49 = vpop.f32.mrb[9].mxu0  ;;  %v3367_v53 = vmul.f32 -1.442695, %v1622_v51 }
 0xea1   :  { %1602 = vrot.lane.b32.xlu1 %v1517_v48, %s4353_s0  ;;  %v1594_v54 = vadd.f32 %v1593_v52, %v1517_v48  ;;  %4250 = vpow2.f32 %v3367_v53 }
 0xea3   :  { %v3366_v55 = vmul.f32 -1.442695, %v1594_v54 }
 0xea5   :  { %4252 = vpow2.f32 %v3366_v55 }
 0xeab   :  { %v4251_v56 = vpop.eup %4250 }
 0xeac   :  { %v1626_v57 = vadd.f32 1.0, %v4251_v56 }
 0xeae   :  { %4254 = vrcp.f32 %v1626_v57 }
 0xeaf   :  { %v4253_v58 = vpop.eup %4252 }
 0xeb0   :  { %v1598_v59 = vadd.f32 1.0, %v4253_v58 }
 0xeb2   :  { %4256 = vrcp.f32 %v1598_v59 }
 0xeb8   :  { %v4255_v60 = vpop.eup %4254 }
 0xeb9   :  { %v1640_v11 = vsub.f32 1.0, %v4255_v60  ;;  %v1646_v14 = vmul.f32 %v4255_v60, %v4795_v36 }
 0xebc   :  { %v4257_v63 = vpop.eup %4256 }
 0xebd   :  { %v1612_v18 = vsub.f32 1.0, %v4257_v63  ;;  %v1618_v20 = vmul.f32 %v4257_v63, %v4800_v41 }
 0xf0f   :  { %v1631_v61 = vpop.permute.xlu0 %1630 }
 0xf10   :  { %v1633_v62 = vmul.f32 %v4255_v60, %v1631_v61 }
 0xf12   :  { %1635 = vrot.lane.b32.xlu0 %v1633_v62, %s4353_s0 }
 0xf13   :  { %v1603_v0 = vpop.permute.xlu1 %1602 }
 0xf14   :  { %v1605_v1 = vmul.f32 %v4257_v63, %v1603_v0 }
 0xf16   :  { %1607 = vrot.lane.b32.xlu1 %v1605_v1, %s4353_s0 }
 0xf84   :  { %v1636_v2 = vpop.permute.xlu0 %1635 }
 0xf85   :  { %v1638_v5 = vadd.f32 %v1636_v2, %v1621_v50 }
 0xf87   :  { %4258 = vtanh.f32 %v1638_v5 }
 0xf88   :  { %v1608_v6 = vpop.permute.xlu1 %1607 }
 0xf89   :  { %v1610_v7 = vadd.f32 %v1608_v6, %v1593_v52 }
 0xf8b   :  { %4260 = vtanh.f32 %v1610_v7 }
 0xf91   :  { %v4259_v9 = vpop.eup %4258 }
 0xf92   :  { %1642 = vrot.lane.b32.xlu0 %v4259_v9, %s4354_s12  ;;  %v2044_v9 = vld [vmem:[#allocation3] sm:$0xff] }
 0xf95   :  { %v4261_v10 = vpop.eup %4260 }
 0xf96   :  { %1614 = vrot.lane.b32.xlu1 %v4261_v10, %s4354_s12 }
0x1004   :  { %v1643_v13 = vpop.permute.xlu0 %1642 }
0x1005   :  { %v1645_v15 = vmul.f32 %v1643_v13, %v1640_v11  ;;  %v2017_v11 = vld [vmem:[#allocation2 + $0x38] sm:$0xff] }
0x1007   :  { %v4829_v17 = vadd.f32 %v1646_v14, %v1645_v15 }
0x1008   :  { %v1615_v19 = vpop.permute.xlu1 %1614 }
0x1009   :  { %v1617_v21 = vmul.f32 %v1615_v19, %v1612_v18  ;;  %1655 = vrot.lane.b32.xlu0 %v4829_v17, %s4354_s12 }
0x100b   :  { %v4834_v23 = vadd.f32 %v1618_v20, %v1617_v21 }
0x100d   :  { %1649 = vrot.lane.b32.xlu1 %v4834_v23, %s4354_s12 }
0x107b   :  { %v1656_v24 = vpop.permute.xlu0 %1655 }
0x107c   :  { %1659 = vst.msk [vmem:[#allocation5 + $0x10] sm:$0xff] %vm106_vm0, %v1656_v24  ;;  %3807 = vmatmul.mubr.msk.f32.vlgmr.msra.gmra.mrb[30].mxu1 %vm106_vm0, %v1656_v24 }
0x107d   :  { %4086 = vmatpush3.bf16.msra.mxu1 %v4596_v30  ;;  %3828 = vmatprep.mubr.msk.f32.mxu1 %vm4351_vm1, %v4352_v4 }
0x107e   :  { %4087 = vmatprep.subr.bf16.mxu1 %v4350_v3 }
0x107f   :  { %v1650_v25 = vpop.permute.xlu1 %1649 }
0x1080   :  { %1653 = vst.msk [vmem:[#allocation4 + $0x28] sm:$0xff] %vm106_vm0, %v1650_v25  ;;  %3796 = vmatmul.mubr.msk.f32.vlgmr.msra.gmra.mrb[10].mxu0 %vm106_vm0, %v1650_v25 }
0x1081   :  { %4080 = vmatpush3.bf16.msra.mxu0 %v4533_v16  ;;  %4089 = vmatpush3.bf16.msra.mxu1 %v4606_v33  ;;  %v1833_v33 = vld [vmem:[#allocation3 + $0x8] sm:$0xff] }
0x1082   :  { %4081 = vmatprep.subr.bf16.mxu0 %v4350_v3  ;;  %3817 = vmatprep.mubr.msk.f32.mxu0 %vm4351_vm1, %v4352_v4 }
0x1085   :  { %4083 = vmatpush3.bf16.msra.mxu0 %v4550_v22 }
0x1086   :  { %4090 = vmatprep.subr.bf16.mxu0 %v4350_v3 }
0x114f   :  { %v1800_v30 = vpop.f32.mrb[30].mxu1 }
0x1150   :  { %v1801_v26 = vadd.f32 %v4645_v8, %v1800_v30  ;;  %v3808_v27 = vpop.f32.mrb[31].mxu1 }
0x1152   :  { %1842 = vrot.lane.b32.xlu0 %v1801_v26, %s4353_s0  ;;  %v1834_v31 = vadd.f32 %v1833_v33, %v1801_v26 }
0x1153   :  { %v1728_v28 = vpop.f32.mrb[10].mxu0 }
0x1154   :  { %v1729_v16 = vadd.f32 %v4651_v12, %v1728_v28  ;;  %v3797_v29 = vpop.f32.mrb[11].mxu0  ;;  %v3371_v34 = vmul.f32 -1.442695, %v1834_v31 }
0x1155   :  { %v2087_v29 = vld [vmem:[%s5300_s3 + $0x8] sm:$0xff] }
0x1156   :  { %1814 = vrot.lane.b32.xlu1 %v1729_v16, %s4353_s0  ;;  %v1806_v35 = vadd.f32 %v1805_v32, %v1729_v16  ;;  %4262 = vpow2.f32 %v3371_v34  ;;  %v2086_v16 = vld [vmem:[%s5300_s3] sm:$0xff] }
0x1157   :  { %v4091_v31 = vpack.c.bf16 %v2087_v29, %v2086_v16  ;;  %v2943_v16 = vld [vmem:[%s5259_s23 + $0x18] sm:$0xff]  ;;  %v2235_v29 = vld [vmem:[#allocation4] sm:$0xff] }
0x1158   :  { %v3370_v22 = vmul.f32 -1.442695, %v1806_v35 }
0x115a   :  { %4264 = vpow2.f32 %v3370_v22 }
0x1160   :  { %v4263_v36 = vpop.eup %4262 }
0x1161   :  { %v1838_v37 = vadd.f32 1.0, %v4263_v36  ;;  %v2255_v36 = vld [vmem:[%s5301_s7] sm:$0xff] }
0x1163   :  { %4266 = vrcp.f32 %v1838_v37  ;;  %v2256_v37 = vld [vmem:[%s5301_s7 + $0x8] sm:$0xff] }
0x1164   :  { %v4265_v38 = vpop.eup %4264 }
0x1165   :  { %v1810_v39 = vadd.f32 1.0, %v4265_v38  ;;  %v4102_v38 = vpack.c.bf16 %v2256_v37, %v2255_v36  ;;  %v2238_v36 = vld [vmem:[#allocation4 + $0x18] sm:$0xff]  ;;  %v2239_v37 = vld [vmem:[#allocation4 + $0x20] sm:$0xff] }
0x1167   :  { %4268 = vrcp.f32 %v1810_v39  ;;  %4103 = vmatprep.subr.bf16.mxu1 %v4102_v38  ;;  %v2257_v39 = vld [vmem:[%s5301_s7 + $0x10] sm:$0xff] }
0x116d   :  { %v4267_v40 = vpop.eup %4266 }
0x116e   :  { %v1852_v52 = vsub.f32 1.0, %v4267_v40  ;;  %v1858_v54 = vmul.f32 %v4267_v40, %v4829_v17 }
0x1171   :  { %v4269_v43 = vpop.eup %4268 }
0x1172   :  { %v1824_v57 = vsub.f32 1.0, %v4269_v43  ;;  %v1830_v59 = vmul.f32 %v4269_v43, %v4834_v23 }
0x11c4   :  { %v1843_v41 = vpop.permute.xlu0 %1842 }
0x11c5   :  { %v1845_v42 = vmul.f32 %v4267_v40, %v1843_v41  ;;  %v2258_v40 = vld [vmem:[%s5301_s7 + $0x18] sm:$0xff] }
0x11c6   :  { %v4106_v41 = vpack.c.bf16 %v2258_v40, %v2257_v39 }
0x11c7   :  { %1847 = vrot.lane.b32.xlu0 %v1845_v42, %s4353_s0 }
0x11c8   :  { %v1815_v44 = vpop.permute.xlu1 %1814 }
0x11c9   :  { %v1817_v45 = vmul.f32 %v4269_v43, %v1815_v44 }
0x11cb   :  { %1819 = vrot.lane.b32.xlu1 %v1817_v45, %s4353_s0 }
0x1239   :  { %v1848_v46 = vpop.permute.xlu0 %1847 }
0x123a   :  { %v1850_v47 = vadd.f32 %v1848_v46, %v1833_v33  ;;  %v2088_v33 = vld [vmem:[%s5300_s3 + $0x10] sm:$0xff]  ;;  %v2251_v46 = vld [vmem:[%s5302_s10] sm:$0xff] }
0x123c   :  { %4270 = vtanh.f32 %v1850_v47  ;;  %v2252_v47 = vld [vmem:[%s5302_s10 + $0x8] sm:$0xff] }
0x123d   :  { %v1820_v48 = vpop.permute.xlu1 %1819 }
0x123e   :  { %v1822_v49 = vadd.f32 %v1820_v48, %v1805_v32  ;;  %v2089_v32 = vld [vmem:[%s5300_s3 + $0x18] sm:$0xff] }
0x123f   :  { %v4094_v35 = vpack.c.bf16 %v2089_v32, %v2088_v33  ;;  %v2618_v33 = vld [vmem:[%s5260_s2 + $0x8] sm:$0xff] }
0x1240   :  { %4272 = vtanh.f32 %v1822_v49 }
0x1246   :  { %v4271_v50 = vpop.eup %4270 }
0x1247   :  { %1854 = vrot.lane.b32.xlu0 %v4271_v50, %s4354_s12  ;;  %v4110_v50 = vpack.c.bf16 %v2252_v47, %v2251_v46  ;;  %v3395_v46 = vld [vmem:[%s5263_s17] ss:$0 sm:$0xff] }
0x1248   :  { %v3394_v47 = vld [vmem:[%s5264_s15] ss:$0 sm:$0xff] }
0x124a   :  { %v4273_v51 = vpop.eup %4272 }
0x124b   :  { %1826 = vrot.lane.b32.xlu1 %v4273_v51, %s4354_s12 }
0x12b9   :  { %v1855_v53 = vpop.permute.xlu0 %1854 }
0x12ba   :  { %v1857_v55 = vmul.f32 %v1855_v53, %v1852_v52 }
0x12bc   :  { %v4862_v56 = vadd.f32 %v1858_v54, %v1857_v55  ;;  %v2082_v55 = vld [vmem:[%s5255_s11] sm:$0xff] }
0x12bd   :  { %v1827_v58 = vpop.permute.xlu1 %1826 }
0x12be   :  { %v1829_v60 = vmul.f32 %v1827_v58, %v1824_v57  ;;  %1867 = vrot.lane.b32.xlu0 %v4862_v56, %s4354_s12  ;;  %v2084_v58 = vld [vmem:[%s5255_s11 + $0x10] sm:$0xff] }
0x12c0   :  { %v4867_v61 = vadd.f32 %v1830_v59, %v1829_v60  ;;  %v2085_v59 = vld [vmem:[%s5255_s11 + $0x18] sm:$0xff] }
0x12c2   :  { %1861 = vrot.lane.b32.xlu1 %v4867_v61, %s4354_s12 }
0x1330   :  { %v1868_v62 = vpop.permute.xlu0 %1867 }
0x1331   :  { %1871 = vst.msk [vmem:[#allocation5 + $0x8] sm:$0xff] %vm106_vm0, %v1868_v62  ;;  %3829 = vmatmul.mubr.msk.f32.vlgmr.msra.gmra.mrb[32].mxu1 %vm106_vm0, %v1868_v62  ;;  %v2533_v62 = vld [vmem:[%s5256_s16] sm:$0xff] }
0x1332   :  { %4105 = vmatpush3.bf16.msra.mxu1 %v4102_v38  ;;  %v2240_v38 = vld [vmem:[#allocation4 + $0x28] sm:$0xff] }
0x1333   :  { %4107 = vmatprep.subr.bf16.mxu1 %v4106_v41 }
0x1334   :  { %v1862_v63 = vpop.permute.xlu1 %1861 }
0x1335   :  { %1865 = vst.msk [vmem:[#allocation4 + $0x30] sm:$0xff] %vm106_vm0, %v1862_v63  ;;  %3818 = vmatmul.mubr.msk.f32.vlgmr.msra.gmra.mrb[12].mxu0 %vm106_vm0, %v1862_v63  ;;  %v2534_v63 = vld [vmem:[%s5256_s16 + $0x8] sm:$0xff] }
0x1336   :  { %3839 = vmatprep.mubr.msk.f32.mxu0 %vm4351_vm1, %v4352_v4  ;;  %4092 = vmatpush3.bf16.msra.mxu0 %v4091_v31  ;;  %v2619_v31 = vld [vmem:[%s5260_s2 + $0x10] sm:$0xff] }
0x1337   :  { %4093 = vmatprep.subr.bf16.mxu0 %v4350_v3  ;;  %4109 = vmatpush3.bf16.msra.mxu1 %v4106_v41  ;;  %v33_v41 = vstv %s5261_s21 }
0x1338   :  { %4111 = vmatprep.subr.bf16.mxu1 %v4110_v50  ;;  %34 = vst [vmem:[#allocation6] sm:$0x1] %v33_v41 }
0x133a   :  { %4095 = vmatpush3.bf16.msra.mxu0 %v4094_v35  ;;  %v2237_v35 = vld [vmem:[#allocation4 + $0x10] sm:$0xff] }
0x133b   :  { %4096 = vmatprep.subr.bf16.mxu0 %v4350_v3 }
0x133c   :  { %v2241_v39 = vld [vmem:[#allocation4 + $0x30] sm:$0xff] }
0x1404   :  { %v2012_v0 = vpop.f32.mrb[32].mxu1 }
0x1405   :  { %v2013_v1 = vadd.f32 %v4645_v8, %v2012_v0  ;;  %v3830_v2 = vpop.f32.mrb[33].mxu1 }
0x1406   :  { %v2253_v2 = vld [vmem:[%s5302_s10 + $0x10] sm:$0xff] }
0x1407   :  { %2053 = vrot.lane.b32.xlu0 %v2013_v1, %s4353_s0  ;;  %v2045_v10 = vadd.f32 %v2044_v9, %v2013_v1  ;;  %v4119_v1 = vpack.c.bf16 %v2534_v63, %v2533_v62 }
0x1408   :  { %v1940_v5 = vpop.f32.mrb[12].mxu0 }
0x1409   :  { %v1941_v6 = vadd.f32 %v4651_v12, %v1940_v5  ;;  %v3819_v7 = vpop.f32.mrb[13].mxu0  ;;  %v3375_v13 = vmul.f32 -1.442695, %v2045_v10  ;;  %v2254_v5 = vld [vmem:[%s5302_s10 + $0x18] sm:$0xff]  ;;  %v2621_v10 = vld [vmem:[%s5257_s18] sm:$0xff] }
0x140a   :  { %v2536_v7 = vld [vmem:[%s5256_s16 + $0x18] sm:$0xff] }
0x140b   :  { %2026 = vrot.lane.b32.xlu1 %v1941_v6, %s4353_s0  ;;  %v2018_v14 = vadd.f32 %v2017_v11, %v1941_v6  ;;  %4274 = vpow2.f32 %v3375_v13  ;;  %v2535_v6 = vld [vmem:[%s5256_s16 + $0x10] sm:$0xff]  ;;  %v4969_v13 = vld [vmem:[#allocation5 + $0x8] sm:$0xff] }
0x140d   :  { %v3374_v15 = vmul.f32 -1.442695, %v2018_v14  ;;  %v4114_v14 = vpack.c.bf16 %v2254_v5, %v2253_v2 }
0x140f   :  { %4276 = vpow2.f32 %v3374_v15  ;;  %v4973_v15 = vld [vmem:[#allocation5 + $0x10] sm:$0xff] }
0x1415   :  { %v4275_v17 = vpop.eup %4274 }
0x1416   :  { %v2049_v18 = vadd.f32 1.0, %v4275_v17  ;;  %v4122_v17 = vpack.c.bf16 %v2536_v7, %v2535_v6 }
0x1418   :  { %4278 = vrcp.f32 %v2049_v18 }
0x1419   :  { %v4277_v8 = vpop.eup %4276 }
0x141a   :  { %v2022_v19 = vadd.f32 1.0, %v4277_v8  ;;  %v2623_v8 = vld [vmem:[%s5257_s18 + $0x10] sm:$0xff] }
0x141c   :  { %4280 = vrcp.f32 %v2022_v19  ;;  %v2624_v19 = vld [vmem:[%s5257_s18 + $0x18] sm:$0xff] }
0x1422   :  { %v4279_v20 = vpop.eup %4278 }
0x1423   :  { %v2063_v42 = vsub.f32 1.0, %v4279_v20  ;;  %v2069_v44 = vmul.f32 %v4279_v20, %v4862_v56  ;;  %v2083_v56 = vld [vmem:[%s5255_s11 + $0x8] sm:$0xff] }
0x1424   :  { %v4097_v57 = vpack.c.bf16 %v2083_v56, %v2082_v55 }
0x1426   :  { %v4281_v23 = vpop.eup %4280 }
0x1427   :  { %v2036_v49 = vsub.f32 1.0, %v4281_v23  ;;  %v2042_v52 = vmul.f32 %v4281_v23, %v4867_v61  ;;  %v4100_v61 = vpack.c.bf16 %v2085_v59, %v2084_v58 }
0x1479   :  { %v2054_v21 = vpop.permute.xlu0 %2053 }
0x147a   :  { %v2056_v12 = vmul.f32 %v4279_v20, %v2054_v21  ;;  %v4986_v20 = vld [vmem:[#allocation5 + $0x18] sm:$0xff]  ;;  %v4990_v21 = vld [vmem:[#allocation5 + $0x20] sm:$0xff] }
0x147c   :  { %2058 = vrot.lane.b32.xlu0 %v2056_v12, %s4353_s0  ;;  %v2940_v12 = vld [vmem:[%s5259_s23] sm:$0xff] }
0x147d   :  { %v2027_v24 = vpop.permute.xlu1 %2026 }
0x147e   :  { %v2029_v25 = vmul.f32 %v4281_v23, %v2027_v24  ;;  %v2941_v23 = vld [vmem:[%s5259_s23 + $0x8] sm:$0xff] }
0x147f   :  { %v5004_v24 = vld [vmem:[#allocation5 + $0x28] sm:$0xff] }
0x1480   :  { %2031 = vrot.lane.b32.xlu1 %v2029_v25, %s4353_s0  ;;  %v2617_v25 = vld [vmem:[%s5260_s2] sm:$0xff] }
0x14ee   :  { %v2059_v30 = vpop.permute.xlu0 %2058 }
0x14ef   :  { %v2061_v26 = vadd.f32 %v2059_v30, %v2044_v9  ;;  %v5011_v30 = vld [vmem:[#allocation5 + $0x30] sm:$0xff] }
0x14f1   :  { %4282 = vtanh.f32 %v2061_v26  ;;  %v4132_v26 = vpack.c.bf16 %v2941_v23, %v2940_v12 }
0x14f2   :  { %v2032_v27 = vpop.permute.xlu1 %2031 }
0x14f3   :  { %v2034_v28 = vadd.f32 %v2032_v27, %v2017_v11  ;;  %v2622_v11 = vld [vmem:[%s5257_s18 + $0x8] sm:$0xff]  ;;  %v5016_v27 = vld [vmem:[#allocation5 + $0x38] sm:$0xff] }
0x14f4   :  { %v4124_v18 = vpack.c.bf16 %v2622_v11, %v2621_v10 }
0x14f5   :  { %4284 = vtanh.f32 %v2034_v28  ;;  %v2942_v28 = vld [vmem:[%s5259_s23 + $0x10] sm:$0xff] }
0x14f6   :  { %v4136_v32 = vpack.c.bf16 %v2943_v16, %v2942_v28 }
0x14fb   :  { %v4283_v34 = vpop.eup %4282 }
0x14fc   :  { %2065 = vrot.lane.b32.xlu0 %v4283_v34, %s4354_s12  ;;  %v2236_v34 = vld [vmem:[#allocation4 + $0x8] sm:$0xff] }
0x14ff   :  { %v4285_v22 = vpop.eup %4284 }
0x1500   :  { %2038 = vrot.lane.b32.xlu1 %v4285_v22, %s4354_s12  ;;  %v2620_v22 = vld [vmem:[%s5260_s2 + $0x18] sm:$0xff] }
0x156e   :  { %v2066_v43 = vpop.permute.xlu0 %2065 }
0x156f   :  { %v2068_v45 = vmul.f32 %v2066_v43, %v2063_v42 }
0x1571   :  { %v2070_v48 = vadd.f32 %v2069_v44, %v2068_v45 }
0x1572   :  { %v2039_v51 = vpop.permute.xlu1 %2038 }
0x1573   :  { %v2041_v53 = vmul.f32 %v2039_v51, %v2036_v49  ;;  %2078 = vrot.lane.b32.xlu0 %v2070_v48, %s4354_s12 }
0x1575   :  { %v2043_v54 = vadd.f32 %v2042_v52, %v2041_v53 }
0x1577   :  { %2072 = vrot.lane.b32.xlu1 %v2043_v54, %s4354_s12 }
0x15e5   :  { %v2079_v60 = vpop.permute.xlu0 %2078 }
0x15e6   :  { %2081 = vst.msk [vmem:[#allocation5] sm:$0xff] %vm106_vm0, %v2079_v60  ;;  %3840 = vmatmul.mubr.msk.f32.vlgmr.msra.gmra.mrb[14].mxu0 %vm106_vm0, %v2079_v60 }
0x15e7   :  { %4098 = vmatpush3.bf16.msra.mxu0 %v4097_v57  ;;  %3850 = vmatprep.mubr.msk.f32.mxu0 %vm4351_vm1, %v4352_v4 }
0x15e8   :  { %4099 = vmatprep.subr.bf16.mxu0 %v4350_v3 }
0x15e9   :  { %v2073_v0 = vpop.permute.xlu1 %2072 }
0x15ea   :  { %2076 = vst.msk [vmem:[#allocation4 + $0x38] sm:$0xff] %vm106_vm0, %v2073_v0 }
0x15eb   :  { %4101 = vmatpush3.bf16.msra.mxu0 %v4100_v61 }
0x15ec   :  { %4118 = vmatprep.subr.bf16.mxu0 %v4350_v3 }
0x15ed   :  { %v4958_v9 = vld [vmem:[#allocation5] sm:$0xff] }
0x15ee   :  { %3851 = vmatmul.mubr.msk.f32.vlgmr.msra.gmra.mrb[14].mxu0 %vm106_vm0, %v2073_v0  ;;  %3861 = vmatprep.mubr.msk.f32.mxu1 %vm106_vm0, %v4958_v9 }
0x15ef   :  { %4120 = vmatpush3.bf16.msra.mxu0 %v4119_v1  ;;  %3862 = vmatmul.mubr.msk.f32.vlgmr.msra.gmra.mrb[34].mxu1 %vm106_vm0, %v4969_v13 }
0x15f0   :  { %3864 = vmatprep.mubr.msk.f32.mxu1 %vm106_vm0, %v4973_v15  ;;  %4113 = vmatpush3.bf16.msra.mxu1 %v4110_v50  ;;  %v3397_v50 = vld [vmem:[%s5265_s19] ss:$0 sm:$0xff] }
0x15f1   :  { %4121 = vmatprep.subr.bf16.mxu0 %v4350_v3  ;;  %3901 = vmatprep.mubr.msk.f32.mxu0 %vm4351_vm1, %v4352_v4  ;;  %v2532_v3 = vld [vmem:[%s5258_s1] sm:$0xff]  ;;  %v4128_v4 = vpack.c.bf16 %v2624_v19, %v2623_v8  ;;  %v2242_v40 = vld [vmem:[#allocation4 + $0x38] sm:$0xff] }
0x15f2   :  { %4115 = vmatprep.subr.bf16.mxu1 %v4114_v14 }
0x15f3   :  { %4123 = vmatpush3.bf16.msra.mxu0 %v4122_v17  ;;  %3865 = vmatmul.mubr.msk.f32.gmra.mrb[36].mxu1 %vm106_vm0, %v4986_v20 }
0x15f4   :  { %3867 = vmatprep.mubr.msk.f32.mxu1 %vm106_vm0, %v4990_v21  ;;  %4125 = vmatprep.subr.bf16.mxu0 %v4124_v18 }
0x15f5   :  { %4117 = vmatpush3.bf16.msra.mxu1 %v4114_v14 }
0x15f6   :  { %3902 = vmatmul.mubr.msk.f32.vlgmr.msra.gmra.mrb[16].mxu0 %vm106_vm0, %v2532_v3 }
0x15f7   :  { %4127 = vmatpush3.bf16.msra.mxu0 %v4124_v18  ;;  %3868 = vmatmul.mubr.msk.f32.gmra.mrb[38].mxu1 %vm106_vm0, %v5004_v24 }
0x15f8   :  { %3870 = vmatprep.mubr.msk.f32.mxu1 %vm106_vm0, %v5011_v30  ;;  %4129 = vmatprep.subr.bf16.mxu0 %v4128_v4 }
0x15f9   :  { %3912 = vmatprep.mubr.msk.f32.mxu0 %vm106_vm0, %v2617_v25 }
0x15fb   :  { %4131 = vmatpush3.bf16.msra.mxu0 %v4128_v4  ;;  %3871 = vmatmul.mubr.msk.f32.gmra.mrb[40].mxu1 %vm106_vm0, %v5016_v27 }
0x15fc   :  { %3881 = vmatprep.mubr.msk.f32.mxu1 %vm106_vm0, %v2235_v29  ;;  %4133 = vmatprep.subr.bf16.mxu0 %v4132_v26 }
0x15fe   :  { %3913 = vmatmul.mubr.msk.f32.vlgmr.msra.gmra.mrb[18].mxu0 %vm106_vm0, %v2618_v33 }
0x15ff   :  { %4135 = vmatpush3.bf16.msra.mxu0 %v4132_v26  ;;  %3882 = vmatmul.mubr.msk.f32.vlgmr.msra.gmra.mrb[34].mxu1 %vm106_vm0, %v2236_v34 }
0x1600   :  { %3884 = vmatprep.mubr.msk.f32.mxu1 %vm106_vm0, %v2237_v35  ;;  %3915 = vmatprep.mubr.msk.f32.mxu0 %vm106_vm0, %v2619_v31 }
0x1601   :  { %4137 = vmatprep.subr.bf16.mxu0 %v4136_v32 }
0x1602   :  { %3916 = vmatmul.mubr.msk.f32.gmra.mrb[20].mxu0 %vm106_vm0, %v2620_v22 }
0x1603   :  { %4139 = vmatpush3.bf16.msra.mxu0 %v4136_v32  ;;  %3926 = vmatprep.mubr.msk.f32.mxu0 %vm106_vm0, %v2235_v29 }
0x1604   :  { %3885 = vmatmul.mubr.msk.f32.gmra.mrb[36].mxu1 %vm106_vm0, %v2238_v36 }
0x1605   :  { %3887 = vmatprep.mubr.msk.f32.mxu1 %vm106_vm0, %v2239_v37 }
0x1606   :  { %3927 = vmatmul.mubr.msk.f32.vlgmr.msra.gmra.mrb[22].mxu0 %vm106_vm0, %v2236_v34 }
0x1607   :  { %3929 = vmatprep.mubr.msk.f32.mxu0 %vm106_vm0, %v2237_v35 }
0x1608   :  { %3888 = vmatmul.mubr.msk.f32.gmra.mrb[38].mxu1 %vm106_vm0, %v2240_v38 }
0x1609   :  { %3890 = vmatprep.mubr.msk.f32.mxu1 %vm106_vm0, %v2241_v39 }
0x160a   :  { %3930 = vmatmul.mubr.msk.f32.gmra.mrb[24].mxu0 %vm106_vm0, %v2238_v36 }
0x160b   :  { %3932 = vmatprep.mubr.msk.f32.mxu0 %vm106_vm0, %v2239_v37 }
0x160c   :  { %3891 = vmatmul.mubr.msk.f32.gmra.mrb[40].mxu1 %vm106_vm0, %v2242_v40 }
0x160e   :  { %3933 = vmatmul.mubr.msk.f32.gmra.mrb[26].mxu0 %vm106_vm0, %v2240_v38 }
0x160f   :  { %3935 = vmatprep.mubr.msk.f32.mxu0 %vm106_vm0, %v2241_v39 }
0x1612   :  { %3936 = vmatmul.mubr.msk.f32.gmra.mrb[28].mxu0 %vm106_vm0, %v2242_v40 }
0x16c1   :  { %v2230_v42 = vpop.f32.mrb[14].mxu0 }
0x16c2   :  { %2234 = vst.msk [vmem:[%s5262_s27] sm:$0xff] %vm106_vm0, %v2230_v42  ;;  %v3852_v43 = vpop.f32.mrb[15].mxu0 }
0x16c9   :  { %v2613_v44 = vpop.f32.mrb[16].mxu0 }
0x16ca   :  { %v3903_v45 = vpop.f32.mrb[17].mxu0  ;;  %v5070_v52 = vadd.f32 %v3395_v46, %v2613_v44 }
0x16d1   :  { %v3914_v48 = vpop.f32.mrb[18].mxu0 }
0x16d2   :  { %v3883_v49 = vpop.f32.mrb[34].mxu1  ;;  %v2710_v51 = vpop.f32.mrb[19].mxu0  ;;  %v5073_v57 = vadd.f32 %v3914_v48, %v3397_v50 }
0x16d3   :  { %v2525_v53 = vadd.f32 %v3883_v49, %v3394_v47  ;;  %v2478_v54 = vpop.f32.mrb[35].mxu1  ;;  %v5075_v58 = vadd.f32 %v3397_v50, %v2710_v51 }
0x16d4   :  { %v2524_v55 = vadd.f32 %v3394_v47, %v2478_v54 }
0x16d5   :  { %v2730_v56 = vadd.f32 %v5070_v52, %v2525_v53  ;;  %v3917_v59 = vpop.f32.mrb[20].mxu0 }
0x16d6   :  { %v2729_v60 = vadd.f32 %v5070_v52, %v2524_v55  ;;  %v5078_v61 = vadd.f32 %v3917_v59, %v3397_v50  ;;  %v2720_v62 = vpop.f32.mrb[21].mxu0 }
0x16d7   :  { %v5080_v63 = vadd.f32 %v3397_v50, %v2720_v62  ;;  %v3886_v0 = vpop.f32.mrb[36].mxu1  ;;  %v2738_v1 = vadd.f32 %v2730_v56, %v5075_v58  ;;  %v2762_v2 = vadd.f32 %v2730_v56, %v5073_v57 }
0x16d8   :  { %v2761_v5 = vadd.f32 %v2729_v60, %v5073_v57  ;;  %v2527_v6 = vadd.f32 %v3886_v0, %v3394_v47  ;;  %v2488_v7 = vpop.f32.mrb[37].mxu1  ;;  %v5086_v10 = vadd.f32 %v2730_v56, %v5078_v61  ;;  %v5089_v11 = vadd.f32 %v2729_v60, %v5075_v58 }
0x16d9   :  { %v2526_v14 = vadd.f32 %v3394_v47, %v2488_v7  ;;  %4286 = vtanh.f32 %v2738_v1  ;;  %v5092_v17 = vadd.f32 %v2730_v56, %v5080_v63  ;;  %v5095_v18 = vadd.f32 %v2729_v60, %v5080_v63 }
0x16da   :  { %4288 = vtanh.f32 %v2761_v5  ;;  %v2732_v8 = vadd.f32 %v5070_v52, %v2527_v6  ;;  %v5099_v19 = vadd.f32 %v2729_v60, %v5078_v61 }
0x16db   :  { %v2731_v3 = vadd.f32 %v5070_v52, %v2526_v14  ;;  %v3889_v4 = vpop.f32.mrb[38].mxu1  ;;  %4290 = vtanh.f32 %v2762_v2 }
0x16dc   :  { %v2740_v12 = vadd.f32 %v2732_v8, %v5075_v58  ;;  %v2764_v23 = vadd.f32 %v2732_v8, %v5073_v57  ;;  %v2788_v25 = vadd.f32 %v2732_v8, %v5080_v63  ;;  %v2812_v26 = vadd.f32 %v2732_v8, %v5078_v61  ;;  %v2498_v28 = vpop.f32.mrb[39].mxu1 }
0x16dd   :  { %v2739_v16 = vadd.f32 %v2731_v3, %v5075_v58  ;;  %v2763_v29 = vadd.f32 %v2731_v3, %v5073_v57  ;;  %v2787_v33 = vadd.f32 %v2731_v3, %v5080_v63  ;;  %v2811_v31 = vadd.f32 %v2731_v3, %v5078_v61 }
0x16de   :  { %4292 = vtanh.f32 %v2740_v12  ;;  %v2529_v32 = vadd.f32 %v3889_v4, %v3394_v47  ;;  %v2528_v34 = vadd.f32 %v3394_v47, %v2498_v28 }
0x16df   :  { %4294 = vtanh.f32 %v2764_v23  ;;  %v3892_v35 = vpop.f32.mrb[40].mxu1 }
0x16e0   :  { %4296 = vtanh.f32 %v2788_v25  ;;  %v2734_v22 = vadd.f32 %v5070_v52, %v2529_v32  ;;  %v2733_v36 = vadd.f32 %v5070_v52, %v2528_v34  ;;  %v2531_v37 = vadd.f32 %v3892_v35, %v3394_v47  ;;  %v2508_v38 = vpop.f32.mrb[41].mxu1 }
0x16e1   :  { %4298 = vtanh.f32 %v2812_v26  ;;  %v2530_v39 = vadd.f32 %v3394_v47, %v2508_v38 }
0x16e2   :  { %4300 = vtanh.f32 %v2739_v16  ;;  %v2742_v40 = vadd.f32 %v2734_v22, %v5075_v58  ;;  %v2766_v41 = vadd.f32 %v2734_v22, %v5073_v57  ;;  %v2790_v42 = vadd.f32 %v2734_v22, %v5080_v63 }
0x16e3   :  { %v4287_v43 = vpop.eup %4286  ;;  %4302 = vtanh.f32 %v2763_v29  ;;  %v2814_v44 = vadd.f32 %v2734_v22, %v5078_v61  ;;  %v2741_v45 = vadd.f32 %v2733_v36, %v5075_v58  ;;  %v2765_v46 = vadd.f32 %v2733_v36, %v5073_v57 }
0x16e4   :  { %v5118_v48 = vpop.eup %4288  ;;  %4304 = vtanh.f32 %v2787_v33  ;;  %v2789_v47 = vadd.f32 %v2733_v36, %v5080_v63  ;;  %v2813_v49 = vadd.f32 %v2733_v36, %v5078_v61  ;;  %v2736_v50 = vadd.f32 %v5070_v52, %v2531_v37 }
0x16e5   :  { %v4291_v51 = vpop.eup %4290  ;;  %4306 = vtanh.f32 %v2811_v31  ;;  %v2735_v53 = vadd.f32 %v5070_v52, %v2530_v39 }
0x16e6   :  { %4308 = vtanh.f32 %v2742_v40  ;;  %v2744_v54 = vadd.f32 %v2736_v50, %v5075_v58  ;;  %v2768_v55 = vadd.f32 %v2736_v50, %v5073_v57  ;;  %v2792_v56 = vadd.f32 %v2736_v50, %v5080_v63 }
0x16e7   :  { %4310 = vtanh.f32 %v2766_v41  ;;  %v2816_v59 = vadd.f32 %v2736_v50, %v5078_v61  ;;  %v2743_v60 = vadd.f32 %v2735_v53, %v5075_v58  ;;  %v2767_v62 = vadd.f32 %v2735_v53, %v5073_v57 }
0x16e8   :  { %v4293_v0 = vpop.eup %4292  ;;  %4312 = vtanh.f32 %v2790_v42  ;;  %v2791_v1 = vadd.f32 %v2735_v53, %v5080_v63  ;;  %v2815_v2 = vadd.f32 %v2735_v53, %v5078_v61  ;;  %v2778_v5 = vadd.f32 %v4291_v51, %v4287_v43 }
0x16e9   :  { %v4295_v6 = vpop.eup %4294  ;;  %4314 = vtanh.f32 %v2814_v44 }
0x16ea   :  { %v4297_v7 = vpop.eup %4296  ;;  %4316 = vtanh.f32 %v2741_v45  ;;  %v2780_v14 = vadd.f32 %v4295_v6, %v4293_v0 }
0x16eb   :  { %v4299_v8 = vpop.eup %4298  ;;  %4318 = vtanh.f32 %v2765_v46 }
0x16ec   :  { %v4301_v3 = vpop.eup %4300  ;;  %4320 = vtanh.f32 %v2789_v47  ;;  %v2804_v4 = vadd.f32 %v4297_v7, %v2780_v14 }
0x16ed   :  { %v4303_v58 = vpop.eup %4302  ;;  %4322 = vtanh.f32 %v2813_v49 }
0x16ee   :  { %v4305_v57 = vpop.eup %4304  ;;  %4324 = vtanh.f32 %v2744_v54  ;;  %v2779_v12 = vadd.f32 %v4303_v58, %v4301_v3  ;;  %v5132_v23 = vadd.f32 %v4299_v8, %v2804_v4 }
0x16ef   :  { %v4307_v63 = vpop.eup %4306  ;;  %4326 = vtanh.f32 %v2768_v55 }
0x16f0   :  { %v4309_v61 = vpop.eup %4308  ;;  %4328 = vtanh.f32 %v2792_v56  ;;  %v2803_v25 = vadd.f32 %v4305_v57, %v2779_v12 }
0x16f1   :  { %v4311_v26 = vpop.eup %4310  ;;  %4330 = vtanh.f32 %v2816_v59 }
0x16f2   :  { %v4313_v28 = vpop.eup %4312  ;;  %4332 = vtanh.f32 %v2743_v60  ;;  %v2827_v16 = vadd.f32 %v4307_v63, %v2803_v25  ;;  %v2782_v29 = vadd.f32 %v4311_v26, %v4309_v61 }
0x16f3   :  { %v4315_v33 = vpop.eup %4314  ;;  %4334 = vtanh.f32 %v2767_v62 }
0x16f4   :  { %v4317_v31 = vpop.eup %4316  ;;  %4336 = vtanh.f32 %v2791_v1  ;;  %v2806_v32 = vadd.f32 %v4313_v28, %v2782_v29  ;;  %v4355_v28 = vmov 0  }
0x16f5   :  { %v4319_v34 = vpop.eup %4318  ;;  %4338 = vtanh.f32 %v2815_v2  ;;  %4189 = vset.pattern.permute.xlu0 %v4355_v28  ;;  %4188 = vset.pattern.permute.xlu1 %v4355_v28 }
0x16f6   :  { %v4321_v35 = vpop.eup %4320  ;;  %4340 = vtanh.f32 %v5092_v17  ;;  %v2781_v22 = vadd.f32 %v4319_v34, %v4317_v31  ;;  %v2830_v36 = vadd.f32 %v4315_v33, %v2806_v32  ;;  %v2875_v33 = vlaneseq  ;;  %v2872_v32 = vld [vmem:[#allocation6] sm:$0x1] }
0x16f7   :  { %v4323_v37 = vpop.eup %4322  ;;  %4342 = vtanh.f32 %v5086_v10  ;;  %v2873_v34 = vmul.f32 4.0, %v2872_v32 }
0x16f8   :  { %v4325_v38 = vpop.eup %4324  ;;  %4344 = vtanh.f32 %v5089_v11  ;;  %v2805_v39 = vadd.f32 %v4321_v35, %v2781_v22  ;;  %v2876_v31 = vshrl.u32 %v2875_v33, 7 }
0x16f9   :  { %v4327_v40 = vpop.eup %4326  ;;  %4346 = vtanh.f32 %v5095_v18  ;;  %v3402_v18 = vld [vmem:[%s5266_s20] ss:$0 sm:$0xff] }
0x16fa   :  { %v4329_v41 = vpop.eup %4328  ;;  %v2829_v42 = vadd.f32 %v4323_v37, %v2805_v39  ;;  %v2784_v43 = vadd.f32 %v4327_v40, %v4325_v38  ;;  %4348 = vtanh.f32 %v5099_v19  ;;  %v2843_v57 = vmul.f32 %v3402_v18, %v5132_v23  ;;  %v2936_v23 = vld [vmem:[%s5267_s22] sm:$0xff]  ;;  %v2938_v38 = vld [vmem:[%s5267_s22 + $0x10] sm:$0xff]  ;;  %v2939_v39 = vld [vmem:[%s5267_s22 + $0x18] sm:$0xff] }
0x16fb   :  { %v4331_v44 = vpop.eup %4330  ;;  %v2845_v63 = vmul.f32 %v3402_v18, %v2830_v36  ;;  %v2877_v35 = vsub.s32 0, %v2876_v31 }
0x16fc   :  { %v4333_v45 = vpop.eup %4332  ;;  %v2808_v17 = vadd.f32 %v4329_v41, %v2784_v43  ;;  %v2844_v1 = vmul.f32 %v3402_v18, %v2829_v42  ;;  %v2857_v12 = vsel %vm106_vm0, %v2843_v57, 0.0  ;;  %v4144_v41 = vpack.c.bf16 %v2939_v39, %v2938_v38 }
0x16fd   :  { %v4335_v46 = vpop.eup %4334  ;;  %v2863_v61 = vsel %vm106_vm0, %v2845_v63, 0.0  ;;  %v2878_v22 = vrot.slane %v2873_v34, %v2877_v35 }
0x16fe   :  { %v4337_v47 = vpop.eup %4336  ;;  %v2783_v49 = vadd.f32 %v4335_v46, %v4333_v45  ;;  %v2832_v50 = vadd.f32 %v4331_v44, %v2808_v17  ;;  %v2860_v8 = vsel %vm106_vm0, %v2844_v1, 0.0 }
0x16ff   :  { %v4339_v10 = vpop.eup %4338 }
0x1700   :  { %v4341_v51 = vpop.eup %4340  ;;  %v2807_v53 = vadd.f32 %v4337_v47, %v2783_v49  ;;  %v2847_v25 = vmul.f32 %v3402_v18, %v2832_v50  ;;  %v3178_v50 = vld [vmem:[%s5268_s24] sm:$0xff] }
0x1701   :  { %v4343_v11 = vpop.eup %4342  ;;  %v2802_v54 = vadd.f32 %v4341_v51, %v2778_v5  ;;  %v2842_v5 = vmul.f32 %v3402_v18, %v2827_v16  ;;  %v2937_v16 = vld [vmem:[%s5267_s22 + $0x8] sm:$0xff] }
0x1702   :  { %v4345_v55 = vpop.eup %4344  ;;  %v2831_v56 = vadd.f32 %v4339_v10, %v2807_v53  ;;  %v2869_v26 = vsel %vm106_vm0, %v2847_v25, 0.0  ;;  %v4140_v29 = vpack.c.bf16 %v2937_v16, %v2936_v23  ;;  %v3179_v10 = vld [vmem:[%s5268_s24 + $0x8] sm:$0xff] }
0x1703   :  { %v2826_v59 = vadd.f32 %v4343_v11, %v2802_v54  ;;  %v2777_v60 = vadd.f32 %v4345_v55, %v5118_v48  ;;  %v4347_v19 = vpop.eup %4346  ;;  %v2854_v48 = vsel %vm106_vm0, %v2842_v5, 0.0  ;;  %v4148_v53 = vpack.c.bf16 %v3179_v10, %v3178_v50 }
0x1704   :  { %v4349_v2 = vpop.eup %4348  ;;  %v2846_v3 = vmul.f32 %v3402_v18, %v2831_v56  ;;  %4141 = vmatprep.subr.bf16.mxu0 %v4140_v29 }
0x1705   :  { %v2841_v62 = vmul.f32 %v3402_v18, %v2826_v59  ;;  %v2801_v0 = vadd.f32 %v4347_v19, %v2777_v60  ;;  %4143 = vmatpush3.bf16.msra.mxu0 %v4140_v29  ;;  %v3180_v59 = vld [vmem:[%s5268_s24 + $0x10] sm:$0xff]  ;;  %v3181_v60 = vld [vmem:[%s5268_s24 + $0x18] sm:$0xff] }
0x1706   :  { %v2866_v58 = vsel %vm106_vm0, %v2846_v3, 0.0  ;;  %4145 = vmatprep.subr.bf16.mxu0 %v4144_v41  ;;  %v4152_v1 = vpack.c.bf16 %v3181_v60, %v3180_v59 }
0x1707   :  { %v2851_v6 = vsel %vm106_vm0, %v2841_v62, 0.0  ;;  %v2825_v7 = vadd.f32 %v4349_v2, %v2801_v0 }
0x1708   :  { %2852 = vadd.xlane.f32.xlu1 %v2851_v6 }
0x1709   :  { %v2840_v14 = vmul.f32 %v3402_v18, %v2825_v7  ;;  %4147 = vmatpush3.bf16.msra.mxu0 %v4144_v41 }
0x170a   :  { %4149 = vmatprep.subr.bf16.mxu0 %v4148_v53 }
0x170b   :  { %v2848_v4 = vsel %vm106_vm0, %v2840_v14, 0.0 }
0x170c   :  { %2849 = vadd.xlane.f32.xlu0 %v2848_v4  ;;  %2861 = vadd.xlane.f32.xlu1 %v2860_v8 }
0x1710   :  { %2855 = vadd.xlane.f32.xlu0 %v2854_v48  ;;  %2867 = vadd.xlane.f32.xlu1 %v2866_v58 }
0x1714   :  { %2858 = vadd.xlane.f32.xlu0 %v2857_v12 }
0x1718   :  { %2864 = vadd.xlane.f32.xlu0 %v2863_v61 }
0x171c   :  { %2870 = vadd.xlane.f32.xlu0 %v2869_v26 }
0x1795   :  { %v2853_v36 = vpop.xlane.xlu1 %2852 }
0x1796   :  { %v2881_v37 = vadd.f32 %v2878_v22, %v2853_v36 }
0x1798   :  { %2895 = vperm.xlu0 %4189, %v2881_v37  }
0x1799   :  { %v2850_v40 = vpop.xlane.xlu0 %2849  ;;  %v2862_v47 = vpop.xlane.xlu1 %2861 }
0x179a   :  { %v2880_v42 = vadd.f32 %v2878_v22, %v2850_v40  ;;  %v2884_v51 = vadd.f32 %v2878_v22, %v2862_v47 }
0x179c   :  { %2890 = vperm.xlu1 %4188, %v2880_v42  }
0x179d   :  { %v2856_v43 = vpop.xlane.xlu0 %2855  ;;  %v2868_v11 = vpop.xlane.xlu1 %2867 }
0x179e   :  { %v2882_v17 = vadd.f32 %v2878_v22, %v2856_v43  ;;  %v2886_v54 = vadd.f32 %v2878_v22, %v2868_v11 }
0x17a1   :  { %v2859_v44 = vpop.xlane.xlu0 %2858 }
0x17a2   :  { %v2883_v45 = vadd.f32 %v2878_v22, %v2859_v44 }
0x17a4   :  { %2905 = vperm.xlu1 %4188, %v2883_v45  }
0x17a5   :  { %v2865_v46 = vpop.xlane.xlu0 %2864 }
0x17a6   :  { %v2885_v49 = vadd.f32 %v2878_v22, %v2865_v46 }
0x17a8   :  { %2900 = vperm.xlu1 %4188, %v2882_v17  }
0x17a9   :  { %v2871_v55 = vpop.xlane.xlu0 %2870 }
0x17aa   :  { %v2887_v18 = vadd.f32 %v2878_v22, %v2871_v55 }
0x17ac   :  { %2915 = vperm.xlu1 %4188, %v2885_v49  }
0x17b0   :  { %2910 = vperm.xlu1 %4188, %v2884_v51  }
0x17b4   :  { %2920 = vperm.xlu1 %4188, %v2886_v54  }
0x17b8   :  { %2925 = vperm.xlu1 %4188, %v2887_v18  }
0x1817   :  { %v2896_v56 = vpop.permute.xlu0 %2895 }
0x1818   :  { %v2929_v0 = vmul.f32 %v2896_v56, %v5070_v52 }
0x181b   :  { %v2891_v19 = vpop.permute.xlu1 %2890 }
0x181c   :  { %v2928_v62 = vmul.f32 %v2891_v19, %v5070_v52 }
0x181e   :  { %3946 = vmatprep.mubr.msk.f32.mxu0 %vm106_vm0, %v2928_v62 }
0x181f   :  { %3947 = vmatmul.mubr.msk.f32.vlgmr.msra.gmra.mrb[22].mxu0 %vm106_vm0, %v2929_v0 }
0x1820   :  { %4151 = vmatpush3.bf16.msra.mxu0 %v4148_v53 }
0x1821   :  { %4153 = vmatprep.subr.bf16.mxu0 %v4152_v1 }
0x1823   :  { %v2906_v2 = vpop.permute.xlu1 %2905 }
0x1824   :  { %4155 = vmatpush3.bf16.msra.mxu0 %v4152_v1  ;;  %v2931_v14 = vmul.f32 %v2906_v2, %v5070_v52 }
0x1827   :  { %v2901_v6 = vpop.permute.xlu1 %2900 }
0x1828   :  { %v2930_v7 = vmul.f32 %v2901_v6, %v5070_v52 }
0x182a   :  { %3949 = vmatprep.mubr.msk.f32.mxu0 %vm106_vm0, %v2930_v7 }
0x182b   :  { %3950 = vmatmul.mubr.msk.f32.gmra.mrb[24].mxu0 %vm106_vm0, %v2931_v14  ;;  %v2916_v5 = vpop.permute.xlu1 %2915 }
0x182c   :  { %v2933_v4 = vmul.f32 %v2916_v5, %v5070_v52 }
0x182f   :  { %v2911_v8 = vpop.permute.xlu1 %2910 }
0x1830   :  { %v2932_v3 = vmul.f32 %v2911_v8, %v5070_v52 }
0x1832   :  { %3952 = vmatprep.mubr.msk.f32.mxu0 %vm106_vm0, %v2932_v3 }
0x1833   :  { %3953 = vmatmul.mubr.msk.f32.gmra.mrb[26].mxu0 %vm106_vm0, %v2933_v4  ;;  %v2921_v48 = vpop.permute.xlu1 %2920 }
0x1834   :  { %v2934_v58 = vmul.f32 %v2921_v48, %v5070_v52 }
0x1836   :  { %3955 = vmatprep.mubr.msk.f32.mxu0 %vm106_vm0, %v2934_v58 }
0x1837   :  { %v2926_v57 = vpop.permute.xlu1 %2925 }
0x1838   :  { %v2935_v12 = vmul.f32 %v2926_v57, %v5070_v52 }
0x183a   :  { %3956 = vmatmul.mubr.msk.f32.gmra.mrb[28].mxu0 %vm106_vm0, %v2935_v12 }
0x183b   :  { %3966 = vmatprep.mubr.msk.f32.mxu0 %vm106_vm0, %v4958_v9  ;;  %v3427_v9 = vld [vmem:[%s5269_s25] ss:$0 sm:$0xff] }
0x183e   :  { %3967 = vmatmul.mubr.msk.f32.vlgmr.msra.gmra.mrb[22].mxu0 %vm106_vm0, %v4969_v13 }
0x183f   :  { %3969 = vmatprep.mubr.msk.f32.mxu0 %vm106_vm0, %v4973_v15 }
0x1842   :  { %3970 = vmatmul.mubr.msk.f32.gmra.mrb[24].mxu0 %vm106_vm0, %v4986_v20 }
0x1843   :  { %3972 = vmatprep.mubr.msk.f32.mxu0 %vm106_vm0, %v4990_v21 }
0x1846   :  { %3973 = vmatmul.mubr.msk.f32.gmra.mrb[26].mxu0 %vm106_vm0, %v5004_v24 }
0x1847   :  { %3975 = vmatprep.mubr.msk.f32.mxu0 %vm106_vm0, %v5011_v30 }
0x184a   :  { %3976 = vmatmul.mubr.msk.f32.gmra.mrb[28].mxu0 %vm106_vm0, %v5016_v27 }
0x1911   :  { %v3968_v13 = vpop.f32.mrb[22].mxu0 }
0x1912   :  { %v3303_v15 = vadd.f32 %v3968_v13, %v3427_v9  ;;  %v3248_v52 = vpop.f32.mrb[23].mxu0 }
0x1913   :  { %v3302_v20 = vadd.f32 %v3427_v9, %v3248_v52 }
0x1914   :  { %3311 = vst.msk [vmem:[%s5270_s26 + $0x8] sm:$0xff] %vm106_vm0, %v3303_v15 }
0x1915   :  { %3310 = vst.msk [vmem:[%s5270_s26] sm:$0xff] %vm106_vm0, %v3302_v20  ;;  %v3971_v21 = vpop.f32.mrb[24].mxu0 }
0x1916   :  { %v3305_v24 = vadd.f32 %v3971_v21, %v3427_v9  ;;  %v3258_v30 = vpop.f32.mrb[25].mxu0 }
0x1917   :  { %v3304_v27 = vadd.f32 %v3427_v9, %v3258_v30 }
0x1918   :  { %3313 = vst.msk [vmem:[%s5270_s26 + $0x18] sm:$0xff] %vm106_vm0, %v3305_v24 }
0x1919   :  { %3312 = vst.msk [vmem:[%s5270_s26 + $0x10] sm:$0xff] %vm106_vm0, %v3304_v27  ;;  %v3974_v63 = vpop.f32.mrb[26].mxu0 }
0x191a   :  { %v3307_v61 = vadd.f32 %v3974_v63, %v3427_v9  ;;  %v3268_v25 = vpop.f32.mrb[27].mxu0 }
0x191b   :  { %v3306_v26 = vadd.f32 %v3427_v9, %v3268_v25 }
0x191c   :  { %3315 = vst.msk [vmem:[%s5270_s26 + $0x28] sm:$0xff] %vm106_vm0, %v3307_v61 }
0x191d   :  { %3314 = vst.msk [vmem:[%s5270_s26 + $0x20] sm:$0xff] %vm106_vm0, %v3306_v26  ;;  %v3977_v28 = vpop.f32.mrb[28].mxu0 }
0x191e   :  { %v3309_v23 = vadd.f32 %v3977_v28, %v3427_v9  ;;  %v3278_v16 = vpop.f32.mrb[29].mxu0 }
0x191f   :  { %v3308_v29 = vadd.f32 %v3427_v9, %v3278_v16 }
0x1920   :  { %3317 = vst.msk [vmem:[%s5270_s26 + $0x38] sm:$0xff] %vm106_vm0, %v3309_v23 }
0x1921   :  { %3316 = vst.msk [vmem:[%s5270_s26 + $0x30] sm:$0xff] %vm106_vm0, %v3308_v29 }

</bundles_post_ra>
